<compile_context>
chip_gen: v5e
topology: v5e:2x2
jax: 0.10.0
libtpu: 0.0.40
codegen_flags: <defaults>
</compile_context>

<pallas_src>
import numpy as np
import jax
import jax.numpy as jnp
from jax import lax
from jax.experimental import pallas as pl
from jax.experimental.pallas import tpu as pltpu

# ----- model dimensions (fixed by the PyTorch module: input is (B,1,28,28)) -----
B = 2
IN_C = 1
IMG = 28
K = 5
C1 = 10                 # conv1 out channels (real)
C2 = 20                 # conv2 out channels (real)
C1P = 128               # conv1 channels padded to one lane tile
C2P = 128               # conv2 channels padded to one lane tile
H1 = IMG - K + 1        # 24 : conv1 output spatial
P1 = H1 // 2            # 12 : after 2x2 maxpool
H2 = P1 - K + 1         # 8  : conv2 output spatial
P2 = H2 // 2            # 4  : after 2x2 maxpool
FC1_IN = C2 * P2 * P2   # 320 (real, PyTorch view)
FC1_OUT = 50
FC2_OUT = 10

A1_ROWS = H1 * H1            # 576 conv1 im2col rows per image
A2_COLS = K * K * C1P        # 3200 padded conv2 im2col columns
FLAT_COLS = P2 * P2 * C2P    # 2048 padded fc1 input width
CHUNK_IMG_ROWS = 8           # conv1 output rows per matmul chunk
CHUNK_A1_ROWS = CHUNK_IMG_ROWS * H1   # 192 (multiple of 8)


def _maxpool2_relu(src_ref, n):
    """2x2 / stride-2 max pool + ReLU over a (H, W, C) VMEM scratch -> value."""
    p00 = src_ref[pl.ds(0, n, 2), pl.ds(0, n, 2), :]
    p01 = src_ref[pl.ds(0, n, 2), pl.ds(1, n, 2), :]
    p10 = src_ref[pl.ds(1, n, 2), pl.ds(0, n, 2), :]
    p11 = src_ref[pl.ds(1, n, 2), pl.ds(1, n, 2), :]
    m = jnp.maximum(jnp.maximum(p00, p01), jnp.maximum(p10, p11))
    return jnp.maximum(m, 0.0)


def net_kernel(a1_ref, w1_ref, b1_ref, w2_ref, b2_ref,
               fw1_ref, fb1_ref, fw2_ref, fb2_ref,
               out_ref,
               s1_ref, p1_ref, a2_ref, s2_ref, p2_ref, flat_ref):
    # ---- conv1: single im2col matmul (576,25)x(25,128), chunked over rows ----
    n_chunks = A1_ROWS // CHUNK_A1_ROWS          # 3
    for c in range(n_chunks):
        blk = jnp.dot(a1_ref[pl.ds(c * CHUNK_A1_ROWS, CHUNK_A1_ROWS), :],
                      w1_ref[...], preferred_element_type=jnp.float32)
        blk = blk + b1_ref[...]
        s1_ref[pl.ds(c * CHUNK_IMG_ROWS, CHUNK_IMG_ROWS), :, :] = (
            blk.reshape(CHUNK_IMG_ROWS, H1, C1P))

    # ---- relu(max_pool2d(conv1)) -> (12,12,128) ----
    p1_ref[...] = _maxpool2_relu(s1_ref, P1)

    # ---- conv2: lane-aligned im2col into scratch, then ONE MXU dot ----
    # (Dropout2d == identity in eval mode.)
    for ki in range(K):
        for kj in range(K):
            p = ki * K + kj
            patch = p1_ref[pl.ds(ki, H2), pl.ds(kj, H2), :]          # (8,8,128)
            a2_ref[:, pl.ds(p * C1P, C1P)] = (
                patch.reshape(H2 * H2, C1P).astype(jnp.bfloat16))
    s2 = jnp.dot(a2_ref[...], w2_ref[...],
                 preferred_element_type=jnp.float32) + b2_ref[...]   # (64,128)
    s2_ref[...] = s2.reshape(H2, H2, C2P)

    # ---- relu(max_pool2d(conv2)) -> (4,4,128) ----
    p2_ref[...] = _maxpool2_relu(s2_ref, P2)

    # ---- fc1: flatten (h,w,c_pad) into a lane-dense (1,2048) row, one dot ----
    for h in range(P2):
        for w in range(P2):
            flat_ref[:, pl.ds((h * P2 + w) * C2P, C2P)] = p2_ref[pl.ds(h, 1), w, :]
    h1 = jnp.dot(flat_ref[...].astype(jnp.bfloat16), fw1_ref[...],
                 preferred_element_type=jnp.float32) + fb1_ref[...]  # (1,50)
    h1 = jnp.maximum(h1, 0.0)
    # dropout: identity (eval mode)

    # ---- fc2 (50 -> 10) + log_softmax ----
    logits = jnp.dot(h1.astype(jnp.bfloat16), fw2_ref[...],
                     preferred_element_type=jnp.float32) + fb2_ref[...]
    m = jnp.max(logits, axis=-1, keepdims=True)
    z = logits - m
    lse = jnp.log(jnp.sum(jnp.exp(z), axis=-1, keepdims=True))
    out_ref[...] = (z - lse).reshape(1, 1, FC2_OUT)


def net_forward(x_nchw, params):
    f32, bf16 = jnp.float32, jnp.bfloat16

    # ---- wrapper-side layout glue (pure XLA) ----
    x = x_nchw.astype(f32)[:, 0, :, :]                                # (B,28,28)
    # conv1 im2col: row = b*576 + h*24 + w, col = ki*5 + kj
    cols = [x[:, ki:ki + H1, kj:kj + H1] for ki in range(K) for kj in range(K)]
    a1 = jnp.stack(cols, axis=-1).reshape(B * A1_ROWS, K * K).astype(bf16)

    # conv1 weight -> (25, C1P), output channels zero-padded to the lane tile
    w1 = params["conv1_w"].reshape(C1, K * K).T                       # (25,10)
    w1p = jnp.zeros((K * K, C1P), f32).at[:, :C1].set(w1).astype(bf16)
    b1p = jnp.zeros((1, C1P), f32).at[:, :C1].set(params["conv1_b"])

    # conv2 weight -> (25*C1P, C2P), rows ordered (ki, kj, c_in_padded)
    w2 = jnp.transpose(params["conv2_w"], (2, 3, 1, 0))               # (5,5,10,20)
    w2p = jnp.zeros((K, K, C1P, C2P), f32).at[:, :, :C1, :C2].set(w2)
    w2p = w2p.reshape(A2_COLS, C2P).astype(bf16)
    b2p = jnp.zeros((1, C2P), f32).at[:, :C2].set(params["conv2_b"])

    # fc1 weight: PyTorch flatten order is (c,h,w); kernel flat order is
    # (h, w, c_padded) -> reorder + zero-pad the channel rows.
    fw1 = params["fc1_w"].reshape(FC1_OUT, C2, P2, P2).transpose(2, 3, 1, 0)
    fw1p = jnp.zeros((P2, P2, C2P, FC1_OUT), f32).at[:, :, :C2, :].set(fw1)
    fw1p = fw1p.reshape(FLAT_COLS, FC1_OUT).astype(bf16)
    fb1 = params["fc1_b"].reshape(1, FC1_OUT).astype(f32)
    fw2 = params["fc2_w"].T.astype(bf16)                              # (50,10)
    fb2 = params["fc2_b"].reshape(1, FC2_OUT).astype(f32)

    args = (a1, w1p, b1p, w2p, b2p, fw1p, fb1, fw2, fb2)

    def full_spec(shape):
        nd = len(shape)
        return pl.BlockSpec(shape, lambda b, _nd=nd: (0,) * _nd)

    in_specs = [pl.BlockSpec((A1_ROWS, K * K), lambda b: (b, 0))]
    in_specs += [full_spec(a.shape) for a in args[1:]]

    grid_spec = pltpu.PrefetchScalarGridSpec(
        num_scalar_prefetch=0,
        grid=(B,),                                 # one image per step
        in_specs=in_specs,
        out_specs=pl.BlockSpec((1, 1, FC2_OUT), lambda b: (b, 0, 0)),
        scratch_shapes=[
            pltpu.VMEM((H1, H1, C1P), jnp.float32),      # conv1 pre-pool
            pltpu.VMEM((P1, P1, C1P), jnp.float32),      # pooled1
            pltpu.VMEM((H2 * H2, A2_COLS), jnp.bfloat16),  # conv2 im2col
            pltpu.VMEM((H2, H2, C2P), jnp.float32),      # conv2 pre-pool
            pltpu.VMEM((P2, P2, C2P), jnp.float32),      # pooled2
            pltpu.VMEM((1, FLAT_COLS), jnp.float32),     # fc1 flattened input
        ],
    )

    out = pl.pallas_call(
        net_kernel,
        out_shape=jax.ShapeDtypeStruct((B, 1, FC2_OUT), jnp.float32),
        grid_spec=grid_spec,
        compiler_params=pltpu.CompilerParams(
            dimension_semantics=("parallel",)),
    )(*args)
    return out.reshape(B, FC2_OUT)


def init_params(key):
    ks = jax.random.split(key, 8)

    def u(k, shape, fan_in):
        bound = 1.0 / float(np.sqrt(fan_in))
        return jax.random.uniform(k, shape, jnp.float32, -bound, bound)

    return {
        "conv1_w": u(ks[0], (C1, IN_C, K, K), IN_C * K * K),
        "conv1_b": u(ks[1], (C1,), IN_C * K * K),
        "conv2_w": u(ks[2], (C2, C1, K, K), C1 * K * K),
        "conv2_b": u(ks[3], (C2,), C1 * K * K),
        "fc1_w":   u(ks[4], (FC1_OUT, FC1_IN), FC1_IN),
        "fc1_b":   u(ks[5], (FC1_OUT,), FC1_IN),
        "fc2_w":   u(ks[6], (FC2_OUT, FC1_OUT), FC1_OUT),
        "fc2_b":   u(ks[7], (FC2_OUT,), FC1_OUT),
    }


def reference_forward(x, p):
    """Pure-JAX reference mirroring the PyTorch forward (eval mode)."""
    dn = ("NCHW", "OIHW", "NCHW")
    y = lax.conv_general_dilated(x, p["conv1_w"], (1, 1), "VALID", dimension_numbers=dn)
    y = y + p["conv1_b"][None, :, None, None]
    y = lax.reduce_window(y, -jnp.inf, lax.max, (1, 1, 2, 2), (1, 1, 2, 2), "VALID")
    y = jnp.maximum(y, 0.0)
    y = lax.conv_general_dilated(y, p["conv2_w"], (1, 1), "VALID", dimension_numbers=dn)
    y = y + p["conv2_b"][None, :, None, None]
    y = lax.reduce_window(y, -jnp.inf, lax.max, (1, 1, 2, 2), (1, 1, 2, 2), "VALID")
    y = jnp.maximum(y, 0.0)
    y = y.reshape(y.shape[0], -1)
    y = jnp.maximum(y @ p["fc1_w"].T + p["fc1_b"], 0.0)
    y = y @ p["fc2_w"].T + p["fc2_b"]
    return jax.nn.log_softmax(y, axis=-1)


if __name__ == "__main__":
    key = jax.random.PRNGKey(0)
    kx, kp = jax.random.split(key)
    x = jax.random.normal(kx, (B, IN_C, IMG, IMG), jnp.float32)   # NCHW like PyTorch
    params = init_params(kp)

    out = net_forward(x, params)
    out = jax.block_until_ready(out)

    ref = reference_forward(x, params)
    assert out.shape == (B, FC2_OUT), out.shape
    if not np.allclose(np.asarray(out), np.asarray(ref), rtol=5e-2, atol=5e-2):
        raise AssertionError("Pallas kernel output does not match JAX reference")

    print("KERNEL_OK")
</pallas_src>

<mosaic_0001>
module attributes {stable_mosaic.version = 11 : i64} {
  func.func @net_kernel(%arg0: i32, %arg1: memref<576x25xbf16, #tpu.memory_space<vmem>>, %arg2: memref<25x128xbf16, #tpu.memory_space<vmem>>, %arg3: memref<1x128xf32, #tpu.memory_space<vmem>>, %arg4: memref<3200x128xbf16, #tpu.memory_space<vmem>>, %arg5: memref<1x128xf32, #tpu.memory_space<vmem>>, %arg6: memref<2048x50xbf16, #tpu.memory_space<vmem>>, %arg7: memref<1x50xf32, #tpu.memory_space<vmem>>, %arg8: memref<50x10xbf16, #tpu.memory_space<vmem>>, %arg9: memref<1x10xf32, #tpu.memory_space<vmem>>, %arg10: memref<1x1x10xf32, #tpu.memory_space<vmem>>, %arg11: memref<24x24x128xf32, #tpu.memory_space<vmem>>, %arg12: memref<12x12x128xf32, #tpu.memory_space<vmem>>, %arg13: memref<64x3200xbf16, #tpu.memory_space<vmem>>, %arg14: memref<8x8x128xf32, #tpu.memory_space<vmem>>, %arg15: memref<4x4x128xf32, #tpu.memory_space<vmem>>, %arg16: memref<1x2048xf32, #tpu.memory_space<vmem>>) attributes {dimension_semantics = [#tpu.dimension_semantics<parallel>], iteration_bounds = array<i64: 2>, scalar_prefetch = 0 : i64, scratch_operands = 6 : i64, tpu.core_type = #tpu.core_type<tc>, window_params = [{transform_indices = @transform_0, window_bounds = array<i64: 576, 25>}, {pipeline_mode = #tpu.pipeline_mode<synchronous>, transform_indices = @transform_1, window_bounds = array<i64: 25, 128>}, {pipeline_mode = #tpu.pipeline_mode<synchronous>, transform_indices = @transform_2, window_bounds = array<i64: 1, 128>}, {pipeline_mode = #tpu.pipeline_mode<synchronous>, transform_indices = @transform_3, window_bounds = array<i64: 3200, 128>}, {pipeline_mode = #tpu.pipeline_mode<synchronous>, transform_indices = @transform_4, window_bounds = array<i64: 1, 128>}, {pipeline_mode = #tpu.pipeline_mode<synchronous>, transform_indices = @transform_5, window_bounds = array<i64: 2048, 50>}, {pipeline_mode = #tpu.pipeline_mode<synchronous>, transform_indices = @transform_6, window_bounds = array<i64: 1, 50>}, {pipeline_mode = #tpu.pipeline_mode<synchronous>, transform_indices = @transform_7, window_bounds = array<i64: 50, 10>}, {pipeline_mode = #tpu.pipeline_mode<synchronous>, transform_indices = @transform_8, window_bounds = array<i64: 1, 10>}, {transform_indices = @transform_9, window_bounds = array<i64: 1, 1, 10>}]} {
    %c0 = arith.constant 0 : index
    %c0_0 = arith.constant 0 : index
    %0 = vector.load %arg1[%c0, %c0_0] : memref<576x25xbf16, #tpu.memory_space<vmem>>, vector<192x25xbf16>
    %c0_1 = arith.constant 0 : index
    %c0_2 = arith.constant 0 : index
    %1 = vector.load %arg2[%c0_1, %c0_2] : memref<25x128xbf16, #tpu.memory_space<vmem>>, vector<25x128xbf16>
    %cst = arith.constant dense<0.000000e+00> : vector<192x128xf32>
    %2 = tpu.matmul %0, %1, %cst {dimension_numbers = #tpu.dot_dimension_numbers<[1], [0], [0], [1], [0, 0, 1, 1], [], []>} : vector<192x25xbf16>, vector<25x128xbf16>, vector<192x128xf32> -> vector<192x128xf32>
    %c0_3 = arith.constant 0 : index
    %c0_4 = arith.constant 0 : index
    %3 = vector.load %arg3[%c0_3, %c0_4] : memref<1x128xf32, #tpu.memory_space<vmem>>, vector<1x128xf32>
    %4 = vector.broadcast %3 : vector<1x128xf32> to vector<192x128xf32>
    %5 = arith.addf %2, %4 : vector<192x128xf32>
    %6 = vector.shape_cast %5 : vector<192x128xf32> to vector<8x24x128xf32>
    %c0_5 = arith.constant 0 : index
    %c0_6 = arith.constant 0 : index
    %c0_7 = arith.constant 0 : index
    %7 = vector.load %arg11[%c0_5, %c0_6, %c0_7] : memref<24x24x128xf32, #tpu.memory_space<vmem>>, vector<8x24x128xf32>
    tpu.vector_store %arg11[%c0_5, %c0_6, %c0_7], %6 {strides = array<i32>} : memref<24x24x128xf32, #tpu.memory_space<vmem>>, vector<8x24x128xf32>,
    %c192 = arith.constant 192 : index
    %c0_8 = arith.constant 0 : index
    %8 = vector.load %arg1[%c192, %c0_8] : memref<576x25xbf16, #tpu.memory_space<vmem>>, vector<192x25xbf16>
    %c0_9 = arith.constant 0 : index
    %c0_10 = arith.constant 0 : index
    %9 = vector.load %arg2[%c0_9, %c0_10] : memref<25x128xbf16, #tpu.memory_space<vmem>>, vector<25x128xbf16>
    %cst_11 = arith.constant dense<0.000000e+00> : vector<192x128xf32>
    %10 = tpu.matmul %8, %9, %cst_11 {dimension_numbers = #tpu.dot_dimension_numbers<[1], [0], [0], [1], [0, 0, 1, 1], [], []>} : vector<192x25xbf16>, vector<25x128xbf16>, vector<192x128xf32> -> vector<192x128xf32>
    %c0_12 = arith.constant 0 : index
    %c0_13 = arith.constant 0 : index
    %11 = vector.load %arg3[%c0_12, %c0_13] : memref<1x128xf32, #tpu.memory_space<vmem>>, vector<1x128xf32>
    %12 = vector.broadcast %11 : vector<1x128xf32> to vector<192x128xf32>
    %13 = arith.addf %10, %12 : vector<192x128xf32>
    %14 = vector.shape_cast %13 : vector<192x128xf32> to vector<8x24x128xf32>
    %c8 = arith.constant 8 : index
    %c0_14 = arith.constant 0 : index
    %c0_15 = arith.constant 0 : index
    %15 = vector.load %arg11[%c8, %c0_14, %c0_15] : memref<24x24x128xf32, #tpu.memory_space<vmem>>, vector<8x24x128xf32>
    tpu.vector_store %arg11[%c8, %c0_14, %c0_15], %14 {strides = array<i32>} : memref<24x24x128xf32, #tpu.memory_space<vmem>>, vector<8x24x128xf32>,
    %c384 = arith.constant 384 : index
    %c0_16 = arith.constant 0 : index
    %16 = vector.load %arg1[%c384, %c0_16] : memref<576x25xbf16, #tpu.memory_space<vmem>>, vector<192x25xbf16>
    %c0_17 = arith.constant 0 : index
    %c0_18 = arith.constant 0 : index
    %17 = vector.load %arg2[%c0_17, %c0_18] : memref<25x128xbf16, #tpu.memory_space<vmem>>, vector<25x128xbf16>
    %cst_19 = arith.constant dense<0.000000e+00> : vector<192x128xf32>
    %18 = tpu.matmul %16, %17, %cst_19 {dimension_numbers = #tpu.dot_dimension_numbers<[1], [0], [0], [1], [0, 0, 1, 1], [], []>} : vector<192x25xbf16>, vector<25x128xbf16>, vector<192x128xf32> -> vector<192x128xf32>
    %c0_20 = arith.constant 0 : index
    %c0_21 = arith.constant 0 : index
    %19 = vector.load %arg3[%c0_20, %c0_21] : memref<1x128xf32, #tpu.memory_space<vmem>>, vector<1x128xf32>
    %20 = vector.broadcast %19 : vector<1x128xf32> to vector<192x128xf32>
    %21 = arith.addf %18, %20 : vector<192x128xf32>
    %22 = vector.shape_cast %21 : vector<192x128xf32> to vector<8x24x128xf32>
    %c16 = arith.constant 16 : index
    %c0_22 = arith.constant 0 : index
    %c0_23 = arith.constant 0 : index
    %23 = vector.load %arg11[%c16, %c0_22, %c0_23] : memref<24x24x128xf32, #tpu.memory_space<vmem>>, vector<8x24x128xf32>
    tpu.vector_store %arg11[%c16, %c0_22, %c0_23], %22 {strides = array<i32>} : memref<24x24x128xf32, #tpu.memory_space<vmem>>, vector<8x24x128xf32>,
    %c0_24 = arith.constant 0 : index
    %c0_25 = arith.constant 0 : index
    %c0_26 = arith.constant 0 : index
    %24 = tpu.strided_load %arg11[%c0_24, %c0_25, %c0_26] {strides = array<i32: 2, 2, 1>} : memref<24x24x128xf32, #tpu.memory_space<vmem>>, vector<12x12x128xf32>
    %c0_27 = arith.constant 0 : index
    %c1 = arith.constant 1 : index
    %c0_28 = arith.constant 0 : index
    %25 = tpu.strided_load %arg11[%c0_27, %c1, %c0_28] {strides = array<i32: 2, 2, 1>} : memref<24x24x128xf32, #tpu.memory_space<vmem>>, vector<12x12x128xf32>
    %c1_29 = arith.constant 1 : index
    %c0_30 = arith.constant 0 : index
    %c0_31 = arith.constant 0 : index
    %26 = tpu.strided_load %arg11[%c1_29, %c0_30, %c0_31] {strides = array<i32: 2, 2, 1>} : memref<24x24x128xf32, #tpu.memory_space<vmem>>, vector<12x12x128xf32>
    %c1_32 = arith.constant 1 : index
    %c1_33 = arith.constant 1 : index
    %c0_34 = arith.constant 0 : index
    %27 = tpu.strided_load %arg11[%c1_32, %c1_33, %c0_34] {strides = array<i32: 2, 2, 1>} : memref<24x24x128xf32, #tpu.memory_space<vmem>>, vector<12x12x128xf32>
    %28 = arith.maximumf %24, %25 : vector<12x12x128xf32>
    %29 = arith.maximumf %26, %27 : vector<12x12x128xf32>
    %30 = arith.maximumf %28, %29 : vector<12x12x128xf32>
    %cst_35 = arith.constant 0.000000e+00 : f32
    %31 = vector.broadcast %cst_35 : f32 to vector<12x12x128xf32>
    %32 = arith.maximumf %30, %31 : vector<12x12x128xf32>
    %c0_36 = arith.constant 0 : index
    %c0_37 = arith.constant 0 : index
    %c0_38 = arith.constant 0 : index
    %33 = vector.load %arg12[%c0_36, %c0_37, %c0_38] : memref<12x12x128xf32, #tpu.memory_space<vmem>>, vector<12x12x128xf32>
    tpu.vector_store %arg12[%c0_36, %c0_37, %c0_38], %32 {strides = array<i32>} : memref<12x12x128xf32, #tpu.memory_space<vmem>>, vector<12x12x128xf32>,
    %c0_39 = arith.constant 0 : index
    %c0_40 = arith.constant 0 : index
    %c0_41 = arith.constant 0 : index
    %34 = vector.load %arg12[%c0_39, %c0_40, %c0_41] : memref<12x12x128xf32, #tpu.memory_space<vmem>>, vector<8x8x128xf32>
    %35 = vector.shape_cast %34 : vector<8x8x128xf32> to vector<64x128xf32>
    %36 = arith.truncf %35 : vector<64x128xf32> to vector<64x128xbf16>
    %c0_42 = arith.constant 0 : index
    %c0_43 = arith.constant 0 : index
    %37 = vector.load %arg13[%c0_42, %c0_43] : memref<64x3200xbf16, #tpu.memory_space<vmem>>, vector<64x128xbf16>
    tpu.vector_store %arg13[%c0_42, %c0_43], %36 {strides = array<i32>} : memref<64x3200xbf16, #tpu.memory_space<vmem>>, vector<64x128xbf16>,
    %c0_44 = arith.constant 0 : index
    %c1_45 = arith.constant 1 : index
    %c0_46 = arith.constant 0 : index
    %38 = vector.load %arg12[%c0_44, %c1_45, %c0_46] : memref<12x12x128xf32, #tpu.memory_space<vmem>>, vector<8x8x128xf32>
    %39 = vector.shape_cast %38 : vector<8x8x128xf32> to vector<64x128xf32>
    %40 = arith.truncf %39 : vector<64x128xf32> to vector<64x128xbf16>
    %c0_47 = arith.constant 0 : index
    %c128 = arith.constant 128 : index
    %41 = vector.load %arg13[%c0_47, %c128] : memref<64x3200xbf16, #tpu.memory_space<vmem>>, vector<64x128xbf16>
    tpu.vector_store %arg13[%c0_47, %c128], %40 {strides = array<i32>} : memref<64x3200xbf16, #tpu.memory_space<vmem>>, vector<64x128xbf16>,
    %c0_48 = arith.constant 0 : index
    %c2 = arith.constant 2 : index
    %c0_49 = arith.constant 0 : index
    %42 = vector.load %arg12[%c0_48, %c2, %c0_49] : memref<12x12x128xf32, #tpu.memory_space<vmem>>, vector<8x8x128xf32>
    %43 = vector.shape_cast %42 : vector<8x8x128xf32> to vector<64x128xf32>
    %44 = arith.truncf %43 : vector<64x128xf32> to vector<64x128xbf16>
    %c0_50 = arith.constant 0 : index
    %c256 = arith.constant 256 : index
    %45 = vector.load %arg13[%c0_50, %c256] : memref<64x3200xbf16, #tpu.memory_space<vmem>>, vector<64x128xbf16>
    tpu.vector_store %arg13[%c0_50, %c256], %44 {strides = array<i32>} : memref<64x3200xbf16, #tpu.memory_space<vmem>>, vector<64x128xbf16>,
    %c0_51 = arith.constant 0 : index
    %c3 = arith.constant 3 : index
    %c0_52 = arith.constant 0 : index
    %46 = vector.load %arg12[%c0_51, %c3, %c0_52] : memref<12x12x128xf32, #tpu.memory_space<vmem>>, vector<8x8x128xf32>
    %47 = vector.shape_cast %46 : vector<8x8x128xf32> to vector<64x128xf32>
    %48 = arith.truncf %47 : vector<64x128xf32> to vector<64x128xbf16>
    %c0_53 = arith.constant 0 : index
    %c384_54 = arith.constant 384 : index
    %49 = vector.load %arg13[%c0_53, %c384_54] : memref<64x3200xbf16, #tpu.memory_space<vmem>>, vector<64x128xbf16>
    tpu.vector_store %arg13[%c0_53, %c384_54], %48 {strides = array<i32>} : memref<64x3200xbf16, #tpu.memory_space<vmem>>, vector<64x128xbf16>,
    %c0_55 = arith.constant 0 : index
    %c4 = arith.constant 4 : index
    %c0_56 = arith.constant 0 : index
    %50 = vector.load %arg12[%c0_55, %c4, %c0_56] : memref<12x12x128xf32, #tpu.memory_space<vmem>>, vector<8x8x128xf32>
    %51 = vector.shape_cast %50 : vector<8x8x128xf32> to vector<64x128xf32>
    %52 = arith.truncf %51 : vector<64x128xf32> to vector<64x128xbf16>
    %c0_57 = arith.constant 0 : index
    %c512 = arith.constant 512 : index
    %53 = vector.load %arg13[%c0_57, %c512] : memref<64x3200xbf16, #tpu.memory_space<vmem>>, vector<64x128xbf16>
    tpu.vector_store %arg13[%c0_57, %c512], %52 {strides = array<i32>} : memref<64x3200xbf16, #tpu.memory_space<vmem>>, vector<64x128xbf16>,
    %c1_58 = arith.constant 1 : index
    %c0_59 = arith.constant 0 : index
    %c0_60 = arith.constant 0 : index
    %54 = vector.load %arg12[%c1_58, %c0_59, %c0_60] : memref<12x12x128xf32, #tpu.memory_space<vmem>>, vector<8x8x128xf32>
    %55 = vector.shape_cast %54 : vector<8x8x128xf32> to vector<64x128xf32>
    %56 = arith.truncf %55 : vector<64x128xf32> to vector<64x128xbf16>
    %c0_61 = arith.constant 0 : index
    %c640 = arith.constant 640 : index
    %57 = vector.load %arg13[%c0_61, %c640] : memref<64x3200xbf16, #tpu.memory_space<vmem>>, vector<64x128xbf16>
    tpu.vector_store %arg13[%c0_61, %c640], %56 {strides = array<i32>} : memref<64x3200xbf16, #tpu.memory_space<vmem>>, vector<64x128xbf16>,
    %c1_62 = arith.constant 1 : index
    %c1_63 = arith.constant 1 : index
    %c0_64 = arith.constant 0 : index
    %58 = vector.load %arg12[%c1_62, %c1_63, %c0_64] : memref<12x12x128xf32, #tpu.memory_space<vmem>>, vector<8x8x128xf32>
    %59 = vector.shape_cast %58 : vector<8x8x128xf32> to vector<64x128xf32>
    %60 = arith.truncf %59 : vector<64x128xf32> to vector<64x128xbf16>
    %c0_65 = arith.constant 0 : index
    %c768 = arith.constant 768 : index
    %61 = vector.load %arg13[%c0_65, %c768] : memref<64x3200xbf16, #tpu.memory_space<vmem>>, vector<64x128xbf16>
    tpu.vector_store %arg13[%c0_65, %c768], %60 {strides = array<i32>} : memref<64x3200xbf16, #tpu.memory_space<vmem>>, vector<64x128xbf16>,
    %c1_66 = arith.constant 1 : index
    %c2_67 = arith.constant 2 : index
    %c0_68 = arith.constant 0 : index
    %62 = vector.load %arg12[%c1_66, %c2_67, %c0_68] : memref<12x12x128xf32, #tpu.memory_space<vmem>>, vector<8x8x128xf32>
    %63 = vector.shape_cast %62 : vector<8x8x128xf32> to vector<64x128xf32>
    %64 = arith.truncf %63 : vector<64x128xf32> to vector<64x128xbf16>
    %c0_69 = arith.constant 0 : index
    %c896 = arith.constant 896 : index
    %65 = vector.load %arg13[%c0_69, %c896] : memref<64x3200xbf16, #tpu.memory_space<vmem>>, vector<64x128xbf16>
    tpu.vector_store %arg13[%c0_69, %c896], %64 {strides = array<i32>} : memref<64x3200xbf16, #tpu.memory_space<vmem>>, vector<64x128xbf16>,
    %c1_70 = arith.constant 1 : index
    %c3_71 = arith.constant 3 : index
    %c0_72 = arith.constant 0 : index
    %66 = vector.load %arg12[%c1_70, %c3_71, %c0_72] : memref<12x12x128xf32, #tpu.memory_space<vmem>>, vector<8x8x128xf32>
    %67 = vector.shape_cast %66 : vector<8x8x128xf32> to vector<64x128xf32>
    %68 = arith.truncf %67 : vector<64x128xf32> to vector<64x128xbf16>
    %c0_73 = arith.constant 0 : index
    %c1024 = arith.constant 1024 : index
    %69 = vector.load %arg13[%c0_73, %c1024] : memref<64x3200xbf16, #tpu.memory_space<vmem>>, vector<64x128xbf16>
    tpu.vector_store %arg13[%c0_73, %c1024], %68 {strides = array<i32>} : memref<64x3200xbf16, #tpu.memory_space<vmem>>, vector<64x128xbf16>,
    %c1_74 = arith.constant 1 : index
    %c4_75 = arith.constant 4 : index
    %c0_76 = arith.constant 0 : index
    %70 = vector.load %arg12[%c1_74, %c4_75, %c0_76] : memref<12x12x128xf32, #tpu.memory_space<vmem>>, vector<8x8x128xf32>
    %71 = vector.shape_cast %70 : vector<8x8x128xf32> to vector<64x128xf32>
    %72 = arith.truncf %71 : vector<64x128xf32> to vector<64x128xbf16>
    %c0_77 = arith.constant 0 : index
    %c1152 = arith.constant 1152 : index
    %73 = vector.load %arg13[%c0_77, %c1152] : memref<64x3200xbf16, #tpu.memory_space<vmem>>, vector<64x128xbf16>
    tpu.vector_store %arg13[%c0_77, %c1152], %72 {strides = array<i32>} : memref<64x3200xbf16, #tpu.memory_space<vmem>>, vector<64x128xbf16>,
    %c2_78 = arith.constant 2 : index
    %c0_79 = arith.constant 0 : index
    %c0_80 = arith.constant 0 : index
    %74 = vector.load %arg12[%c2_78, %c0_79, %c0_80] : memref<12x12x128xf32, #tpu.memory_space<vmem>>, vector<8x8x128xf32>
    %75 = vector.shape_cast %74 : vector<8x8x128xf32> to vector<64x128xf32>
    %76 = arith.truncf %75 : vector<64x128xf32> to vector<64x128xbf16>
    %c0_81 = arith.constant 0 : index
    %c1280 = arith.constant 1280 : index
    %77 = vector.load %arg13[%c0_81, %c1280] : memref<64x3200xbf16, #tpu.memory_space<vmem>>, vector<64x128xbf16>
    tpu.vector_store %arg13[%c0_81, %c1280], %76 {strides = array<i32>} : memref<64x3200xbf16, #tpu.memory_space<vmem>>, vector<64x128xbf16>,
    %c2_82 = arith.constant 2 : index
    %c1_83 = arith.constant 1 : index
    %c0_84 = arith.constant 0 : index
    %78 = vector.load %arg12[%c2_82, %c1_83, %c0_84] : memref<12x12x128xf32, #tpu.memory_space<vmem>>, vector<8x8x128xf32>
    %79 = vector.shape_cast %78 : vector<8x8x128xf32> to vector<64x128xf32>
    %80 = arith.truncf %79 : vector<64x128xf32> to vector<64x128xbf16>
    %c0_85 = arith.constant 0 : index
    %c1408 = arith.constant 1408 : index
    %81 = vector.load %arg13[%c0_85, %c1408] : memref<64x3200xbf16, #tpu.memory_space<vmem>>, vector<64x128xbf16>
    tpu.vector_store %arg13[%c0_85, %c1408], %80 {strides = array<i32>} : memref<64x3200xbf16, #tpu.memory_space<vmem>>, vector<64x128xbf16>,
    %c2_86 = arith.constant 2 : index
    %c2_87 = arith.constant 2 : index
    %c0_88 = arith.constant 0 : index
    %82 = vector.load %arg12[%c2_86, %c2_87, %c0_88] : memref<12x12x128xf32, #tpu.memory_space<vmem>>, vector<8x8x128xf32>
    %83 = vector.shape_cast %82 : vector<8x8x128xf32> to vector<64x128xf32>
    %84 = arith.truncf %83 : vector<64x128xf32> to vector<64x128xbf16>
    %c0_89 = arith.constant 0 : index
    %c1536 = arith.constant 1536 : index
    %85 = vector.load %arg13[%c0_89, %c1536] : memref<64x3200xbf16, #tpu.memory_space<vmem>>, vector<64x128xbf16>
    tpu.vector_store %arg13[%c0_89, %c1536], %84 {strides = array<i32>} : memref<64x3200xbf16, #tpu.memory_space<vmem>>, vector<64x128xbf16>,
    %c2_90 = arith.constant 2 : index
    %c3_91 = arith.constant 3 : index
    %c0_92 = arith.constant 0 : index
    %86 = vector.load %arg12[%c2_90, %c3_91, %c0_92] : memref<12x12x128xf32, #tpu.memory_space<vmem>>, vector<8x8x128xf32>
    %87 = vector.shape_cast %86 : vector<8x8x128xf32> to vector<64x128xf32>
    %88 = arith.truncf %87 : vector<64x128xf32> to vector<64x128xbf16>
    %c0_93 = arith.constant 0 : index
    %c1664 = arith.constant 1664 : index
    %89 = vector.load %arg13[%c0_93, %c1664] : memref<64x3200xbf16, #tpu.memory_space<vmem>>, vector<64x128xbf16>
    tpu.vector_store %arg13[%c0_93, %c1664], %88 {strides = array<i32>} : memref<64x3200xbf16, #tpu.memory_space<vmem>>, vector<64x128xbf16>,
    %c2_94 = arith.constant 2 : index
    %c4_95 = arith.constant 4 : index
    %c0_96 = arith.constant 0 : index
    %90 = vector.load %arg12[%c2_94, %c4_95, %c0_96] : memref<12x12x128xf32, #tpu.memory_space<vmem>>, vector<8x8x128xf32>
    %91 = vector.shape_cast %90 : vector<8x8x128xf32> to vector<64x128xf32>
    %92 = arith.truncf %91 : vector<64x128xf32> to vector<64x128xbf16>
    %c0_97 = arith.constant 0 : index
    %c1792 = arith.constant 1792 : index
    %93 = vector.load %arg13[%c0_97, %c1792] : memref<64x3200xbf16, #tpu.memory_space<vmem>>, vector<64x128xbf16>
    tpu.vector_store %arg13[%c0_97, %c1792], %92 {strides = array<i32>} : memref<64x3200xbf16, #tpu.memory_space<vmem>>, vector<64x128xbf16>,
    %c3_98 = arith.constant 3 : index
    %c0_99 = arith.constant 0 : index
    %c0_100 = arith.constant 0 : index
    %94 = vector.load %arg12[%c3_98, %c0_99, %c0_100] : memref<12x12x128xf32, #tpu.memory_space<vmem>>, vector<8x8x128xf32>
    %95 = vector.shape_cast %94 : vector<8x8x128xf32> to vector<64x128xf32>
    %96 = arith.truncf %95 : vector<64x128xf32> to vector<64x128xbf16>
    %c0_101 = arith.constant 0 : index
    %c1920 = arith.constant 1920 : index
    %97 = vector.load %arg13[%c0_101, %c1920] : memref<64x3200xbf16, #tpu.memory_space<vmem>>, vector<64x128xbf16>
    tpu.vector_store %arg13[%c0_101, %c1920], %96 {strides = array<i32>} : memref<64x3200xbf16, #tpu.memory_space<vmem>>, vector<64x128xbf16>,
    %c3_102 = arith.constant 3 : index
    %c1_103 = arith.constant 1 : index
    %c0_104 = arith.constant 0 : index
    %98 = vector.load %arg12[%c3_102, %c1_103, %c0_104] : memref<12x12x128xf32, #tpu.memory_space<vmem>>, vector<8x8x128xf32>
    %99 = vector.shape_cast %98 : vector<8x8x128xf32> to vector<64x128xf32>
    %100 = arith.truncf %99 : vector<64x128xf32> to vector<64x128xbf16>
    %c0_105 = arith.constant 0 : index
    %c2048 = arith.constant 2048 : index
    %101 = vector.load %arg13[%c0_105, %c2048] : memref<64x3200xbf16, #tpu.memory_space<vmem>>, vector<64x128xbf16>
    tpu.vector_store %arg13[%c0_105, %c2048], %100 {strides = array<i32>} : memref<64x3200xbf16, #tpu.memory_space<vmem>>, vector<64x128xbf16>,
    %c3_106 = arith.constant 3 : index
    %c2_107 = arith.constant 2 : index
    %c0_108 = arith.constant 0 : index
    %102 = vector.load %arg12[%c3_106, %c2_107, %c0_108] : memref<12x12x128xf32, #tpu.memory_space<vmem>>, vector<8x8x128xf32>
    %103 = vector.shape_cast %102 : vector<8x8x128xf32> to vector<64x128xf32>
    %104 = arith.truncf %103 : vector<64x128xf32> to vector<64x128xbf16>
    %c0_109 = arith.constant 0 : index
    %c2176 = arith.constant 2176 : index
    %105 = vector.load %arg13[%c0_109, %c2176] : memref<64x3200xbf16, #tpu.memory_space<vmem>>, vector<64x128xbf16>
    tpu.vector_store %arg13[%c0_109, %c2176], %104 {strides = array<i32>} : memref<64x3200xbf16, #tpu.memory_space<vmem>>, vector<64x128xbf16>,
    %c3_110 = arith.constant 3 : index
    %c3_111 = arith.constant 3 : index
    %c0_112 = arith.constant 0 : index
    %106 = vector.load %arg12[%c3_110, %c3_111, %c0_112] : memref<12x12x128xf32, #tpu.memory_space<vmem>>, vector<8x8x128xf32>
    %107 = vector.shape_cast %106 : vector<8x8x128xf32> to vector<64x128xf32>
    %108 = arith.truncf %107 : vector<64x128xf32> to vector<64x128xbf16>
    %c0_113 = arith.constant 0 : index
    %c2304 = arith.constant 2304 : index
    %109 = vector.load %arg13[%c0_113, %c2304] : memref<64x3200xbf16, #tpu.memory_space<vmem>>, vector<64x128xbf16>
    tpu.vector_store %arg13[%c0_113, %c2304], %108 {strides = array<i32>} : memref<64x3200xbf16, #tpu.memory_space<vmem>>, vector<64x128xbf16>,
    %c3_114 = arith.constant 3 : index
    %c4_115 = arith.constant 4 : index
    %c0_116 = arith.constant 0 : index
    %110 = vector.load %arg12[%c3_114, %c4_115, %c0_116] : memref<12x12x128xf32, #tpu.memory_space<vmem>>, vector<8x8x128xf32>
    %111 = vector.shape_cast %110 : vector<8x8x128xf32> to vector<64x128xf32>
    %112 = arith.truncf %111 : vector<64x128xf32> to vector<64x128xbf16>
    %c0_117 = arith.constant 0 : index
    %c2432 = arith.constant 2432 : index
    %113 = vector.load %arg13[%c0_117, %c2432] : memref<64x3200xbf16, #tpu.memory_space<vmem>>, vector<64x128xbf16>
    tpu.vector_store %arg13[%c0_117, %c2432], %112 {strides = array<i32>} : memref<64x3200xbf16, #tpu.memory_space<vmem>>, vector<64x128xbf16>,
    %c4_118 = arith.constant 4 : index
    %c0_119 = arith.constant 0 : index
    %c0_120 = arith.constant 0 : index
    %114 = vector.load %arg12[%c4_118, %c0_119, %c0_120] : memref<12x12x128xf32, #tpu.memory_space<vmem>>, vector<8x8x128xf32>
    %115 = vector.shape_cast %114 : vector<8x8x128xf32> to vector<64x128xf32>
    %116 = arith.truncf %115 : vector<64x128xf32> to vector<64x128xbf16>
    %c0_121 = arith.constant 0 : index
    %c2560 = arith.constant 2560 : index
    %117 = vector.load %arg13[%c0_121, %c2560] : memref<64x3200xbf16, #tpu.memory_space<vmem>>, vector<64x128xbf16>
    tpu.vector_store %arg13[%c0_121, %c2560], %116 {strides = array<i32>} : memref<64x3200xbf16, #tpu.memory_space<vmem>>, vector<64x128xbf16>,
    %c4_122 = arith.constant 4 : index
    %c1_123 = arith.constant 1 : index
    %c0_124 = arith.constant 0 : index
    %118 = vector.load %arg12[%c4_122, %c1_123, %c0_124] : memref<12x12x128xf32, #tpu.memory_space<vmem>>, vector<8x8x128xf32>
    %119 = vector.shape_cast %118 : vector<8x8x128xf32> to vector<64x128xf32>
    %120 = arith.truncf %119 : vector<64x128xf32> to vector<64x128xbf16>
    %c0_125 = arith.constant 0 : index
    %c2688 = arith.constant 2688 : index
    %121 = vector.load %arg13[%c0_125, %c2688] : memref<64x3200xbf16, #tpu.memory_space<vmem>>, vector<64x128xbf16>
    tpu.vector_store %arg13[%c0_125, %c2688], %120 {strides = array<i32>} : memref<64x3200xbf16, #tpu.memory_space<vmem>>, vector<64x128xbf16>,
    %c4_126 = arith.constant 4 : index
    %c2_127 = arith.constant 2 : index
    %c0_128 = arith.constant 0 : index
    %122 = vector.load %arg12[%c4_126, %c2_127, %c0_128] : memref<12x12x128xf32, #tpu.memory_space<vmem>>, vector<8x8x128xf32>
    %123 = vector.shape_cast %122 : vector<8x8x128xf32> to vector<64x128xf32>
    %124 = arith.truncf %123 : vector<64x128xf32> to vector<64x128xbf16>
    %c0_129 = arith.constant 0 : index
    %c2816 = arith.constant 2816 : index
    %125 = vector.load %arg13[%c0_129, %c2816] : memref<64x3200xbf16, #tpu.memory_space<vmem>>, vector<64x128xbf16>
    tpu.vector_store %arg13[%c0_129, %c2816], %124 {strides = array<i32>} : memref<64x3200xbf16, #tpu.memory_space<vmem>>, vector<64x128xbf16>,
    %c4_130 = arith.constant 4 : index
    %c3_131 = arith.constant 3 : index
    %c0_132 = arith.constant 0 : index
    %126 = vector.load %arg12[%c4_130, %c3_131, %c0_132] : memref<12x12x128xf32, #tpu.memory_space<vmem>>, vector<8x8x128xf32>
    %127 = vector.shape_cast %126 : vector<8x8x128xf32> to vector<64x128xf32>
    %128 = arith.truncf %127 : vector<64x128xf32> to vector<64x128xbf16>
    %c0_133 = arith.constant 0 : index
    %c2944 = arith.constant 2944 : index
    %129 = vector.load %arg13[%c0_133, %c2944] : memref<64x3200xbf16, #tpu.memory_space<vmem>>, vector<64x128xbf16>
    tpu.vector_store %arg13[%c0_133, %c2944], %128 {strides = array<i32>} : memref<64x3200xbf16, #tpu.memory_space<vmem>>, vector<64x128xbf16>,
    %c4_134 = arith.constant 4 : index
    %c4_135 = arith.constant 4 : index
    %c0_136 = arith.constant 0 : index
    %130 = vector.load %arg12[%c4_134, %c4_135, %c0_136] : memref<12x12x128xf32, #tpu.memory_space<vmem>>, vector<8x8x128xf32>
    %131 = vector.shape_cast %130 : vector<8x8x128xf32> to vector<64x128xf32>
    %132 = arith.truncf %131 : vector<64x128xf32> to vector<64x128xbf16>
    %c0_137 = arith.constant 0 : index
    %c3072 = arith.constant 3072 : index
    %133 = vector.load %arg13[%c0_137, %c3072] : memref<64x3200xbf16, #tpu.memory_space<vmem>>, vector<64x128xbf16>
    tpu.vector_store %arg13[%c0_137, %c3072], %132 {strides = array<i32>} : memref<64x3200xbf16, #tpu.memory_space<vmem>>, vector<64x128xbf16>,
    %c0_138 = arith.constant 0 : index
    %c0_139 = arith.constant 0 : index
    %134 = vector.load %arg13[%c0_138, %c0_139] : memref<64x3200xbf16, #tpu.memory_space<vmem>>, vector<64x3200xbf16>
    %c0_140 = arith.constant 0 : index
    %c0_141 = arith.constant 0 : index
    %135 = vector.load %arg4[%c0_140, %c0_141] : memref<3200x128xbf16, #tpu.memory_space<vmem>>, vector<3200x128xbf16>
    %cst_142 = arith.constant dense<0.000000e+00> : vector<64x128xf32>
    %136 = tpu.matmul %134, %135, %cst_142 {dimension_numbers = #tpu.dot_dimension_numbers<[1], [0], [0], [1], [0, 0, 1, 1], [], []>} : vector<64x3200xbf16>, vector<3200x128xbf16>, vector<64x128xf32> -> vector<64x128xf32>
    %c0_143 = arith.constant 0 : index
    %c0_144 = arith.constant 0 : index
    %137 = vector.load %arg5[%c0_143, %c0_144] : memref<1x128xf32, #tpu.memory_space<vmem>>, vector<1x128xf32>
    %138 = vector.broadcast %137 : vector<1x128xf32> to vector<64x128xf32>
    %139 = arith.addf %136, %138 : vector<64x128xf32>
    %140 = vector.shape_cast %139 : vector<64x128xf32> to vector<8x8x128xf32>
    %c0_145 = arith.constant 0 : index
    %c0_146 = arith.constant 0 : index
    %c0_147 = arith.constant 0 : index
    %141 = vector.load %arg14[%c0_145, %c0_146, %c0_147] : memref<8x8x128xf32, #tpu.memory_space<vmem>>, vector<8x8x128xf32>
    tpu.vector_store %arg14[%c0_145, %c0_146, %c0_147], %140 {strides = array<i32>} : memref<8x8x128xf32, #tpu.memory_space<vmem>>, vector<8x8x128xf32>,
    %c0_148 = arith.constant 0 : index
    %c0_149 = arith.constant 0 : index
    %c0_150 = arith.constant 0 : index
    %142 = tpu.strided_load %arg14[%c0_148, %c0_149, %c0_150] {strides = array<i32: 2, 2, 1>} : memref<8x8x128xf32, #tpu.memory_space<vmem>>, vector<4x4x128xf32>
    %c0_151 = arith.constant 0 : index
    %c1_152 = arith.constant 1 : index
    %c0_153 = arith.constant 0 : index
    %143 = tpu.strided_load %arg14[%c0_151, %c1_152, %c0_153] {strides = array<i32: 2, 2, 1>} : memref<8x8x128xf32, #tpu.memory_space<vmem>>, vector<4x4x128xf32>
    %c1_154 = arith.constant 1 : index
    %c0_155 = arith.constant 0 : index
    %c0_156 = arith.constant 0 : index
    %144 = tpu.strided_load %arg14[%c1_154, %c0_155, %c0_156] {strides = array<i32: 2, 2, 1>} : memref<8x8x128xf32, #tpu.memory_space<vmem>>, vector<4x4x128xf32>
    %c1_157 = arith.constant 1 : index
    %c1_158 = arith.constant 1 : index
    %c0_159 = arith.constant 0 : index
    %145 = tpu.strided_load %arg14[%c1_157, %c1_158, %c0_159] {strides = array<i32: 2, 2, 1>} : memref<8x8x128xf32, #tpu.memory_space<vmem>>, vector<4x4x128xf32>
    %146 = arith.maximumf %142, %143 : vector<4x4x128xf32>
    %147 = arith.maximumf %144, %145 : vector<4x4x128xf32>
    %148 = arith.maximumf %146, %147 : vector<4x4x128xf32>
    %cst_160 = arith.constant 0.000000e+00 : f32
    %149 = vector.broadcast %cst_160 : f32 to vector<4x4x128xf32>
    %150 = arith.maximumf %148, %149 : vector<4x4x128xf32>
    %c0_161 = arith.constant 0 : index
    %c0_162 = arith.constant 0 : index
    %c0_163 = arith.constant 0 : index
    %151 = vector.load %arg15[%c0_161, %c0_162, %c0_163] : memref<4x4x128xf32, #tpu.memory_space<vmem>>, vector<4x4x128xf32>
    tpu.vector_store %arg15[%c0_161, %c0_162, %c0_163], %150 {strides = array<i32>} : memref<4x4x128xf32, #tpu.memory_space<vmem>>, vector<4x4x128xf32>,
    %c0_164 = arith.constant 0 : index
    %c0_165 = arith.constant 0 : index
    %c0_166 = arith.constant 0 : index
    %152 = vector.load %arg15[%c0_164, %c0_165, %c0_166] : memref<4x4x128xf32, #tpu.memory_space<vmem>>, vector<1x1x128xf32>
    %153 = vector.shape_cast %152 : vector<1x1x128xf32> to vector<1x128xf32>
    %c0_167 = arith.constant 0 : index
    %c0_168 = arith.constant 0 : index
    %154 = vector.load %arg16[%c0_167, %c0_168] : memref<1x2048xf32, #tpu.memory_space<vmem>>, vector<1x128xf32>
    tpu.vector_store %arg16[%c0_167, %c0_168], %153 {strides = array<i32>} : memref<1x2048xf32, #tpu.memory_space<vmem>>, vector<1x128xf32>,
    %c0_169 = arith.constant 0 : index
    %c1_170 = arith.constant 1 : index
    %c0_171 = arith.constant 0 : index
    %155 = vector.load %arg15[%c0_169, %c1_170, %c0_171] : memref<4x4x128xf32, #tpu.memory_space<vmem>>, vector<1x1x128xf32>
    %156 = vector.shape_cast %155 : vector<1x1x128xf32> to vector<1x128xf32>
    %c0_172 = arith.constant 0 : index
    %c128_173 = arith.constant 128 : index
    %157 = vector.load %arg16[%c0_172, %c128_173] : memref<1x2048xf32, #tpu.memory_space<vmem>>, vector<1x128xf32>
    tpu.vector_store %arg16[%c0_172, %c128_173], %156 {strides = array<i32>} : memref<1x2048xf32, #tpu.memory_space<vmem>>, vector<1x128xf32>,
    %c0_174 = arith.constant 0 : index
    %c2_175 = arith.constant 2 : index
    %c0_176 = arith.constant 0 : index
    %158 = vector.load %arg15[%c0_174, %c2_175, %c0_176] : memref<4x4x128xf32, #tpu.memory_space<vmem>>, vector<1x1x128xf32>
    %159 = vector.shape_cast %158 : vector<1x1x128xf32> to vector<1x128xf32>
    %c0_177 = arith.constant 0 : index
    %c256_178 = arith.constant 256 : index
    %160 = vector.load %arg16[%c0_177, %c256_178] : memref<1x2048xf32, #tpu.memory_space<vmem>>, vector<1x128xf32>
    tpu.vector_store %arg16[%c0_177, %c256_178], %159 {strides = array<i32>} : memref<1x2048xf32, #tpu.memory_space<vmem>>, vector<1x128xf32>,
    %c0_179 = arith.constant 0 : index
    %c3_180 = arith.constant 3 : index
    %c0_181 = arith.constant 0 : index
    %161 = vector.load %arg15[%c0_179, %c3_180, %c0_181] : memref<4x4x128xf32, #tpu.memory_space<vmem>>, vector<1x1x128xf32>
    %162 = vector.shape_cast %161 : vector<1x1x128xf32> to vector<1x128xf32>
    %c0_182 = arith.constant 0 : index
    %c384_183 = arith.constant 384 : index
    %163 = vector.load %arg16[%c0_182, %c384_183] : memref<1x2048xf32, #tpu.memory_space<vmem>>, vector<1x128xf32>
    tpu.vector_store %arg16[%c0_182, %c384_183], %162 {strides = array<i32>} : memref<1x2048xf32, #tpu.memory_space<vmem>>, vector<1x128xf32>,
    %c1_184 = arith.constant 1 : index
    %c0_185 = arith.constant 0 : index
    %c0_186 = arith.constant 0 : index
    %164 = vector.load %arg15[%c1_184, %c0_185, %c0_186] : memref<4x4x128xf32, #tpu.memory_space<vmem>>, vector<1x1x128xf32>
    %165 = vector.shape_cast %164 : vector<1x1x128xf32> to vector<1x128xf32>
    %c0_187 = arith.constant 0 : index
    %c512_188 = arith.constant 512 : index
    %166 = vector.load %arg16[%c0_187, %c512_188] : memref<1x2048xf32, #tpu.memory_space<vmem>>, vector<1x128xf32>
    tpu.vector_store %arg16[%c0_187, %c512_188], %165 {strides = array<i32>} : memref<1x2048xf32, #tpu.memory_space<vmem>>, vector<1x128xf32>,
    %c1_189 = arith.constant 1 : index
    %c1_190 = arith.constant 1 : index
    %c0_191 = arith.constant 0 : index
    %167 = vector.load %arg15[%c1_189, %c1_190, %c0_191] : memref<4x4x128xf32, #tpu.memory_space<vmem>>, vector<1x1x128xf32>
    %168 = vector.shape_cast %167 : vector<1x1x128xf32> to vector<1x128xf32>
    %c0_192 = arith.constant 0 : index
    %c640_193 = arith.constant 640 : index
    %169 = vector.load %arg16[%c0_192, %c640_193] : memref<1x2048xf32, #tpu.memory_space<vmem>>, vector<1x128xf32>
    tpu.vector_store %arg16[%c0_192, %c640_193], %168 {strides = array<i32>} : memref<1x2048xf32, #tpu.memory_space<vmem>>, vector<1x128xf32>,
    %c1_194 = arith.constant 1 : index
    %c2_195 = arith.constant 2 : index
    %c0_196 = arith.constant 0 : index
    %170 = vector.load %arg15[%c1_194, %c2_195, %c0_196] : memref<4x4x128xf32, #tpu.memory_space<vmem>>, vector<1x1x128xf32>
    %171 = vector.shape_cast %170 : vector<1x1x128xf32> to vector<1x128xf32>
    %c0_197 = arith.constant 0 : index
    %c768_198 = arith.constant 768 : index
    %172 = vector.load %arg16[%c0_197, %c768_198] : memref<1x2048xf32, #tpu.memory_space<vmem>>, vector<1x128xf32>
    tpu.vector_store %arg16[%c0_197, %c768_198], %171 {strides = array<i32>} : memref<1x2048xf32, #tpu.memory_space<vmem>>, vector<1x128xf32>,
    %c1_199 = arith.constant 1 : index
    %c3_200 = arith.constant 3 : index
    %c0_201 = arith.constant 0 : index
    %173 = vector.load %arg15[%c1_199, %c3_200, %c0_201] : memref<4x4x128xf32, #tpu.memory_space<vmem>>, vector<1x1x128xf32>
    %174 = vector.shape_cast %173 : vector<1x1x128xf32> to vector<1x128xf32>
    %c0_202 = arith.constant 0 : index
    %c896_203 = arith.constant 896 : index
    %175 = vector.load %arg16[%c0_202, %c896_203] : memref<1x2048xf32, #tpu.memory_space<vmem>>, vector<1x128xf32>
    tpu.vector_store %arg16[%c0_202, %c896_203], %174 {strides = array<i32>} : memref<1x2048xf32, #tpu.memory_space<vmem>>, vector<1x128xf32>,
    %c2_204 = arith.constant 2 : index
    %c0_205 = arith.constant 0 : index
    %c0_206 = arith.constant 0 : index
    %176 = vector.load %arg15[%c2_204, %c0_205, %c0_206] : memref<4x4x128xf32, #tpu.memory_space<vmem>>, vector<1x1x128xf32>
    %177 = vector.shape_cast %176 : vector<1x1x128xf32> to vector<1x128xf32>
    %c0_207 = arith.constant 0 : index
    %c1024_208 = arith.constant 1024 : index
    %178 = vector.load %arg16[%c0_207, %c1024_208] : memref<1x2048xf32, #tpu.memory_space<vmem>>, vector<1x128xf32>
    tpu.vector_store %arg16[%c0_207, %c1024_208], %177 {strides = array<i32>} : memref<1x2048xf32, #tpu.memory_space<vmem>>, vector<1x128xf32>,
    %c2_209 = arith.constant 2 : index
    %c1_210 = arith.constant 1 : index
    %c0_211 = arith.constant 0 : index
    %179 = vector.load %arg15[%c2_209, %c1_210, %c0_211] : memref<4x4x128xf32, #tpu.memory_space<vmem>>, vector<1x1x128xf32>
    %180 = vector.shape_cast %179 : vector<1x1x128xf32> to vector<1x128xf32>
    %c0_212 = arith.constant 0 : index
    %c1152_213 = arith.constant 1152 : index
    %181 = vector.load %arg16[%c0_212, %c1152_213] : memref<1x2048xf32, #tpu.memory_space<vmem>>, vector<1x128xf32>
    tpu.vector_store %arg16[%c0_212, %c1152_213], %180 {strides = array<i32>} : memref<1x2048xf32, #tpu.memory_space<vmem>>, vector<1x128xf32>,
    %c2_214 = arith.constant 2 : index
    %c2_215 = arith.constant 2 : index
    %c0_216 = arith.constant 0 : index
    %182 = vector.load %arg15[%c2_214, %c2_215, %c0_216] : memref<4x4x128xf32, #tpu.memory_space<vmem>>, vector<1x1x128xf32>
    %183 = vector.shape_cast %182 : vector<1x1x128xf32> to vector<1x128xf32>
    %c0_217 = arith.constant 0 : index
    %c1280_218 = arith.constant 1280 : index
    %184 = vector.load %arg16[%c0_217, %c1280_218] : memref<1x2048xf32, #tpu.memory_space<vmem>>, vector<1x128xf32>
    tpu.vector_store %arg16[%c0_217, %c1280_218], %183 {strides = array<i32>} : memref<1x2048xf32, #tpu.memory_space<vmem>>, vector<1x128xf32>,
    %c2_219 = arith.constant 2 : index
    %c3_220 = arith.constant 3 : index
    %c0_221 = arith.constant 0 : index
    %185 = vector.load %arg15[%c2_219, %c3_220, %c0_221] : memref<4x4x128xf32, #tpu.memory_space<vmem>>, vector<1x1x128xf32>
    %186 = vector.shape_cast %185 : vector<1x1x128xf32> to vector<1x128xf32>
    %c0_222 = arith.constant 0 : index
    %c1408_223 = arith.constant 1408 : index
    %187 = vector.load %arg16[%c0_222, %c1408_223] : memref<1x2048xf32, #tpu.memory_space<vmem>>, vector<1x128xf32>
    tpu.vector_store %arg16[%c0_222, %c1408_223], %186 {strides = array<i32>} : memref<1x2048xf32, #tpu.memory_space<vmem>>, vector<1x128xf32>,
    %c3_224 = arith.constant 3 : index
    %c0_225 = arith.constant 0 : index
    %c0_226 = arith.constant 0 : index
    %188 = vector.load %arg15[%c3_224, %c0_225, %c0_226] : memref<4x4x128xf32, #tpu.memory_space<vmem>>, vector<1x1x128xf32>
    %189 = vector.shape_cast %188 : vector<1x1x128xf32> to vector<1x128xf32>
    %c0_227 = arith.constant 0 : index
    %c1536_228 = arith.constant 1536 : index
    %190 = vector.load %arg16[%c0_227, %c1536_228] : memref<1x2048xf32, #tpu.memory_space<vmem>>, vector<1x128xf32>
    tpu.vector_store %arg16[%c0_227, %c1536_228], %189 {strides = array<i32>} : memref<1x2048xf32, #tpu.memory_space<vmem>>, vector<1x128xf32>,
    %c3_229 = arith.constant 3 : index
    %c1_230 = arith.constant 1 : index
    %c0_231 = arith.constant 0 : index
    %191 = vector.load %arg15[%c3_229, %c1_230, %c0_231] : memref<4x4x128xf32, #tpu.memory_space<vmem>>, vector<1x1x128xf32>
    %192 = vector.shape_cast %191 : vector<1x1x128xf32> to vector<1x128xf32>
    %c0_232 = arith.constant 0 : index
    %c1664_233 = arith.constant 1664 : index
    %193 = vector.load %arg16[%c0_232, %c1664_233] : memref<1x2048xf32, #tpu.memory_space<vmem>>, vector<1x128xf32>
    tpu.vector_store %arg16[%c0_232, %c1664_233], %192 {strides = array<i32>} : memref<1x2048xf32, #tpu.memory_space<vmem>>, vector<1x128xf32>,
    %c3_234 = arith.constant 3 : index
    %c2_235 = arith.constant 2 : index
    %c0_236 = arith.constant 0 : index
    %194 = vector.load %arg15[%c3_234, %c2_235, %c0_236] : memref<4x4x128xf32, #tpu.memory_space<vmem>>, vector<1x1x128xf32>
    %195 = vector.shape_cast %194 : vector<1x1x128xf32> to vector<1x128xf32>
    %c0_237 = arith.constant 0 : index
    %c1792_238 = arith.constant 1792 : index
    %196 = vector.load %arg16[%c0_237, %c1792_238] : memref<1x2048xf32, #tpu.memory_space<vmem>>, vector<1x128xf32>
    tpu.vector_store %arg16[%c0_237, %c1792_238], %195 {strides = array<i32>} : memref<1x2048xf32, #tpu.memory_space<vmem>>, vector<1x128xf32>,
    %c3_239 = arith.constant 3 : index
    %c3_240 = arith.constant 3 : index
    %c0_241 = arith.constant 0 : index
    %197 = vector.load %arg15[%c3_239, %c3_240, %c0_241] : memref<4x4x128xf32, #tpu.memory_space<vmem>>, vector<1x1x128xf32>
    %198 = vector.shape_cast %197 : vector<1x1x128xf32> to vector<1x128xf32>
    %c0_242 = arith.constant 0 : index
    %c1920_243 = arith.constant 1920 : index
    %199 = vector.load %arg16[%c0_242, %c1920_243] : memref<1x2048xf32, #tpu.memory_space<vmem>>, vector<1x128xf32>
    tpu.vector_store %arg16[%c0_242, %c1920_243], %198 {strides = array<i32>} : memref<1x2048xf32, #tpu.memory_space<vmem>>, vector<1x128xf32>,
    %c0_244 = arith.constant 0 : index
    %c0_245 = arith.constant 0 : index
    %200 = vector.load %arg16[%c0_244, %c0_245] : memref<1x2048xf32, #tpu.memory_space<vmem>>, vector<1x2048xf32>
    %201 = arith.truncf %200 : vector<1x2048xf32> to vector<1x2048xbf16>
    %c0_246 = arith.constant 0 : index
    %c0_247 = arith.constant 0 : index
    %202 = vector.load %arg6[%c0_246, %c0_247] : memref<2048x50xbf16, #tpu.memory_space<vmem>>, vector<2048x50xbf16>
    %cst_248 = arith.constant dense<0.000000e+00> : vector<1x50xf32>
    %203 = tpu.matmul %201, %202, %cst_248 {dimension_numbers = #tpu.dot_dimension_numbers<[1], [0], [0], [1], [0, 0, 1, 1], [], []>} : vector<1x2048xbf16>, vector<2048x50xbf16>, vector<1x50xf32> -> vector<1x50xf32>
    %c0_249 = arith.constant 0 : index
    %c0_250 = arith.constant 0 : index
    %204 = vector.load %arg7[%c0_249, %c0_250] : memref<1x50xf32, #tpu.memory_space<vmem>>, vector<1x50xf32>
    %205 = arith.addf %203, %204 : vector<1x50xf32>
    %cst_251 = arith.constant 0.000000e+00 : f32
    %206 = vector.broadcast %cst_251 : f32 to vector<1x50xf32>
    %207 = arith.maximumf %205, %206 : vector<1x50xf32>
    %208 = arith.truncf %207 : vector<1x50xf32> to vector<1x50xbf16>
    %c0_252 = arith.constant 0 : index
    %c0_253 = arith.constant 0 : index
    %209 = vector.load %arg8[%c0_252, %c0_253] : memref<50x10xbf16, #tpu.memory_space<vmem>>, vector<50x10xbf16>
    %cst_254 = arith.constant dense<0.000000e+00> : vector<1x10xf32>
    %210 = tpu.matmul %208, %209, %cst_254 {dimension_numbers = #tpu.dot_dimension_numbers<[1], [0], [0], [1], [0, 0, 1, 1], [], []>} : vector<1x50xbf16>, vector<50x10xbf16>, vector<1x10xf32> -> vector<1x10xf32>
    %c0_255 = arith.constant 0 : index
    %c0_256 = arith.constant 0 : index
    %211 = vector.load %arg9[%c0_255, %c0_256] : memref<1x10xf32, #tpu.memory_space<vmem>>, vector<1x10xf32>
    %212 = arith.addf %210, %211 : vector<1x10xf32>
    %cst_257 = arith.constant dense<0xFF800000> : vector<1xf32>
    %213 = vector.multi_reduction <maximumf>, %212, %cst_257 [1] : vector<1x10xf32> to vector<1xf32>
    %214 = vector.shape_cast %213 : vector<1xf32> to vector<1x1xf32>
    %215 = vector.broadcast %214 : vector<1x1xf32> to vector<1x10xf32>
    %216 = arith.subf %212, %215 : vector<1x10xf32>
    %217 = math.exp %216 : vector<1x10xf32>
    %cst_258 = arith.constant dense<0.000000e+00> : vector<1xf32>
    %218 = vector.multi_reduction <add>, %217, %cst_258 [1] : vector<1x10xf32> to vector<1xf32>
    %219 = vector.shape_cast %218 : vector<1xf32> to vector<1x1xf32>
    %220 = math.log %219 : vector<1x1xf32>
    %221 = vector.broadcast %220 : vector<1x1xf32> to vector<1x10xf32>
    %222 = arith.subf %216, %221 : vector<1x10xf32>
    %223 = vector.shape_cast %222 : vector<1x10xf32> to vector<1x1x10xf32>
    %c0_259 = arith.constant 0 : index
    %c0_260 = arith.constant 0 : index
    %c0_261 = arith.constant 0 : index
    %224 = vector.load %arg10[%c0_259, %c0_260, %c0_261] : memref<1x1x10xf32, #tpu.memory_space<vmem>>, vector<1x1x10xf32>
    tpu.vector_store %arg10[%c0_259, %c0_260, %c0_261], %223 {strides = array<i32>} : memref<1x1x10xf32, #tpu.memory_space<vmem>>, vector<1x1x10xf32>,
    return
  }
  func.func @transform_0(%arg0: i32) -> (i32, i32) {
    %c0_i32 = arith.constant 0 : i32
    %c0_i32_0 = arith.constant 0 : i32
    return %arg0, %c0_i32 : i32, i32
  }
  func.func @transform_1(%arg0: i32) -> (i32, i32) {
    %c0_i32 = arith.constant 0 : i32
    %c0_i32_0 = arith.constant 0 : i32
    %c0_i32_1 = arith.constant 0 : i32
    return %c0_i32, %c0_i32_0 : i32, i32
  }
  func.func @transform_2(%arg0: i32) -> (i32, i32) {
    %c0_i32 = arith.constant 0 : i32
    %c0_i32_0 = arith.constant 0 : i32
    %c0_i32_1 = arith.constant 0 : i32
    return %c0_i32, %c0_i32_0 : i32, i32
  }
  func.func @transform_3(%arg0: i32) -> (i32, i32) {
    %c0_i32 = arith.constant 0 : i32
    %c0_i32_0 = arith.constant 0 : i32
    %c0_i32_1 = arith.constant 0 : i32
    return %c0_i32, %c0_i32_0 : i32, i32
  }
  func.func @transform_4(%arg0: i32) -> (i32, i32) {
    %c0_i32 = arith.constant 0 : i32
    %c0_i32_0 = arith.constant 0 : i32
    %c0_i32_1 = arith.constant 0 : i32
    return %c0_i32, %c0_i32_0 : i32, i32
  }
  func.func @transform_5(%arg0: i32) -> (i32, i32) {
    %c0_i32 = arith.constant 0 : i32
    %c0_i32_0 = arith.constant 0 : i32
    %c0_i32_1 = arith.constant 0 : i32
    return %c0_i32, %c0_i32_0 : i32, i32
  }
  func.func @transform_6(%arg0: i32) -> (i32, i32) {
    %c0_i32 = arith.constant 0 : i32
    %c0_i32_0 = arith.constant 0 : i32
    %c0_i32_1 = arith.constant 0 : i32
    return %c0_i32, %c0_i32_0 : i32, i32
  }
  func.func @transform_7(%arg0: i32) -> (i32, i32) {
    %c0_i32 = arith.constant 0 : i32
    %c0_i32_0 = arith.constant 0 : i32
    %c0_i32_1 = arith.constant 0 : i32
    return %c0_i32, %c0_i32_0 : i32, i32
  }
  func.func @transform_8(%arg0: i32) -> (i32, i32) {
    %c0_i32 = arith.constant 0 : i32
    %c0_i32_0 = arith.constant 0 : i32
    %c0_i32_1 = arith.constant 0 : i32
    return %c0_i32, %c0_i32_0 : i32, i32
  }
  func.func @transform_9(%arg0: i32) -> (i32, i32, i32) {
    %c0_i32 = arith.constant 0 : i32
    %c0_i32_0 = arith.constant 0 : i32
    %c0_i32_1 = arith.constant 0 : i32
    return %arg0, %c0_i32, %c0_i32_0 : i32, i32, i32
  }
}

</mosaic_0001>

<bundles_post_ra>
// kernel: tpu_custom_call.1
= control target key start
LH: loop header
LB: loop body
LE: loop exit
PB: predicated region body
PF: predicated region fallthrough
CT: control target
= control target key end

     0   :  { %14 = vsyncpa [#allocation9], 0  ;;  %s10983_s0 = inlined_call_operand.vmem [shape: bf16[1152,25], index: 0, kind: input, shape index: {}]   ;;  %s10984_s1 = inlined_call_operand.vmem [shape: bf16[25,128], index: 1, kind: input, shape index: {}]   ;;  %s10985_s2 = inlined_call_operand.vmem [shape: f32[1,128], index: 2, kind: input, shape index: {}]   ;;  %s10986_s3 = inlined_call_operand.vmem [shape: bf16[3200,128], index: 3, kind: input, shape index: {}]   ;;  %s10987_s4 = inlined_call_operand.vmem [shape: f32[1,128], index: 4, kind: input, shape index: {}]   ;;  %s10988_s5 = inlined_call_operand.vmem [shape: bf16[2048,50], index: 5, kind: input, shape index: {}]   ;;  %s10989_s6 = inlined_call_operand.vmem [shape: f32[1,50], index: 6, kind: input, shape index: {}]   ;;  %s10990_s7 = inlined_call_operand.vmem [shape: bf16[50,10], index: 7, kind: input, shape index: {}]   ;;  %s10991_s8 = inlined_call_operand.vmem [shape: f32[1,10], index: 8, kind: input, shape index: {}]   ;;  %s10992_s9 = inlined_call_operand.hbm [shape: f32[2,1,10], index: 9, kind: output, shape index: {}]  }
   0x1   :  { %16 = vsyncpa [#allocation9 + $0x1], 0  ;;  %s9043_s30 = smov 0   ;;  %s9045_s10 = smov 0  }
   0x2   :  { %s9047_s11 = smov 0   ;;  %s9049_s12 = smov 0  }
   0x3 LB: > { %s9064_s13 = sadd.s32 4294967295, %s8990_s12   ;;  %s6468_s14 = sadd.s32 4294967294, %s8990_s12   ;;  %s8990_s12 = sphi %s9049_s12, %s11046_s12   ;;  %s8986_s11 = sphi %s9047_s11, %s11045_s11   ;;  %s8982_s10 = sphi %s9045_s10, %s11044_s10   ;;  %s8978_s30 = sphi %s9043_s30, %s11043_s30  }
   0x4   : > { %s9068_s15 = sadd.s32 1, %s8990_s12   ;;  %s223_s16 = sadd.s32 1, %s8986_s11 }
   0x5   : > { %s220_s17 = ssub.s32 %s8990_s12, %s9068_s15  ;;  %p233_p0 = scmp.ne.s32.totalorder %s8986_s11, %s8982_s10 }
   0x6   : > { %p221_p1 = scmp.eq.s32.totalorder %s220_s17, 0  ;;  %p234_p2 = scmp.eq.s32.totalorder %s9064_s13, 1 }
   0x7   : > { %p239_p3 = scmp.ne.s32.totalorder %s8982_s10, %s8978_s30  ;;  %p240_p4 = scmp.eq.s32.totalorder %s6468_s14, 1 }
   0x8   : > { %s9079_s18 = scalar_select %p221_p1, %s8986_s11, %s223_s16  }
   0x9   : > { %p9081_p5 = por %p234_p2, %p233_p0  ;;  %p9085_p6 = por %p240_p4, %p239_p3 }
   0xa   : > { %p6471_p7 = scmp.ge.s32.totalorder %s8990_s12, 1  ;;  %p291_p8 = scmp.lt.s32.totalorder %s8990_s12, 3 }
   0xc   : > { %p292_p9 = pnand %p6471_p7, %p291_p8 }
   0xe   : > { %295 = sbr.rel (%p292_p9) target bundleno = 1621 (0x655), region = 56 }
  0x13   : > { %v6527_v0 = vld [vmem:[%s10984_s1 + $0x8] sm:$0xf]  ;;  %v8417_v1 = vld [vmem:[%s10984_s1 + $0x8] sm:$0x10]  ;;  %vm473_vm0 = vcmask 1043456   ;;  %vm474_vm1 = vcmask 1044480   ;;  %s6355_s27 = scalar_lea.hbm %s10992_s9, %s9064_s13 }
  0x14   : > { %v6528_v2 = vor.u32 %v8417_v1, %v6527_v0  ;;  %v6595_v3 = vld [vmem:[%s10984_s1 + $0x8] sm:$0xf]  ;;  %v8431_v4 = vld [vmem:[%s10984_s1 + $0x8] sm:$0x10]  ;;  %v8992_v5 = vmov 65535   ;;  %s326_s29 = smul.u32 72, %s9064_s13 }
  0x15   : > { %v475_v6 = vsel %vm473_vm0, 4294967295, %v8992_v5  ;;  %v6596_v7 = vor.u32 %v8431_v4, %v6595_v3  ;;  %v8416_v11 = vld [vmem:[%s10984_s1] sm:$0xff]  ;;  %vm436_vm2 = vcmask 203776   ;;  %v6663_v21 = vld [vmem:[%s10984_s1 + $0x8] sm:$0xf]  ;;  %vm6315_vm4 = vcmask 1040384  }
  0x16   : > { %v476_v8 = vsel %vm474_vm1, %v475_v6, 0  ;;  %p327_p10 = scmp.lt.s32.totalorder %s326_s29, 143  ;;  %v8430_v12 = vld [vmem:[%s10984_s1] sm:$0xff]  ;;  %v8445_v22 = vld [vmem:[%s10984_s1 + $0x8] sm:$0x10]  ;;  %vm6311_vm5 = vcmask 408576  }
  0x17   : > { %v478_v9 = vand.u32 %v6528_v2, %v476_v8  ;;  %v713_v10 = vand.u32 %v6596_v7, %v476_v8  ;;  %v6664_v23 = vor.u32 %v8445_v22, %v6663_v21  ;;  %v8444_v25 = vld [vmem:[%s10984_s1] sm:$0xff]  ;;  %vm6332_vm6 = vcmask 73728   ;;  %s324_s23 = sand.u32 1, %s8982_s10  }
  0x18   : > { %s11048_s29 = smov (!%p327_p10, %s326_s29), 143  ;;  %v9168_v39 = vld [vmem:[%s10985_s2] ss:$0 sm:$0xff]  ;;  %s325_s28 = scalar_lea.vmem [#allocation8], %s324_s23 }
  0x19   : > { %486 = vmatpush.bf16.msra.mxu0 %v478_v9  ;;  %721 = vmatpush.bf16.msra.mxu1 %v713_v10  ;;  %s6472_s22 = sshll.u32 %s11048_s29, 2  ;;  %v949_v24 = vand.u32 %v6664_v23, %v476_v8  ;;  %v9173_v40 = vld [vmem:[%s10985_s2] ss:$0 sm:$0xff]  ;;  %s6357_s29 = sshll.u32 %s325_s28, 4  ;;  %s6358_s29 = int_to_ptr.vmem [resolvable:$true] %s6357_s29 }
  0x1a   : > { %s9113_s25 = scalar_lea.vmem %s10983_s0, %s6472_s22  ;;  %s6347_s14 = scalar_lea.sflag [#allocation9], %s324_s23 }
  0x1b   : > { %v8404_v13 = vld [vmem:[%s9113_s25] sm:$0xff]  ;;  %v8405_v15 = vld [vmem:[%s9113_s25 + $0x8] sm:$0xff]  ;;  %v8406_v17 = vld [vmem:[%s9113_s25 + $0x10] sm:$0xff]  ;;  %957 = vmatpush.bf16.msra.mxu2 %v949_v24  ;;  %s8948_s22 = scalar_lea.hbm %s10992_s9, 2 }
  0x1c   : > { %v8418_v14 = vld [vmem:[%s9113_s25 + $0x60] sm:$0xff]  ;;  %v8419_v16 = vld [vmem:[%s9113_s25 + $0x68] sm:$0xff]  ;;  %v8420_v18 = vld [vmem:[%s9113_s25 + $0x70] sm:$0xff] }
  0x1d   : > { %487 = vmatpush.bf16.msra.mxu0 %v8416_v11  ;;  %722 = vmatpush.bf16.msra.mxu1 %v8430_v12  ;;  %v8407_v19 = vld [vmem:[%s9113_s25 + $0x18] sm:$0xff]  ;;  %v8432_v26 = vld [vmem:[%s9113_s25 + $0xc0] sm:$0xff]  ;;  %v8433_v29 = vld [vmem:[%s9113_s25 + $0xc8] sm:$0xff] }
  0x1e   : > { %v8421_v20 = vld [vmem:[%s9113_s25 + $0x78] sm:$0xff]  ;;  %v8408_v27 = vld [vmem:[%s9113_s25 + $0x20] sm:$0xff]  ;;  %v8409_v30 = vld [vmem:[%s9113_s25 + $0x28] sm:$0xff] }
  0x1f   : > { %958 = vmatpush.bf16.msra.mxu2 %v8444_v25  ;;  %v8422_v28 = vld [vmem:[%s9113_s25 + $0x80] sm:$0xff]  ;;  %v8423_v31 = vld [vmem:[%s9113_s25 + $0x88] sm:$0xff]  ;;  %v8434_v32 = vld [vmem:[%s9113_s25 + $0xd0] sm:$0xff] }
  0x20   : > { %6529 = vmatmul.msk.bf16.vlgmr.msra.gmra.mxu0 %vm436_vm2, %v8404_v13  ;;  %6597 = vmatmul.msk.bf16.vlgmr.msra.gmra.mxu1 %vm436_vm2, %v8418_v14  ;;  %v8410_v33 = vld [vmem:[%s9113_s25 + $0x30] sm:$0xff]  ;;  %v8435_v35 = vld [vmem:[%s9113_s25 + $0xd8] sm:$0xff]  ;;  %v8436_v38 = vld [vmem:[%s9113_s25 + $0xe0] sm:$0xff] }
  0x21   : > { %v8424_v34 = vld [vmem:[%s9113_s25 + $0x90] sm:$0xff]  ;;  %v8411_v36 = vld [vmem:[%s9113_s25 + $0x38] sm:$0xff]  ;;  %v8412_v41 = vld [vmem:[%s9113_s25 + $0x40] sm:$0xff] }
  0x22   : > { %6665 = vmatmul.msk.bf16.vlgmr.msra.gmra.mxu2 %vm436_vm2, %v8432_v26  ;;  %v8425_v37 = vld [vmem:[%s9113_s25 + $0x98] sm:$0xff]  ;;  %v8426_v42 = vld [vmem:[%s9113_s25 + $0xa0] sm:$0xff]  ;;  %v8437_v51 = vld [vmem:[%s9113_s25 + $0xe8] sm:$0xff] }
  0x23   : > { %v8413_v52 = vld [vmem:[%s9113_s25 + $0x48] sm:$0xff]  ;;  %v8438_v62 = vld [vmem:[%s9113_s25 + $0xf0] sm:$0xff]  ;;  %v8439_v22 = vld [vmem:[%s9113_s25 + $0xf8] sm:$0xff] }
  0x24   : > { %v8427_v53 = vld [vmem:[%s9113_s25 + $0xa8] sm:$0xff]  ;;  %v8414_v63 = vld [vmem:[%s9113_s25 + $0x50] sm:$0xff]  ;;  %v8553_v24 = vld [vmem:[%s10986_s3 + $0x38] sm:$0xff] }
  0x25   : > { %v8428_v0 = vld [vmem:[%s9113_s25 + $0xb0] sm:$0xff]  ;;  %4172 = vmatpush.bf16.msra.mxu3 %v8553_v24 }
  0x30   : > { %6530 = vmatmul.msk.bf16.gmra.mxu0 %vm436_vm2, %v8405_v15  ;;  %6598 = vmatmul.msk.bf16.gmra.mxu1 %vm436_vm2, %v8419_v16 }
  0x32   : > { %6666 = vmatmul.msk.bf16.gmra.mxu2 %vm436_vm2, %v8433_v29  ;;  %v8429_v29 = vld [vmem:[%s9113_s25 + $0xb8] sm:$0xff] }
  0x40   : > { %6531 = vmatmul.msk.bf16.gmra.mxu0 %vm436_vm2, %v8406_v17  ;;  %6599 = vmatmul.msk.bf16.gmra.mxu1 %vm436_vm2, %v8420_v18 }
  0x42   : > { %6667 = vmatmul.msk.bf16.gmra.mxu2 %vm436_vm2, %v8434_v32 }
  0x50   : > { %6532 = vmatmul.msk.bf16.gmra.mxu0 %vm436_vm2, %v8407_v19  ;;  %6600 = vmatmul.msk.bf16.gmra.mxu1 %vm436_vm2, %v8421_v20 }
  0x52   : > { %6668 = vmatmul.msk.bf16.gmra.mxu2 %vm436_vm2, %v8435_v35 }
  0x60   : > { %6533 = vmatmul.msk.bf16.gmra.mxu0 %vm436_vm2, %v8408_v27  ;;  %6601 = vmatmul.msk.bf16.gmra.mxu1 %vm436_vm2, %v8422_v28  ;;  %v8415_v28 = vld [vmem:[%s9113_s25 + $0x58] sm:$0xff] }
  0x62   : > { %6669 = vmatmul.msk.bf16.gmra.mxu2 %vm436_vm2, %v8436_v38  ;;  %v8552_v38 = vld [vmem:[%s10986_s3 + $0x30] sm:$0xff] }
  0x63   : > { %4173 = vmatpush.bf16.msra.mxu3 %v8552_v38 }
  0x70   : > { %6534 = vmatmul.msk.bf16.gmra.mxu0 %vm436_vm2, %v8409_v30  ;;  %6602 = vmatmul.msk.bf16.gmra.mxu1 %vm436_vm2, %v8423_v31 }
  0x72   : > { %6670 = vmatmul.msk.bf16.gmra.mxu2 %vm436_vm2, %v8437_v51 }
  0x80   : > { %6535 = vmatmul.msk.bf16.gmra.mxu0 %vm436_vm2, %v8410_v33  ;;  %6603 = vmatmul.msk.bf16.gmra.mxu1 %vm436_vm2, %v8424_v34 }
  0x82   : > { %6671 = vmatmul.msk.bf16.gmra.mxu2 %vm436_vm2, %v8438_v62  ;;  %v8577_v62 = vld [vmem:[%s10986_s3 + $0xf8] sm:$0xff] }
  0x83   : > { %4259 = vmatpush.bf16.msrb.mxu0 %v8577_v62 }
  0x90   : > { %6536 = vmatmul.msk.bf16.gmra.mxu0 %vm436_vm2, %v8411_v36  ;;  %6604 = vmatmul.msk.bf16.gmra.mxu1 %vm436_vm2, %v8425_v37 }
  0x92   : > { %6672 = vmatmul.msk.bf16.gmra.mxu2 %vm436_vm2, %v8439_v22 }
  0x9d   : > { %v489_v43 = vpop.f32.mrf.mxu0  ;;  %v724_v44 = vpop.f32.mrf.mxu1 }
  0x9e   : > { %v490_v45 = vadd.f32 %v9168_v39, %v489_v43  ;;  %v725_v46 = vadd.f32 %v9173_v40, %v724_v44 }
  0xa0   : > { %549 = vst [vmem:[#allocation2] sm:$0xff] %v490_v45  ;;  %6537 = vmatmul.msk.bf16.gmra.mxu0 %vm436_vm2, %v8412_v41  ;;  %6605 = vmatmul.msk.bf16.gmra.mxu1 %vm436_vm2, %v8426_v42 }
  0xa1   : > { %785 = vst [vmem:[#allocation2 + $0xc0] sm:$0xff] %v725_v46 }
  0xa5   : > { %v491_v47 = vpop.f32.mrf.mxu0  ;;  %v726_v48 = vpop.f32.mrf.mxu1 }
  0xa6   : > { %v492_v49 = vadd.f32 %v9168_v39, %v491_v47  ;;  %v727_v50 = vadd.f32 %v9173_v40, %v726_v48 }
  0xa8   : > { %550 = vst [vmem:[#allocation2 + $0x8] sm:$0xff] %v492_v49 }
  0xa9   : > { %786 = vst [vmem:[#allocation2 + $0xc8] sm:$0xff] %v727_v50  ;;  %v8551_v50 = vld [vmem:[%s10986_s3 + $0x28] sm:$0xff] }
  0xaa   : > { %4174 = vmatpush.bf16.msra.mxu3 %v8551_v50 }
  0xad   : > { %v494_v54 = vpop.f32.mrf.mxu0  ;;  %v729_v55 = vpop.f32.mrf.mxu1 }
  0xae   : > { %v495_v56 = vadd.f32 %v9168_v39, %v494_v54  ;;  %v730_v57 = vadd.f32 %v9173_v40, %v729_v55 }
  0xaf   : > { %v1045_v7 = vld [vmem:[#allocation2] ss:$2 sm:$0xff]  ;;  %v1093_v8 = vld [vmem:[#allocation2 + $0x1] ss:$2 sm:$0xff] }
  0xb0   : > { %551 = vst [vmem:[#allocation2 + $0x10] sm:$0xff] %v495_v56  ;;  %6538 = vmatmul.msk.bf16.gmra.mxu0 %vm436_vm2, %v8413_v52  ;;  %6606 = vmatmul.msk.bf16.gmra.mxu1 %vm436_vm2, %v8427_v53  ;;  %v1061_v5 = vld [vmem:[#allocation2 + $0xc0] ss:$2 sm:$0xff]  ;;  %v1109_v6 = vld [vmem:[#allocation2 + $0xc1] ss:$2 sm:$0xff]  ;;  %v1236_v16 = vmax.f32 %v1045_v7, %v1093_v8  ;;  %v8576_v8 = vld [vmem:[%s10986_s3 + $0xf0] sm:$0xff] }
  0xb1   : > { %787 = vst [vmem:[#allocation2 + $0xd0] sm:$0xff] %v730_v57  ;;  %v1244_v13 = vmax.f32 %v1061_v5, %v1109_v6  ;;  %4260 = vmatpush.bf16.msrb.mxu0 %v8576_v8 }
  0xb5   : > { %v496_v58 = vpop.f32.mrf.mxu0  ;;  %v731_v59 = vpop.f32.mrf.mxu1 }
  0xb6   : > { %v497_v60 = vadd.f32 %v9168_v39, %v496_v58  ;;  %v732_v61 = vadd.f32 %v9173_v40, %v731_v59  ;;  %v8550_v59 = vld [vmem:[%s10986_s3 + $0x20] sm:$0xff] }
  0xb7   : > { %v1047_v25 = vld [vmem:[#allocation2 + $0x10] ss:$2 sm:$0xf]  ;;  %v1095_v34 = vld [vmem:[#allocation2 + $0x11] ss:$2 sm:$0xf]  ;;  %4175 = vmatpush.bf16.msra.mxu3 %v8550_v59 }
  0xb8   : > { %552 = vst [vmem:[#allocation2 + $0x18] sm:$0xff] %v497_v60  ;;  %v1063_v26 = vld [vmem:[#allocation2 + $0xd0] ss:$2 sm:$0xf]  ;;  %v1237_v45 = vmax.f32 %v1047_v25, %v1095_v34 }
  0xb9   : > { %788 = vst [vmem:[#allocation2 + $0xd8] sm:$0xff] %v732_v61  ;;  %v1111_v30 = vld [vmem:[#allocation2 + $0xd1] ss:$2 sm:$0xf]  ;;  %v8440_v61 = vld [vmem:[%s9113_s25 + $0x100] sm:$0xff] }
  0xba   : > { %v1245_v42 = vmax.f32 %v1063_v26, %v1111_v30  ;;  %6673 = vmatmul.msk.bf16.gmra.mxu2 %vm436_vm2, %v8440_v61  ;;  %v8441_v30 = vld [vmem:[%s9113_s25 + $0x108] sm:$0xff] }
  0xbd   : > { %v499_v1 = vpop.f32.mrf.mxu0  ;;  %v734_v2 = vpop.f32.mrf.mxu1 }
  0xbe   : > { %v500_v3 = vadd.f32 %v9168_v39, %v499_v1  ;;  %v735_v4 = vadd.f32 %v9173_v40, %v734_v2 }
  0xc0   : > { %553 = vst [vmem:[#allocation2 + $0x20] sm:$0xff] %v500_v3  ;;  %6539 = vmatmul.msk.bf16.gmra.mxu0 %vm436_vm2, %v8414_v63  ;;  %6607 = vmatmul.msk.bf16.gmra.mxu1 %vm436_vm2, %v8428_v0  ;;  %v8585_v63 = vld [vmem:[%s10986_s3 + $0x138] sm:$0xff] }
  0xc1   : > { %789 = vst [vmem:[#allocation2 + $0xe0] sm:$0xff] %v735_v4  ;;  %v8549_v0 = vld [vmem:[%s10986_s3 + $0x18] sm:$0xff]  ;;  %4288 = vmatpush.bf16.msrb.mxu1 %v8585_v63 }
  0xc2   : > { %4176 = vmatpush.bf16.msra.mxu3 %v8549_v0 }
  0xc5   : > { %v501_v9 = vpop.f32.mrf.mxu0  ;;  %v736_v10 = vpop.f32.mrf.mxu1 }
  0xc6   : > { %v502_v11 = vadd.f32 %v9168_v39, %v501_v9  ;;  %v737_v12 = vadd.f32 %v9173_v40, %v736_v10  ;;  %v8584_v9 = vld [vmem:[%s10986_s3 + $0x130] sm:$0xff]  ;;  %v9245_v10 = vpop.f32.mrf.mxu2 }
  0xc7   : > { %v1141_v14 = vld [vmem:[#allocation2 + $0x18] ss:$2 sm:$0xff]  ;;  %v1189_v15 = vld [vmem:[#allocation2 + $0x19] ss:$2 sm:$0xff]  ;;  %4289 = vmatpush.bf16.msrb.mxu1 %v8584_v9 }
  0xc8   : > { %v1260_v17 = vmax.f32 %v1141_v14, %v1189_v15  ;;  %v1157_v18 = vld [vmem:[#allocation2 + $0xd8] ss:$2 sm:$0xff]  ;;  %v1205_v19 = vld [vmem:[#allocation2 + $0xd9] ss:$2 sm:$0xff]  ;;  %554 = vst [vmem:[#allocation2 + $0x28] sm:$0xff] %v502_v11  ;;  %v8548_v11 = vld [vmem:[%s10986_s3 + $0x10] sm:$0xff] }
  0xc9   : > { %v1268_v20 = vmax.f32 %v1157_v18, %v1205_v19  ;;  %790 = vst [vmem:[#allocation2 + $0xe8] sm:$0xff] %v737_v12  ;;  %4177 = vmatpush.bf16.msra.mxu3 %v8548_v11  ;;  %v8575_v19 = vld [vmem:[%s10986_s3 + $0xe8] sm:$0xff]  ;;  %v8442_v11 = vld [vmem:[%s9113_s25 + $0x110] sm:$0xff] }
  0xca   : > { %v1284_v21 = vmax.f32 %v1236_v16, %v1260_v17  ;;  %4261 = vmatpush.bf16.msrb.mxu0 %v8575_v19  ;;  %6674 = vmatmul.msk.bf16.gmra.mxu2 %vm436_vm2, %v8441_v30 }
  0xcb   : > { %v1292_v23 = vmax.f32 %v1244_v13, %v1268_v20  ;;  %v8583_v20 = vld [vmem:[%s10986_s3 + $0x128] sm:$0xff] }
  0xcc   : > { %v1308_v27 = vmax.f32 %v1284_v21, 0.0  ;;  %v8547_v21 = vld [vmem:[%s10986_s3 + $0x8] sm:$0xff]  ;;  %4290 = vmatpush.bf16.msrb.mxu1 %v8583_v20 }
  0xcd   : > { %v1316_v31 = vmax.f32 %v1292_v23, 0.0  ;;  %v504_v32 = vpop.f32.mrf.mxu0  ;;  %v739_v33 = vpop.f32.mrf.mxu1  ;;  %4178 = vmatpush.bf16.msra.mxu3 %v8547_v21 }
  0xce   : > { %1332 = vst [vmem:[#allocation3] sm:$0xff] %v1308_v27  ;;  %v505_v35 = vadd.f32 %v9168_v39, %v504_v32  ;;  %v740_v36 = vadd.f32 %v9173_v40, %v739_v33  ;;  %v1364_v41 = vpack.c.bf16 %v1308_v27, %v1308_v27  ;;  %v9261_v26 = vpop.f32.mrf.mxu2  ;;  %v8574_v27 = vld [vmem:[%s10986_s3 + $0xe0] sm:$0xff]  ;;  %v8581_v32 = vld [vmem:[%s10986_s3 + $0x118] sm:$0xff] }
  0xcf   : > { %1340 = vst [vmem:[#allocation3 + $0x40] sm:$0xff] %v1316_v31  ;;  %v1143_v37 = vld [vmem:[#allocation2 + $0x28] ss:$2 sm:$0xf]  ;;  %4262 = vmatpush.bf16.msrb.mxu0 %v8574_v27  ;;  %v8573_v31 = vld [vmem:[%s10986_s3 + $0xd8] sm:$0xff] }
  0xd0   : > { %v1191_v43 = vld [vmem:[#allocation2 + $0x29] ss:$2 sm:$0xf]  ;;  %v1159_v44 = vld [vmem:[#allocation2 + $0xe8] ss:$2 sm:$0xf]  ;;  %6540 = vmatmul.msk.bf16.gmra.mxu0 %vm436_vm2, %v8415_v28  ;;  %6608 = vmatmul.msk.bf16.gmra.mxu1 %vm436_vm2, %v8429_v29 }
  0xd1   : > { %v1261_v46 = vmax.f32 %v1143_v37, %v1191_v43  ;;  %v1207_v47 = vld [vmem:[#allocation2 + $0xe9] ss:$2 sm:$0xf]  ;;  %555 = vst [vmem:[#allocation2 + $0x30] sm:$0xff] %v505_v35  ;;  %v8582_v28 = vld [vmem:[%s10986_s3 + $0x120] sm:$0xff] }
  0xd2   : > { %v1269_v48 = vmax.f32 %v1159_v44, %v1207_v47  ;;  %791 = vst [vmem:[#allocation2 + $0xf0] sm:$0xff] %v740_v36  ;;  %v8546_v29 = vld [vmem:[%s10986_s3] sm:$0xff]  ;;  %4291 = vmatpush.bf16.msrb.mxu1 %v8582_v28  ;;  %v8572_v44 = vld [vmem:[%s10986_s3 + $0xd0] sm:$0xff] }
  0xd3   : > { %v1285_v49 = vmax.f32 %v1237_v45, %v1261_v46  ;;  %1372 = vst [vmem:[#allocation4] sm:$0xf] %v1364_v41  ;;  %4179 = vmatpush.bf16.msra.mxu3 %v8546_v29  ;;  %4263 = vmatpush.bf16.msrb.mxu0 %v8573_v31  ;;  %v8580_v45 = vld [vmem:[%s10986_s3 + $0x110] sm:$0xff] }
  0xd4   : > { %v1293_v51 = vmax.f32 %v1245_v42, %v1269_v48  ;;  %v9291_v48 = vld [vmem:[%s10985_s2] ss:$0 sm:$0xff] }
  0xd5   : > { %v1309_v52 = vmax.f32 %v1285_v49, 0.0  ;;  %v506_v53 = vpop.f32.mrf.mxu0  ;;  %v741_v54 = vpop.f32.mrf.mxu1 }
  0xd6   : > { %v1317_v55 = vmax.f32 %v1293_v51, 0.0  ;;  %v507_v56 = vadd.f32 %v9168_v39, %v506_v53  ;;  %v742_v57 = vadd.f32 %v9173_v40, %v741_v54  ;;  %v1480_v58 = vld [vmem:[#allocation3 + $0x40] sm:$0xff]  ;;  %4292 = vmatpush.bf16.msrb.mxu1 %v8581_v32  ;;  %v965_v47 = vpop.f32.mrf.mxu2  ;;  %v961_v51 = vadd.f32 %v9291_v48, %v9245_v10  ;;  %v8579_v53 = vld [vmem:[%s10986_s3 + $0x108] sm:$0xff]  ;;  %v8592_v32 = vld [vmem:[%s10986_s3 + $0x170] sm:$0xff] }
  0xd7   : > { %1333 = vst [vmem:[#allocation3 + $0x8] sm:$0xf] %v1309_v52  ;;  %v1488_v60 = vpack.c.bf16 %v1480_v58, %v1480_v58  ;;  %4264 = vmatpush.bf16.msrb.mxu0 %v8572_v44  ;;  %v8571_v52 = vld [vmem:[%s10986_s3 + $0xc8] sm:$0xff]  ;;  %v966_v9 = vadd.f32 %v9291_v48, %v965_v47  ;;  %v8590_v47 = vld [vmem:[%s10986_s3 + $0x160] sm:$0xff] }
  0xd8   : > { %1341 = vst [vmem:[#allocation3 + $0x48] sm:$0xf] %v1317_v55 }
  0xd9   : > { %556 = vst [vmem:[#allocation2 + $0x38] sm:$0xff] %v507_v56 }
  0xda   : > { %792 = vst [vmem:[#allocation2 + $0xf8] sm:$0xff] %v742_v57  ;;  %4293 = vmatpush.bf16.msrb.mxu1 %v8580_v45  ;;  %6675 = vmatmul.msk.bf16.gmra.mxu2 %vm436_vm2, %v8442_v11 }
  0xdb   : > { %1496 = vst [vmem:[#allocation4 + $0x140] sm:$0xf] %v1488_v60  ;;  %4265 = vmatpush.bf16.msrb.mxu0 %v8571_v52 }
  0xdc   : > { %1376 = vst [vmem:[#allocation4 + $0x190] sm:$0xf] %v1488_v60 }
  0xdd   : > { %v509_v1 = vpop.f32.mrf.mxu0  ;;  %v744_v2 = vpop.f32.mrf.mxu1  ;;  %1021 = vst [vmem:[#allocation2 + $0x180] sm:$0xff] %v961_v51 }
  0xde   : > { %v510_v3 = vadd.f32 %v9168_v39, %v509_v1  ;;  %v745_v4 = vadd.f32 %v9173_v40, %v744_v2  ;;  %v1428_v5 = vld [vmem:[#allocation3 + $0x3] sm:$0xff]  ;;  %4294 = vmatpush.bf16.msrb.mxu1 %v8579_v53  ;;  %1023 = vst [vmem:[#allocation2 + $0x190] sm:$0xff] %v966_v9  ;;  %v8443_v53 = vld [vmem:[%s9113_s25 + $0x118] sm:$0xff]  ;;  %s6359_s25 = sshll.u32 %s6355_s27, 4  ;;  %s6360_s25 = int_to_ptr.hbm [resolvable:$true] %s6359_s25 }
  0xdf   : > { %v1452_v6 = vld [vmem:[#allocation3 + $0x4] sm:$0xff]  ;;  %v1436_v12 = vpack.c.bf16 %v1428_v5, %v1428_v5  ;;  %s8942_s16 = sshra.s32 %s6360_s25, 4  ;;  %s8943_s16 = int_to_ptr.hbm [resolvable:$true] %s8942_s16 }
  0xe0   : > { %v1380_v7 = vld [vmem:[#allocation3 + $0x1] sm:$0xff]  ;;  %v1460_v13 = vpack.c.bf16 %v1452_v6, %v1452_v6  ;;  %557 = vst [vmem:[#allocation2 + $0x40] sm:$0xff] %v510_v3  ;;  %v1049_v54 = vld [vmem:[#allocation2 + $0x30] ss:$2 sm:$0xff]  ;;  %v1097_v55 = vld [vmem:[#allocation2 + $0x31] ss:$2 sm:$0xff]  ;;  %v963_v6 = vadd.f32 %v9291_v48, %v9261_v26  ;;  %p8949_p0 = scmp.lt.s32.totalorder %s8943_s16, %s10992_s9 }
  0xe1   : > { %v1432_v14 = vld [vmem:[#allocation3 + $0x43] sm:$0xff]  ;;  %793 = vst [vmem:[#allocation2 + $0x100] sm:$0xff] %v745_v4  ;;  %v1388_v18 = vpack.c.bf16 %v1380_v7, %v1380_v7  ;;  %v1065_v49 = vld [vmem:[#allocation2 + $0xf0] ss:$2 sm:$0xff]  ;;  %v1113_v50 = vld [vmem:[#allocation2 + $0xf1] ss:$2 sm:$0xff]  ;;  %v1238_v63 = vmax.f32 %v1049_v54, %v1097_v55  ;;  %v9306_v4 = vpop.f32.mrf.mxu2 }
  0xe2   : > { %v1440_v15 = vpack.c.bf16 %v1432_v14, %v1432_v14  ;;  %v1456_v16 = vld [vmem:[#allocation3 + $0x44] sm:$0xff]  ;;  %1444 = vst [vmem:[#allocation4 + $0xc] sm:$0xf] %v1436_v12  ;;  %v1246_v60 = vmax.f32 %v1065_v49, %v1113_v50  ;;  %v6679_v49 = vld [vmem:[#allocation4] sm:$0xf]  ;;  %v8589_v55 = vld [vmem:[%s10986_s3 + $0x158] sm:$0xff] }
  0xe3   : > { %v1464_v17 = vpack.c.bf16 %v1456_v16, %v1456_v16  ;;  %1468 = vst [vmem:[#allocation4 + $0x10] sm:$0xf] %v1460_v13  ;;  %v1528_v33 = vld [vmem:[#allocation3 + $0x42] sm:$0xff]  ;;  %s8944_s17 = scalar_lea.hbm %s8943_s16, 1 }
  0xe4   : > { %1448 = vst [vmem:[#allocation4 + $0x19c] sm:$0xf] %v1440_v15  ;;  %v1384_v34 = vld [vmem:[#allocation3 + $0x41] sm:$0xff]  ;;  %v1536_v37 = vpack.c.bf16 %v1528_v33, %v1528_v33  ;;  %p8945_p11 = scmp.ne.s32.totalorder %s8943_s16, %s8944_s17  ;;  %p8950_p1 = scmp.lt.s32.totalorder %s8948_s22, %s8944_s17 }
  0xe5   : > { %v511_v22 = vpop.f32.mrf.mxu0  ;;  %v746_v23 = vpop.f32.mrf.mxu1  ;;  %1472 = vst [vmem:[#allocation4 + $0x1a0] sm:$0xf] %v1464_v17  ;;  %v1404_v38 = vld [vmem:[#allocation3 + $0x2] sm:$0xff]  ;;  %v1392_v43 = vpack.c.bf16 %v1384_v34, %v1384_v34 }
  0xe6   : > { %v512_v24 = vadd.f32 %v9168_v39, %v511_v22  ;;  %v747_v25 = vadd.f32 %v9173_v40, %v746_v23  ;;  %1396 = vst [vmem:[#allocation4 + $0x4] sm:$0xf] %v1388_v18  ;;  %v1412_v46 = vpack.c.bf16 %v1404_v38, %v1404_v38  ;;  %v8570_v3 = vld [vmem:[%s10986_s3 + $0xc0] sm:$0xff]  ;;  %p8946_p12 = pnand %p8945_p11, %p9081_p5  ;;  %p8951_p2 = por %p8950_p1, %p8949_p0 }
  0xe7   : > { %1592 = vst [vmem:[#allocation4 + $0x150] sm:$0xf] %v1464_v17  ;;  %v8578_v7 = vld [vmem:[%s10986_s3 + $0x100] sm:$0xff]  ;;  %4266 = vmatpush.bf16.msrb.mxu0 %v8570_v3 }
  0xe8   : > { %558 = vst [vmem:[#allocation2 + $0x48] sm:$0xff] %v512_v24  ;;  %4295 = vmatpush.bf16.msrb.mxu1 %v8578_v7  ;;  %v1051_v12 = vld [vmem:[#allocation2 + $0x40] ss:$2 sm:$0xf]  ;;  %p8947_p13 = pneg %p8946_p12 }
  0xe9   : > { %794 = vst [vmem:[#allocation2 + $0x108] sm:$0xff] %v747_v25  ;;  %v1067_v13 = vld [vmem:[#allocation2 + $0x100] ss:$2 sm:$0xf]  ;;  %v9321_v28 = vpop.f32.mrf.mxu2 }
  0xea   : > { %1568 = vst [vmem:[#allocation4 + $0x14c] sm:$0xf] %v1440_v15  ;;  %v8593_v15 = vld [vmem:[%s10986_s3 + $0x178] sm:$0xff]  ;;  %v1115_v16 = vld [vmem:[#allocation2 + $0x101] ss:$2 sm:$0xf]  ;;  %6676 = vmatmul.msk.bf16.gmra.mxu2 %vm436_vm2, %v8443_v53  ;;  %p8952_p3 = pnand %p8951_p2, %p8947_p13 }
  0xeb   : > { %1544 = vst [vmem:[#allocation4 + $0x148] sm:$0xf] %v1536_v37  ;;  %v1099_v20 = vld [vmem:[#allocation2 + $0x41] ss:$2 sm:$0xf]  ;;  %4317 = vmatpush.bf16.msrb.mxu2 %v8593_v15  ;;  %v1247_v25 = vmax.f32 %v1067_v13, %v1115_v16 }
  0xec   : > { %1400 = vst [vmem:[#allocation4 + $0x194] sm:$0xf] %v1392_v43  ;;  %v1239_v29 = vmax.f32 %v1051_v12, %v1099_v20  ;;  %v1672_v51 = vld [vmem:[#allocation3 + $0x43] sm:$0xff] }
  0xed   : > { %v514_v35 = vpop.f32.mrf.mxu0  ;;  %v749_v36 = vpop.f32.mrf.mxu1  ;;  %1420 = vst [vmem:[#allocation4 + $0x8] sm:$0xf] %v1412_v46  ;;  %v1680_v54 = vpack.c.bf16 %v1672_v51, %v1672_v51  ;;  %v8586_v20 = vld [vmem:[%s10986_s3 + $0x140] sm:$0xff] }
  0xee   : > { %v515_v41 = vadd.f32 %v9168_v39, %v514_v35  ;;  %v750_v42 = vadd.f32 %v9173_v40, %v749_v36  ;;  %1640 = vst [vmem:[#allocation4 + $0xf4] sm:$0xf] %v1392_v43 }
  0xef   : > { %1664 = vst [vmem:[#allocation4 + $0xf8] sm:$0xf] %v1536_v37  ;;  %4318 = vmatpush.bf16.msrb.mxu2 %v8592_v32 }
  0xf0   : > { %559 = vst [vmem:[#allocation2 + $0x50] sm:$0xff] %v515_v41 }
  0xf1   : > { %795 = vst [vmem:[#allocation2 + $0x110] sm:$0xff] %v750_v42  ;;  %v972_v46 = vpop.f32.mrf.mxu2 }
  0xf2   : > { %1424 = vst [vmem:[#allocation4 + $0x198] sm:$0xf] %v1536_v37  ;;  %v8591_v37 = vld [vmem:[%s10986_s3 + $0x168] sm:$0xff]  ;;  %v973_v15 = vadd.f32 %v9291_v48, %v972_v46 }
  0xf3   : > { %1022 = vst [vmem:[#allocation2 + $0x188] sm:$0xff] %v963_v6  ;;  %4319 = vmatpush.bf16.msrb.mxu2 %v8591_v37 }
  0xf4   : > { %1688 = vst [vmem:[#allocation4 + $0xfc] sm:$0xf] %v1680_v54 }
  0xf5   : > { %v516_v56 = vpop.f32.mrf.mxu0  ;;  %v751_v57 = vpop.f32.mrf.mxu1  ;;  %1026 = vst [vmem:[#allocation2 + $0x1a8] sm:$0xff] %v973_v15 }
  0xf6   : > { %v517_v58 = vadd.f32 %v9168_v39, %v516_v56  ;;  %v752_v59 = vadd.f32 %v9173_v40, %v751_v57 }
  0xf7   : > { %v1145_v61 = vld [vmem:[#allocation2 + $0x48] ss:$2 sm:$0xff]  ;;  %v1193_v62 = vld [vmem:[#allocation2 + $0x49] ss:$2 sm:$0xff]  ;;  %4320 = vmatpush.bf16.msrb.mxu2 %v8590_v47 }
  0xf8   : > { %v1262_v0 = vmax.f32 %v1145_v61, %v1193_v62  ;;  %v1161_v1 = vld [vmem:[#allocation2 + $0x108] ss:$2 sm:$0xff]  ;;  %v1209_v2 = vld [vmem:[#allocation2 + $0x109] ss:$2 sm:$0xff]  ;;  %560 = vst [vmem:[#allocation2 + $0x58] sm:$0xff] %v517_v58 }
  0xf9   : > { %v1270_v5 = vmax.f32 %v1161_v1, %v1209_v2  ;;  %796 = vst [vmem:[#allocation2 + $0x118] sm:$0xff] %v752_v59  ;;  %v968_v2 = vadd.f32 %v9291_v48, %v9306_v4  ;;  %v975_v3 = vpop.f32.mrf.mxu2 }
  0xfa   : > { %v1286_v8 = vmax.f32 %v1238_v63, %v1262_v0  ;;  %v976_v47 = vadd.f32 %v9291_v48, %v975_v3 }
  0xfb   : > { %v1294_v10 = vmax.f32 %v1246_v60, %v1270_v5  ;;  %4321 = vmatpush.bf16.msrb.mxu2 %v8589_v55  ;;  %v8588_v5 = vld [vmem:[%s10986_s3 + $0x150] sm:$0xff]  ;;  %1024 = vst [vmem:[#allocation2 + $0x198] sm:$0xff] %v968_v2 }
  0xfc   : > { %v1310_v14 = vmax.f32 %v1286_v8, 0.0  ;;  %v8587_v8 = vld [vmem:[%s10986_s3 + $0x148] sm:$0xff]  ;;  %1027 = vst [vmem:[#allocation2 + $0x1b0] sm:$0xff] %v976_v47 }
  0xfd   : > { %v1318_v17 = vmax.f32 %v1294_v10, 0.0  ;;  %v519_v18 = vpop.f32.mrf.mxu0  ;;  %v754_v19 = vpop.f32.mrf.mxu1  ;;  %v1223_v51 = vld [vmem:[#allocation2 + $0x1a9] ss:$2 sm:$0xf] }
  0xfe   : > { %1334 = vst [vmem:[#allocation3 + $0x10] sm:$0xff] %v1310_v14  ;;  %v520_v21 = vadd.f32 %v9168_v39, %v519_v18  ;;  %v755_v22 = vadd.f32 %v9173_v40, %v754_v19  ;;  %v1365_v24 = vpack.c.bf16 %v1310_v14, %v1310_v14  ;;  %v971_v14 = vadd.f32 %v9291_v48, %v9321_v28  ;;  %v8447_v18 = vld [vmem:[#allocation4 + $0xc] sm:$0xf] }
  0xff   : > { %1342 = vst [vmem:[#allocation3 + $0x50] sm:$0xff] %v1318_v17  ;;  %v1147_v23 = vld [vmem:[#allocation2 + $0x58] ss:$2 sm:$0xf]  ;;  %v1369_v33 = vpack.c.bf16 %v1318_v17, %v1318_v17  ;;  %4322 = vmatpush.bf16.msrb.mxu2 %v8588_v5 }
 0x100   : > { %v1195_v26 = vld [vmem:[#allocation2 + $0x59] ss:$2 sm:$0xf]  ;;  %v1163_v27 = vld [vmem:[#allocation2 + $0x118] ss:$2 sm:$0xf] }
 0x101   : > { %v1263_v30 = vmax.f32 %v1147_v23, %v1195_v26  ;;  %v1211_v31 = vld [vmem:[#allocation2 + $0x119] ss:$2 sm:$0xf]  ;;  %561 = vst [vmem:[#allocation2 + $0x60] sm:$0xff] %v520_v21  ;;  %v9360_v16 = vpop.f32.mrf.mxu2  ;;  %v6695_v23 = vld [vmem:[#allocation4 + $0x10] sm:$0xf] }
 0x102   : > { %v1271_v34 = vmax.f32 %v1163_v27, %v1211_v31  ;;  %797 = vst [vmem:[#allocation2 + $0x120] sm:$0xff] %v755_v22 }
 0x103   : > { %v1287_v35 = vmax.f32 %v1239_v29, %v1263_v30  ;;  %1373 = vst [vmem:[#allocation4 + $0x64] sm:$0xf] %v1365_v24  ;;  %4323 = vmatpush.bf16.msrb.mxu2 %v8587_v8  ;;  %v1077_v29 = vld [vmem:[#allocation2 + $0x180] ss:$2 sm:$0xff]  ;;  %v1125_v30 = vld [vmem:[#allocation2 + $0x181] ss:$2 sm:$0xff] }
 0x104   : > { %v1295_v36 = vmax.f32 %v1247_v25, %v1271_v34  ;;  %1493 = vst [vmem:[#allocation4 + $0x14] sm:$0xf] %v1365_v24 }
 0x105   : > { %v1311_v38 = vmax.f32 %v1287_v35, 0.0  ;;  %v521_v41 = vpop.f32.mrf.mxu0  ;;  %v756_v42 = vpop.f32.mrf.mxu1  ;;  %1377 = vst [vmem:[#allocation4 + $0x1f4] sm:$0xf] %v1369_v33 }
 0x106   : > { %v1319_v43 = vmax.f32 %v1295_v36, 0.0  ;;  %v522_v44 = vadd.f32 %v9168_v39, %v521_v41  ;;  %v757_v45 = vadd.f32 %v9173_v40, %v756_v42  ;;  %1497 = vst [vmem:[#allocation4 + $0x1a4] sm:$0xf] %v1369_v33  ;;  %v1079_v33 = vld [vmem:[#allocation2 + $0x190] ss:$2 sm:$0xf]  ;;  %v1252_v41 = vmax.f32 %v1077_v29, %v1125_v30 }
 0x107   : > { %1335 = vst [vmem:[#allocation3 + $0x18] sm:$0xf] %v1311_v38  ;;  %4324 = vmatpush.bf16.msrb.mxu2 %v8586_v20  ;;  %v1127_v38 = vld [vmem:[#allocation2 + $0x191] ss:$2 sm:$0xf] }
 0x108   : > { %1343 = vst [vmem:[#allocation3 + $0x58] sm:$0xf] %v1319_v43 }
 0x109   : > { %562 = vst [vmem:[#allocation2 + $0x68] sm:$0xff] %v522_v44  ;;  %v980_v42 = vpop.f32.mrf.mxu2  ;;  %v1253_v44 = vmax.f32 %v1079_v33, %v1127_v38 }
 0x10a   : > { %798 = vst [vmem:[#allocation2 + $0x128] sm:$0xff] %v757_v45  ;;  %v8458_v50 = vld [vmem:[#allocation4 + $0x60] sm:$0xf0] }
 0x10b   : > { %v6680_v52 = vor.u32 %v8458_v50, %v6679_v49  ;;  %1025 = vst [vmem:[#allocation2 + $0x1a0] sm:$0xff] %v971_v14  ;;  %v1175_v50 = vld [vmem:[#allocation2 + $0x1a8] ss:$2 sm:$0xf] }
 0x10c   : > { %v1277_v54 = vmax.f32 %v1175_v50, %v1223_v51 }
 0x10d   : > { %v524_v56 = vpop.f32.mrf.mxu0  ;;  %v759_v57 = vpop.f32.mrf.mxu1  ;;  %4180 = vmatmul.bf16.vlgmr.msra.gmra.mxu3 %v6680_v52 }
 0x10e   : > { %v525_v58 = vadd.f32 %v9168_v39, %v524_v56  ;;  %v760_v59 = vadd.f32 %v9173_v40, %v759_v57  ;;  %v1429_v60 = vld [vmem:[#allocation3 + $0x13] sm:$0xff] }
 0x10f   : > { %v1453_v61 = vld [vmem:[#allocation3 + $0x14] sm:$0xff]  ;;  %v1437_v62 = vpack.c.bf16 %v1429_v60, %v1429_v60 }
 0x110   : > { %v1461_v63 = vpack.c.bf16 %v1453_v61, %v1453_v61  ;;  %v1433_v0 = vld [vmem:[#allocation3 + $0x53] sm:$0xff]  ;;  %563 = vst [vmem:[#allocation2 + $0x70] sm:$0xff] %v525_v58  ;;  %v1053_v55 = vld [vmem:[#allocation2 + $0x60] ss:$2 sm:$0xff]  ;;  %v1101_v56 = vld [vmem:[#allocation2 + $0x61] ss:$2 sm:$0xff] }
 0x111   : > { %v1457_v1 = vld [vmem:[#allocation3 + $0x54] sm:$0xff]  ;;  %799 = vst [vmem:[#allocation2 + $0x130] sm:$0xff] %v760_v59  ;;  %v9346_v6 = vpack.c.bf16 %v1433_v0, %v1433_v0  ;;  %v1069_v52 = vld [vmem:[#allocation2 + $0x120] ss:$2 sm:$0xff]  ;;  %v1117_v53 = vld [vmem:[#allocation2 + $0x121] ss:$2 sm:$0xff]  ;;  %v1240_v3 = vmax.f32 %v1053_v55, %v1101_v56 }
 0x112   : > { %1445 = vst [vmem:[#allocation4 + $0x70] sm:$0xf] %v1437_v62  ;;  %v9348_v7 = vpack.c.bf16 %v1457_v1, %v1457_v1  ;;  %v1381_v12 = vld [vmem:[#allocation3 + $0x11] sm:$0xff]  ;;  %v1221_v46 = vld [vmem:[#allocation2 + $0x199] ss:$2 sm:$0xff]  ;;  %v1301_v62 = vmax.f32 %v1253_v44, %v1277_v54 }
 0x113   : > { %1469 = vst [vmem:[#allocation4 + $0x74] sm:$0xf] %v1461_v63  ;;  %v1573_v13 = vld [vmem:[#allocation3 + $0x14] sm:$0xff]  ;;  %v1389_v21 = vpack.c.bf16 %v1381_v12, %v1381_v12  ;;  %v1248_v63 = vmax.f32 %v1069_v52, %v1117_v53  ;;  %v9381_v12 = vpop.f32.mrf.mxu2 }
 0x114   : > { %1449 = vst [vmem:[#allocation4 + $0x200] sm:$0xf] %v9346_v6  ;;  %v1525_v17 = vld [vmem:[#allocation3 + $0x12] sm:$0xff]  ;;  %v1581_v25 = vpack.c.bf16 %v1573_v13, %v1573_v13 }
 0x115   : > { %v526_v9 = vpop.f32.mrf.mxu0  ;;  %v761_v4 = vpop.f32.mrf.mxu1  ;;  %1473 = vst [vmem:[#allocation4 + $0x204] sm:$0xf] %v9348_v7  ;;  %v9365_v27 = vpack.c.bf16 %v1525_v17, %v1525_v17  ;;  %v1549_v28 = vld [vmem:[#allocation3 + $0x13] sm:$0xff] }
 0x116   : > { %v527_v10 = vadd.f32 %v9168_v39, %v526_v9  ;;  %v762_v11 = vadd.f32 %v9173_v40, %v761_v4  ;;  %1397 = vst [vmem:[#allocation4 + $0x68] sm:$0xf] %v1389_v21  ;;  %v1557_v36 = vpack.c.bf16 %v1549_v28, %v1549_v28  ;;  %v1385_v37 = vld [vmem:[#allocation3 + $0x51] sm:$0xff]  ;;  %v1325_v4 = vmax.f32 %v1301_v62, 0.0 }
 0x117   : > { %1589 = vst [vmem:[#allocation4 + $0x24] sm:$0xf] %v1581_v25  ;;  %v9370_v43 = vpack.c.bf16 %v1385_v37, %v1385_v37  ;;  %v1173_v45 = vld [vmem:[#allocation2 + $0x198] ss:$2 sm:$0xff]  ;;  %v8448_v52 = vld [vmem:[#allocation4 + $0x14] sm:$0xf] }
 0x118   : > { %564 = vst [vmem:[#allocation2 + $0x78] sm:$0xff] %v527_v10  ;;  %v1276_v49 = vmax.f32 %v1173_v45, %v1221_v46  ;;  %v1055_v15 = vld [vmem:[#allocation2 + $0x70] ss:$2 sm:$0xf] }
 0x119   : > { %v6689_v19 = vld [vmem:[#allocation4 + $0x6c] sm:$0xf0]  ;;  %800 = vst [vmem:[#allocation2 + $0x138] sm:$0xff] %v762_v11  ;;  %v978_v11 = vadd.f32 %v9291_v48, %v9360_v16 }
 0x11a   : > { %v6692_v22 = vor.u32 %v8447_v18, %v6689_v19  ;;  %v8460_v24 = vld [vmem:[#allocation4 + $0x70] sm:$0xf0]  ;;  %1541 = vst [vmem:[#allocation4 + $0x1c] sm:$0xf] %v9365_v27  ;;  %v1300_v59 = vmax.f32 %v1252_v41, %v1276_v49 }
 0x11b   : > { %v6696_v26 = vor.u32 %v8460_v24, %v6695_v23  ;;  %1565 = vst [vmem:[#allocation4 + $0x20] sm:$0xf] %v1557_v36  ;;  %v1071_v17 = vld [vmem:[#allocation2 + $0x130] ss:$2 sm:$0xf] }
 0x11c   : > { %4267 = vmatmul.bf16.vlgmr.msrb.gmra.mxu0 %v6692_v22  ;;  %1401 = vst [vmem:[#allocation4 + $0x1f8] sm:$0xf] %v9370_v43  ;;  %v9377_v2 = vmax.f32 %v1300_v59, 0.0  ;;  %v1119_v19 = vld [vmem:[#allocation2 + $0x131] ss:$2 sm:$0xf] }
 0x11d   : > { %4296 = vmatmul.bf16.vlgmr.msrb.gmra.mxu1 %v6696_v26  ;;  %v529_v31 = vpop.f32.mrf.mxu0  ;;  %v764_v32 = vpop.f32.mrf.mxu1  ;;  %1593 = vst [vmem:[#allocation4 + $0x1b4] sm:$0xf] %v9348_v7  ;;  %v981_v7 = vadd.f32 %v9291_v48, %v980_v42  ;;  %v1103_v23 = vld [vmem:[#allocation2 + $0x71] ss:$2 sm:$0xf]  ;;  %v1249_v28 = vmax.f32 %v1071_v17, %v1119_v19 }
 0x11e   : > { %v530_v34 = vadd.f32 %v9168_v39, %v529_v31  ;;  %v765_v35 = vadd.f32 %v9173_v40, %v764_v32  ;;  %1348 = vst [vmem:[#allocation3 + $0x80] sm:$0xff] %v9377_v2  ;;  %v1241_v31 = vmax.f32 %v1055_v15, %v1103_v23  ;;  %v1529_v45 = vld [vmem:[#allocation3 + $0x52] sm:$0xff]  ;;  %v1492_v17 = vpack.c.bf16 %v9377_v2, %v9377_v2  ;;  %v8926_v23 = vld [vmem:[%s10985_s2] ss:$0 sm:$0xff] }
 0x11f   : > { %1349 = vst [vmem:[#allocation3 + $0x88] sm:$0xf] %v1325_v4  ;;  %v9389_v50 = vpack.c.bf16 %v1529_v45, %v1529_v45  ;;  %v1673_v54 = vld [vmem:[#allocation3 + $0x53] sm:$0xff] }
 0x120   : > { %565 = vst [vmem:[#allocation2 + $0x80] sm:$0xff] %v530_v34  ;;  %v985_v34 = vpop.f32.mrf.mxu2  ;;  %v1681_v56 = vpack.c.bf16 %v1673_v54, %v1673_v54 }
 0x121   : > { %801 = vst [vmem:[#allocation2 + $0x140] sm:$0xff] %v765_v35 }
 0x122   : > { %1028 = vst [vmem:[#allocation2 + $0x1b8] sm:$0xff] %v978_v11 }
 0x123   : > { %1029 = vst [vmem:[#allocation2 + $0x1c0] sm:$0xff] %v981_v7 }
 0x124   : > { %1545 = vst [vmem:[#allocation4 + $0x1ac] sm:$0xf] %v9389_v50 }
 0x125   : > { %v531_v57 = vpop.f32.mrf.mxu0  ;;  %v766_v58 = vpop.f32.mrf.mxu1  ;;  %1569 = vst [vmem:[#allocation4 + $0x1b0] sm:$0xf] %v9346_v6 }
 0x126   : > { %v532_v60 = vadd.f32 %v9168_v39, %v531_v57  ;;  %v767_v61 = vadd.f32 %v9173_v40, %v766_v58  ;;  %1421 = vst [vmem:[#allocation4 + $0x6c] sm:$0xf] %v9365_v27 }
 0x127   : > { %v1149_v0 = vld [vmem:[#allocation2 + $0x78] ss:$2 sm:$0xff]  ;;  %v1197_v1 = vld [vmem:[#allocation2 + $0x79] ss:$2 sm:$0xff]  ;;  %1689 = vst [vmem:[#allocation4 + $0x160] sm:$0xf] %v1681_v56 }
 0x128   : > { %v1264_v5 = vmax.f32 %v1149_v0, %v1197_v1  ;;  %v1165_v8 = vld [vmem:[#allocation2 + $0x138] ss:$2 sm:$0xff]  ;;  %v1213_v9 = vld [vmem:[#allocation2 + $0x139] ss:$2 sm:$0xff]  ;;  %566 = vst [vmem:[#allocation2 + $0x88] sm:$0xff] %v532_v60  ;;  %v987_v51 = vpop.f32.mrf.mxu2 }
 0x129   : > { %v1272_v10 = vmax.f32 %v1165_v8, %v1213_v9  ;;  %802 = vst [vmem:[#allocation2 + $0x148] sm:$0xff] %v767_v61 }
 0x12a   : > { %v1288_v13 = vmax.f32 %v1240_v3, %v1264_v5  ;;  %v1131_v2 = vld [vmem:[#allocation2 + $0x1c1] ss:$2 sm:$0xf]  ;;  %1500 = vst [vmem:[#allocation4 + $0x2d0] sm:$0xf] %v1492_v17 }
 0x12b   : > { %v1296_v14 = vmax.f32 %v1248_v63, %v1272_v10  ;;  %v983_v63 = vadd.f32 %v9291_v48, %v9381_v12  ;;  %v986_v12 = vadd.f32 %v9291_v48, %v985_v34  ;;  %1641 = vst [vmem:[#allocation4 + $0x158] sm:$0xf] %v9370_v43 }
 0x12c   : > { %v1312_v18 = vmax.f32 %v1288_v13, 0.0  ;;  %v988_v13 = vadd.f32 %v9291_v48, %v987_v51  ;;  %1665 = vst [vmem:[#allocation4 + $0x15c] sm:$0xf] %v9389_v50 }
 0x12d   : > { %v1320_v20 = vmax.f32 %v1296_v14, 0.0  ;;  %v534_v21 = vpop.f32.mrf.mxu0  ;;  %v769_v22 = vpop.f32.mrf.mxu1  ;;  %1030 = vst [vmem:[#allocation2 + $0x1c8] sm:$0xff] %v983_v63 }
 0x12e   : > { %1336 = vst [vmem:[#allocation3 + $0x20] sm:$0xff] %v1312_v18  ;;  %v535_v16 = vadd.f32 %v9168_v39, %v534_v21  ;;  %v770_v24 = vadd.f32 %v9173_v40, %v769_v22  ;;  %v1486_v26 = vpack.c.bf16 %v1312_v18, %v1312_v18  ;;  %v8925_v21 = vld [vmem:[%s10985_s2] ss:$0 sm:$0xff] }
 0x12f   : > { %1344 = vst [vmem:[#allocation3 + $0x60] sm:$0xff] %v1320_v20  ;;  %v1151_v25 = vld [vmem:[#allocation2 + $0x88] ss:$2 sm:$0xf]  ;;  %v1490_v36 = vpack.c.bf16 %v1320_v20, %v1320_v20 }
 0x130   : > { %v1199_v29 = vld [vmem:[#allocation2 + $0x89] ss:$2 sm:$0xf]  ;;  %v1167_v30 = vld [vmem:[#allocation2 + $0x148] ss:$2 sm:$0xf]  ;;  %v990_v6 = vpop.f32.mrf.mxu2 }
 0x131   : > { %v1265_v32 = vmax.f32 %v1151_v25, %v1199_v29  ;;  %v1215_v33 = vld [vmem:[#allocation2 + $0x149] ss:$2 sm:$0xf]  ;;  %567 = vst [vmem:[#allocation2 + $0x90] sm:$0xff] %v535_v16  ;;  %v991_v7 = vadd.f32 %v9291_v48, %v990_v6  ;;  %v8561_v6 = vld [vmem:[%s10986_s3 + $0x78] sm:$0xff] }
 0x132   : > { %v1273_v35 = vmax.f32 %v1167_v30, %v1215_v33  ;;  %803 = vst [vmem:[#allocation2 + $0x150] sm:$0xff] %v770_v24  ;;  %v1083_v20 = vld [vmem:[#allocation2 + $0x1c0] ss:$2 sm:$0xf]  ;;  %4201 = vmatpush.bf16.msrb.mxu3 %v8561_v6  ;;  %v8557_v6 = vld [vmem:[%s10986_s3 + $0x58] sm:$0xff] }
 0x133   : > { %v1289_v37 = vmax.f32 %v1241_v31, %v1265_v32  ;;  %1494 = vst [vmem:[#allocation4 + $0x78] sm:$0xf] %v1486_v26  ;;  %v1255_v29 = vmax.f32 %v1083_v20, %v1131_v2 }
 0x134   : > { %v1297_v38 = vmax.f32 %v1249_v28, %v1273_v35  ;;  %1374 = vst [vmem:[#allocation4 + $0xc8] sm:$0xf] %v1486_v26 }
 0x135   : > { %v1313_v41 = vmax.f32 %v1289_v37, 0.0  ;;  %v536_v42 = vpop.f32.mrf.mxu0  ;;  %v771_v44 = vpop.f32.mrf.mxu1  ;;  %1498 = vst [vmem:[#allocation4 + $0x208] sm:$0xf] %v1490_v36 }
 0x136   : > { %v1321_v46 = vmax.f32 %v1297_v38, 0.0  ;;  %v537_v47 = vadd.f32 %v9168_v39, %v536_v42  ;;  %v772_v49 = vadd.f32 %v9173_v40, %v771_v44  ;;  %1378 = vst [vmem:[#allocation4 + $0x258] sm:$0xf] %v1490_v36 }
 0x137   : > { %1337 = vst [vmem:[#allocation3 + $0x28] sm:$0xf] %v1313_v41 }
 0x138   : > { %1345 = vst [vmem:[#allocation3 + $0x68] sm:$0xf] %v1321_v46  ;;  %v992_v14 = vpop.f32.mrf.mxu2 }
 0x139   : > { %568 = vst [vmem:[#allocation2 + $0x98] sm:$0xff] %v537_v47  ;;  %v993_v15 = vadd.f32 %v9291_v48, %v992_v14 }
 0x13a   : > { %804 = vst [vmem:[#allocation2 + $0x158] sm:$0xff] %v772_v49  ;;  %v6697_v53 = vld [vmem:[#allocation4 + $0x74] sm:$0xf0] }
 0x13b   : > { %v6700_v55 = vor.u32 %v8448_v52, %v6697_v53  ;;  %1031 = vst [vmem:[#allocation2 + $0x1d0] sm:$0xff] %v986_v12 }
 0x13c   : > { %1032 = vst [vmem:[#allocation2 + $0x1d8] sm:$0xff] %v988_v13  ;;  %v8560_v13 = vld [vmem:[%s10986_s3 + $0x70] sm:$0xff] }
 0x13d   : > { %v539_v57 = vpop.f32.mrf.mxu0  ;;  %v774_v58 = vpop.f32.mrf.mxu1  ;;  %4325 = vmatmul.bf16.vlgmr.msrb.gmra.mxu2 %v6700_v55  ;;  %1033 = vst [vmem:[#allocation2 + $0x1e0] sm:$0xff] %v991_v7  ;;  %4202 = vmatpush.bf16.msrb.mxu3 %v8560_v13 }
 0x13e   : > { %v540_v59 = vadd.f32 %v9168_v39, %v539_v57  ;;  %v775_v60 = vadd.f32 %v9173_v40, %v774_v58  ;;  %v1430_v61 = vld [vmem:[#allocation3 + $0x23] sm:$0xff]  ;;  %1034 = vst [vmem:[#allocation2 + $0x1e8] sm:$0xff] %v993_v15  ;;  %v8624_v15 = vld [vmem:[%s10986_s3 + $0x270] sm:$0xff] }
 0x13f   : > { %v1454_v62 = vld [vmem:[#allocation3 + $0x24] sm:$0xff]  ;;  %v9398_v0 = vpack.c.bf16 %v1430_v61, %v1430_v61  ;;  %1425 = vst [vmem:[#allocation4 + $0x1fc] sm:$0xf] %v9389_v50 }
 0x140   : > { %v1434_v1 = vld [vmem:[#allocation3 + $0x63] sm:$0xff]  ;;  %569 = vst [vmem:[#allocation2 + $0xa0] sm:$0xff] %v540_v59  ;;  %v1462_v5 = vpack.c.bf16 %v1454_v62, %v1454_v62  ;;  %v995_v26 = vpop.f32.mrf.mxu2  ;;  %v1057_v41 = vld [vmem:[#allocation2 + $0x90] ss:$2 sm:$0xff]  ;;  %v1105_v42 = vld [vmem:[#allocation2 + $0x91] ss:$2 sm:$0xff] }
 0x141   : > { %v1458_v3 = vld [vmem:[#allocation3 + $0x64] sm:$0xff]  ;;  %805 = vst [vmem:[#allocation2 + $0x160] sm:$0xff] %v775_v60  ;;  %v9400_v8 = vpack.c.bf16 %v1434_v1, %v1434_v1  ;;  %v996_v32 = vadd.f32 %v9291_v48, %v995_v26  ;;  %v1073_v36 = vld [vmem:[#allocation2 + $0x150] ss:$2 sm:$0xff]  ;;  %v1121_v37 = vld [vmem:[#allocation2 + $0x151] ss:$2 sm:$0xff]  ;;  %v1242_v56 = vmax.f32 %v1057_v41, %v1105_v42 }
 0x142   : > { %v9402_v9 = vpack.c.bf16 %v1458_v3, %v1458_v3  ;;  %1446 = vst [vmem:[#allocation4 + $0xd4] sm:$0xf] %v9398_v0  ;;  %v1526_v24 = vld [vmem:[#allocation3 + $0x22] sm:$0xff]  ;;  %v1250_v52 = vmax.f32 %v1073_v36, %v1121_v37 }
 0x143   : > { %1470 = vst [vmem:[#allocation4 + $0xd8] sm:$0xf] %v1462_v5  ;;  %v9421_v28 = vpack.c.bf16 %v1526_v24, %v1526_v24  ;;  %v1177_v30 = vld [vmem:[#allocation2 + $0x1c8] ss:$2 sm:$0xff]  ;;  %v1225_v31 = vld [vmem:[#allocation2 + $0x1c9] ss:$2 sm:$0xff] }
 0x144   : > { %1450 = vst [vmem:[#allocation4 + $0x264] sm:$0xf] %v9400_v8  ;;  %v1278_v33 = vmax.f32 %v1177_v30, %v1225_v31  ;;  %v1179_v34 = vld [vmem:[#allocation2 + $0x1d8] ss:$2 sm:$0xf]  ;;  %v1530_v26 = vld [vmem:[#allocation3 + $0x62] sm:$0xff] }
 0x145   : > { %v541_v27 = vpop.f32.mrf.mxu0  ;;  %v776_v4 = vpop.f32.mrf.mxu1  ;;  %1474 = vst [vmem:[#allocation4 + $0x268] sm:$0xf] %v9402_v9  ;;  %v1227_v35 = vld [vmem:[#allocation2 + $0x1d9] ss:$2 sm:$0xf]  ;;  %v8623_v36 = vld [vmem:[%s10986_s3 + $0x268] sm:$0xff]  ;;  %v9448_v37 = vpack.c.bf16 %v1530_v26, %v1530_v26 }
 0x146   : > { %v542_v10 = vadd.f32 %v9168_v39, %v541_v27  ;;  %v777_v11 = vadd.f32 %v9173_v40, %v776_v4  ;;  %v1081_v39 = vld [vmem:[#allocation2 + $0x1b0] ss:$2 sm:$0xff]  ;;  %v1129_v40 = vld [vmem:[#allocation2 + $0x1b1] ss:$2 sm:$0xff]  ;;  %1590 = vst [vmem:[#allocation4 + $0x88] sm:$0xf] %v1462_v5  ;;  %v1279_v38 = vmax.f32 %v1179_v34, %v1227_v35 }
 0x147   : > { %v1254_v25 = vmax.f32 %v1081_v39, %v1129_v40  ;;  %1035 = vst [vmem:[#allocation2 + $0x1f0] sm:$0xff] %v996_v32  ;;  %v1059_v3 = vld [vmem:[#allocation2 + $0xa0] ss:$2 sm:$0xf]  ;;  %v6779_v32 = vld [vmem:[#allocation4 + $0xc8] sm:$0xf] }
 0x148   : > { %570 = vst [vmem:[#allocation2 + $0xa8] sm:$0xff] %v542_v10  ;;  %v1303_v51 = vmax.f32 %v1255_v29, %v1279_v38  ;;  %v997_v63 = vpop.f32.mrf.mxu2  ;;  %v1075_v5 = vld [vmem:[#allocation2 + $0x160] ss:$2 sm:$0xf]  ;;  %v8625_v10 = vld [vmem:[%s10986_s3 + $0x278] sm:$0xff]  ;;  %v8559_v35 = vld [vmem:[%s10986_s3 + $0x68] sm:$0xff] }
 0x149   : > { %806 = vst [vmem:[#allocation2 + $0x168] sm:$0xff] %v777_v11  ;;  %v1302_v46 = vmax.f32 %v1254_v25, %v1278_v33  ;;  %v1123_v27 = vld [vmem:[#allocation2 + $0x161] ss:$2 sm:$0xf]  ;;  %v998_v14 = vadd.f32 %v9291_v48, %v997_v63  ;;  %4433 = vmatpush.bf16.msra.mxu2 %v8625_v10  ;;  %v1085_v33 = vld [vmem:[#allocation2 + $0x1e0] ss:$2 sm:$0xff]  ;;  %4203 = vmatpush.bf16.msrb.mxu3 %v8559_v35 }
 0x14a   : > { %1542 = vst [vmem:[#allocation4 + $0x80] sm:$0xf] %v9421_v28  ;;  %v1327_v60 = vmax.f32 %v1303_v51, 0.0  ;;  %v1107_v11 = vld [vmem:[#allocation2 + $0xa1] ss:$2 sm:$0xf]  ;;  %v1251_v17 = vmax.f32 %v1075_v5, %v1123_v27 }
 0x14b   : > { %1566 = vst [vmem:[#allocation4 + $0x84] sm:$0xf] %v9398_v0  ;;  %v1326_v55 = vmax.f32 %v1302_v46, 0.0  ;;  %v6797_v34 = vld [vmem:[#allocation4 + $0x13c] sm:$0xf0]  ;;  %v8621_v27 = vld [vmem:[%s10986_s3 + $0x258] sm:$0xff] }
 0x14c   : > { %1351 = vst [vmem:[#allocation3 + $0x98] sm:$0xf] %v1327_v60  ;;  %v1133_v38 = vld [vmem:[#allocation2 + $0x1e1] ss:$2 sm:$0xff] }
 0x14d   : > { %v544_v18 = vpop.f32.mrf.mxu0  ;;  %v779_v19 = vpop.f32.mrf.mxu1  ;;  %1350 = vst [vmem:[#allocation3 + $0x90] sm:$0xff] %v1326_v55  ;;  %4434 = vmatpush.bf16.msra.mxu2 %v8624_v15  ;;  %v8558_v51 = vld [vmem:[%s10986_s3 + $0x60] sm:$0xff]  ;;  %v8615_v15 = vld [vmem:[%s10986_s3 + $0x228] sm:$0xff] }
 0x14e   : > { %v545_v22 = vadd.f32 %v8925_v21, %v544_v18  ;;  %v780_v16 = vadd.f32 %v8926_v23, %v779_v19  ;;  %v1243_v19 = vmax.f32 %v1059_v3, %v1107_v11  ;;  %1036 = vst [vmem:[#allocation2 + $0x1f8] sm:$0xff] %v998_v14  ;;  %4204 = vmatpush.bf16.msrb.mxu3 %v8558_v51  ;;  %v1135_v63 = vld [vmem:[#allocation2 + $0x1f1] ss:$2 sm:$0xf]  ;;  %v8607_v14 = vld [vmem:[%s10986_s3 + $0x1e8] sm:$0xff]  ;;  %v8605_v51 = vld [vmem:[%s10986_s3 + $0x1d8] sm:$0xff] }
 0x14f   : > { %1594 = vst [vmem:[#allocation4 + $0x218] sm:$0xf] %v9402_v9  ;;  %v8609_v9 = vld [vmem:[%s10986_s3 + $0x1f8] sm:$0xff]  ;;  %v8556_v11 = vld [vmem:[%s10986_s3 + $0x50] sm:$0xff]  ;;  %v8522_v43 = vld [vmem:[#allocation4 + $0x264] sm:$0xf] }
 0x150   : > { %571 = vst [vmem:[#allocation2 + $0xb0] sm:$0xff] %v545_v22  ;;  %4375 = vmatpush.bf16.msra.mxu0 %v8609_v9  ;;  %v9527_v9 = vld [vmem:[%s10985_s2] ss:$0 sm:$0xff] }
 0x151   : > { %807 = vst [vmem:[#allocation2 + $0x170] sm:$0xff] %v780_v16  ;;  %v1382_v16 = vld [vmem:[#allocation3 + $0x21] sm:$0xff]  ;;  %4435 = vmatpush.bf16.msra.mxu2 %v8623_v36 }
 0x152   : > { %v9440_v30 = vpack.c.bf16 %v1382_v16, %v1382_v16  ;;  %1546 = vst [vmem:[#allocation4 + $0x210] sm:$0xf] %v9448_v37  ;;  %4205 = vmatpush.bf16.msrb.mxu3 %v8557_v6 }
 0x153   : > { %1570 = vst [vmem:[#allocation4 + $0x214] sm:$0xf] %v9400_v8 }
 0x154   : > { %1398 = vst [vmem:[#allocation4 + $0xcc] sm:$0xf] %v9440_v30 }
 0x155   : > { %v546_v44 = vpop.f32.mrf.mxu0  ;;  %v781_v45 = vpop.f32.mrf.mxu1  ;;  %1638 = vst [vmem:[#allocation4 + $0x2c] sm:$0xf] %v9440_v30 }
 0x156   : > { %v547_v47 = vadd.f32 %v8925_v21, %v546_v44  ;;  %v782_v49 = vadd.f32 %v8926_v23, %v781_v45  ;;  %v1000_v23 = vpop.f32.mrf.mxu2  ;;  %v1386_v45 = vld [vmem:[#allocation3 + $0x61] sm:$0xff]  ;;  %4206 = vmatpush.bf16.msrb.mxu3 %v8556_v11  ;;  %1662 = vst [vmem:[#allocation4 + $0x30] sm:$0xf] %v9421_v28 }
 0x157   : > { %v1153_v53 = vld [vmem:[#allocation2 + $0xa8] ss:$2 sm:$0xff]  ;;  %v1201_v54 = vld [vmem:[#allocation2 + $0xa9] ss:$2 sm:$0xff]  ;;  %v1001_v2 = vadd.f32 %v9291_v48, %v1000_v23  ;;  %1422 = vst [vmem:[#allocation4 + $0xd0] sm:$0xf] %v9421_v28 }
 0x158   : > { %v1266_v57 = vmax.f32 %v1153_v53, %v1201_v54  ;;  %v1169_v58 = vld [vmem:[#allocation2 + $0x168] ss:$2 sm:$0xff]  ;;  %v1217_v59 = vld [vmem:[#allocation2 + $0x169] ss:$2 sm:$0xff]  ;;  %572 = vst [vmem:[#allocation2 + $0xb8] sm:$0xff] %v547_v47  ;;  %v1256_v47 = vmax.f32 %v1085_v33, %v1133_v38 }
 0x159   : > { %v1274_v61 = vmax.f32 %v1169_v58, %v1217_v59  ;;  %808 = vst [vmem:[#allocation2 + $0x178] sm:$0xff] %v782_v49  ;;  %v8617_v58 = vld [vmem:[%s10986_s3 + $0x238] sm:$0xff]  ;;  %v8508_v23 = vld [vmem:[#allocation4 + $0x1f0] sm:$0xf0] }
 0x15a   : > { %v1290_v62 = vmax.f32 %v1242_v56, %v1266_v57  ;;  %1037 = vst [vmem:[#allocation2 + $0x200] sm:$0xff] %v1001_v2  ;;  %v9463_v56 = vpack.c.bf16 %v1386_v45, %v1386_v45  ;;  %4404 = vmatpush.bf16.msra.mxu1 %v8617_v58  ;;  %v8498_v2 = vld [vmem:[#allocation4 + $0x1a4] sm:$0xf]  ;;  %v6795_v33 = vld [vmem:[#allocation4 + $0xd8] sm:$0xf] }
 0x15b   : > { %v1298_v1 = vmax.f32 %v1250_v52, %v1274_v61  ;;  %v8622_v52 = vld [vmem:[%s10986_s3 + $0x260] sm:$0xff]  ;;  %v8608_v61 = vld [vmem:[%s10986_s3 + $0x1f0] sm:$0xff]  ;;  %1690 = vst [vmem:[#allocation4 + $0x1c4] sm:$0xf] %v9400_v8 }
 0x15c   : > { %v1314_v0 = vmax.f32 %v1290_v62, 0.0  ;;  %4436 = vmatpush.bf16.msra.mxu2 %v8622_v52  ;;  %v1087_v62 = vld [vmem:[#allocation2 + $0x1f0] ss:$2 sm:$0xf]  ;;  %1402 = vst [vmem:[#allocation4 + $0x25c] sm:$0xf] %v9463_v56  ;;  %4376 = vmatpush.bf16.msra.mxu0 %v8608_v61 }
 0x15d   : > { %v1322_v4 = vmax.f32 %v1298_v1, 0.0  ;;  %v8614_v45 = vld [vmem:[%s10986_s3 + $0x220] sm:$0xff]  ;;  %1642 = vst [vmem:[#allocation4 + $0x1bc] sm:$0xf] %v9463_v56  ;;  %v1501_v8 = vld [vmem:[#allocation3 + $0x11] sm:$0xff] }
 0x15e   : > { %1338 = vst [vmem:[#allocation3 + $0x30] sm:$0xff] %v1314_v0  ;;  %v1367_v12 = vpack.c.bf16 %v1314_v0, %v1314_v0  ;;  %v1002_v49 = vpop.f32.mrf.mxu2  ;;  %v8616_v0 = vld [vmem:[%s10986_s3 + $0x230] sm:$0xff]  ;;  %v8554_v58 = vld [vmem:[%s10986_s3 + $0x40] sm:$0xff] }
 0x15f   : > { %1346 = vst [vmem:[#allocation3 + $0x70] sm:$0xff] %v1322_v4  ;;  %v1155_v7 = vld [vmem:[#allocation2 + $0xb8] ss:$2 sm:$0xf]  ;;  %v1371_v18 = vpack.c.bf16 %v1322_v4, %v1322_v4  ;;  %v1003_v55 = vadd.f32 %v9291_v48, %v1002_v49  ;;  %4405 = vmatpush.bf16.msra.mxu1 %v8616_v0  ;;  %v8555_v49 = vld [vmem:[%s10986_s3 + $0x48] sm:$0xff]  ;;  %v1720_v56 = vld [vmem:[#allocation3 + $0x40] sm:$0xff] }
 0x160   : > { %v1203_v39 = vld [vmem:[#allocation2 + $0xb9] ss:$2 sm:$0xf]  ;;  %v1171_v40 = vld [vmem:[#allocation2 + $0x178] ss:$2 sm:$0xf]  ;;  %4437 = vmatpush.bf16.msra.mxu2 %v8621_v27  ;;  %4377 = vmatpush.bf16.msra.mxu0 %v8607_v14 }
 0x161   : > { %v1267_v20 = vmax.f32 %v1155_v7, %v1203_v39  ;;  %v1219_v21 = vld [vmem:[#allocation2 + $0x179] ss:$2 sm:$0xf]  ;;  %1375 = vst [vmem:[#allocation4 + $0x12c] sm:$0xf] %v1367_v12  ;;  %4207 = vmatpush.bf16.msrb.mxu3 %v8555_v49  ;;  %v1532_v61 = vld [vmem:[#allocation3 + $0x82] sm:$0xff] }
 0x162   : > { %v1275_v22 = vmax.f32 %v1171_v40, %v1219_v21  ;;  %1495 = vst [vmem:[#allocation4 + $0xdc] sm:$0xf] %v1367_v12  ;;  %v1181_v53 = vld [vmem:[#allocation2 + $0x1f8] ss:$2 sm:$0xff]  ;;  %v1229_v54 = vld [vmem:[#allocation2 + $0x1f9] ss:$2 sm:$0xff]  ;;  %v1257_v40 = vmax.f32 %v1087_v62, %v1135_v63  ;;  %v9536_v63 = vpack.c.bf16 %v1532_v61, %v1532_v61 }
 0x163   : > { %v1291_v24 = vmax.f32 %v1243_v19, %v1267_v20  ;;  %1379 = vst [vmem:[#allocation4 + $0x2bc] sm:$0xf] %v1371_v18  ;;  %v1280_v57 = vmax.f32 %v1181_v53, %v1229_v54  ;;  %4406 = vmatpush.bf16.msra.mxu1 %v8615_v15  ;;  %v8613_v53 = vld [vmem:[%s10986_s3 + $0x218] sm:$0xff]  ;;  %v8619_v54 = vld [vmem:[%s10986_s3 + $0x248] sm:$0xff]  ;;  %v8604_v27 = vld [vmem:[%s10986_s3 + $0x1d0] sm:$0xff] }
 0x164   : > { %v1299_v25 = vmax.f32 %v1251_v17, %v1275_v22  ;;  %1499 = vst [vmem:[#allocation4 + $0x26c] sm:$0xf] %v1371_v18  ;;  %v6879_v22 = vld [vmem:[#allocation4 + $0x190] sm:$0xf]  ;;  %v8603_v14 = vld [vmem:[%s10986_s3 + $0x1c8] sm:$0xff] }
 0x165   : > { %v1315_v29 = vmax.f32 %v1291_v24, 0.0  ;;  %1038 = vst [vmem:[#allocation2 + $0x208] sm:$0xff] %v1003_v55  ;;  %v1304_v5 = vmax.f32 %v1256_v47, %v1280_v57  ;;  %v8472_v24 = vld [vmem:[#allocation4 + $0xd4] sm:$0xf]  ;;  %v6880_v35 = vor.u32 %v8508_v23, %v6879_v22  ;;  %v1580_v57 = vld [vmem:[#allocation3 + $0x84] sm:$0xff]  ;;  %4208 = vmatpush.bf16.msrb.mxu3 %v8554_v58 }
 0x166   : > { %v1323_v31 = vmax.f32 %v1299_v25, 0.0  ;;  %v1005_v17 = vpop.f32.mrf.mxu2  ;;  %v6897_v25 = vld [vmem:[#allocation4 + $0x204] sm:$0xf0]  ;;  %1548 = vst [vmem:[#allocation4 + $0x2d8] sm:$0xf] %v9536_v63 }
 0x167   : > { %1339 = vst [vmem:[#allocation3 + $0x38] sm:$0xf] %v1315_v29  ;;  %v1328_v10 = vmax.f32 %v1304_v5, 0.0  ;;  %v1006_v18 = vadd.f32 %v9291_v48, %v1005_v17  ;;  %v8620_v48 = vld [vmem:[%s10986_s3 + $0x250] sm:$0xff]  ;;  %4407 = vmatpush.bf16.msra.mxu1 %v8614_v45  ;;  %v8618_v5 = vld [vmem:[%s10986_s3 + $0x240] sm:$0xff]  ;;  %v8611_v15 = vld [vmem:[%s10986_s3 + $0x208] sm:$0xff] }
 0x168   : > { %1347 = vst [vmem:[#allocation3 + $0x78] sm:$0xf] %v1323_v31  ;;  %v8483_v41 = vld [vmem:[#allocation4 + $0x128] sm:$0xf0]  ;;  %4438 = vmatpush.bf16.msra.mxu2 %v8620_v48  ;;  %v6979_v22 = vld [vmem:[#allocation4 + $0x258] sm:$0xf] }
 0x169   : > { %v6780_v42 = vor.u32 %v8483_v41, %v6779_v32  ;;  %v8473_v44 = vld [vmem:[#allocation4 + $0xdc] sm:$0xf]  ;;  %1352 = vst [vmem:[#allocation3 + $0xa0] sm:$0xff] %v1328_v10  ;;  %v6900_v41 = vor.u32 %v8498_v2, %v6897_v25  ;;  %v8602_v2 = vld [vmem:[%s10986_s3 + $0x1c0] sm:$0xff] }
 0x16a   : > { %v6800_v46 = vor.u32 %v8473_v44, %v6797_v34  ;;  %1039 = vst [vmem:[#allocation2 + $0x210] sm:$0xff] %v1006_v18  ;;  %v8606_v44 = vld [vmem:[%s10986_s3 + $0x1e0] sm:$0xff] }
 0x16b   : > { %4185 = vmatmul.bf16.gmra.mxu3 %v6780_v42  ;;  %4378 = vmatpush.bf16.msra.mxu0 %v8606_v44  ;;  %v8523_v18 = vld [vmem:[#allocation4 + $0x26c] sm:$0xf]  ;;  %v8610_v25 = vld [vmem:[%s10986_s3 + $0x200] sm:$0xff]  ;;  %1666 = vst [vmem:[#allocation4 + $0x1c0] sm:$0xf] %v9448_v37 }
 0x16c   : > { %4330 = vmatmul.bf16.gmra.mxu2 %v6800_v46  ;;  %v1183_v20 = vld [vmem:[#allocation2 + $0x208] ss:$2 sm:$0xf]  ;;  %v1231_v21 = vld [vmem:[#allocation2 + $0x209] ss:$2 sm:$0xf]  ;;  %4408 = vmatpush.bf16.msra.mxu1 %v8613_v53 }
 0x16d   : > { %v1281_v16 = vmax.f32 %v1183_v20, %v1231_v21  ;;  %4439 = vmatpush.bf16.msra.mxu2 %v8619_v54  ;;  %v6997_v20 = vld [vmem:[#allocation4 + $0x2cc] sm:$0xf0]  ;;  %v8497_v21 = vld [vmem:[#allocation4 + $0x19c] sm:$0xf]  ;;  %1426 = vst [vmem:[#allocation4 + $0x260] sm:$0xf] %v9448_v37 }
 0x16e   : > { %v1431_v59 = vld [vmem:[#allocation3 + $0x33] sm:$0xff]  ;;  %v1007_v52 = vpop.f32.mrf.mxu2  ;;  %1668 = vst [vmem:[#allocation4 + $0x288] sm:$0xf] %v9536_v63 }
 0x16f   : > { %v1455_v60 = vld [vmem:[#allocation3 + $0x34] sm:$0xff]  ;;  %v1439_v1 = vpack.c.bf16 %v1431_v59, %v1431_v59  ;;  %v1305_v29 = vmax.f32 %v1257_v40, %v1281_v16  ;;  %v1008_v55 = vadd.f32 %v9527_v9, %v1007_v52  ;;  %v1588_v59 = vpack.c.bf16 %v1580_v57, %v1580_v57  ;;  %4379 = vmatpush.bf16.msra.mxu0 %v8605_v51  ;;  %v8533_v40 = vld [vmem:[#allocation4 + $0x2b8] sm:$0xf0]  ;;  %v6895_v16 = vld [vmem:[#allocation4 + $0x1a0] sm:$0xf] }
 0x170   : > { %v1463_v3 = vpack.c.bf16 %v1455_v60, %v1455_v60  ;;  %v1435_v4 = vld [vmem:[#allocation3 + $0x73] sm:$0xff]  ;;  %v1509_v52 = vpack.c.bf16 %v1501_v8, %v1501_v8  ;;  %v1744_v57 = vld [vmem:[#allocation3 + $0x41] sm:$0xff]  ;;  %1788 = vst [vmem:[#allocation4 + $0x238] sm:$0xf] %v9536_v63 }
 0x171   : > { %1447 = vst [vmem:[#allocation4 + $0x138] sm:$0xf] %v1439_v1  ;;  %v9485_v12 = vpack.c.bf16 %v1435_v4, %v1435_v4  ;;  %v1459_v13 = vld [vmem:[#allocation3 + $0x74] sm:$0xff]  ;;  %v1329_v42 = vmax.f32 %v1305_v29, 0.0  ;;  %4440 = vmatpush.bf16.msra.mxu2 %v8618_v5  ;;  %v7000_v29 = vor.u32 %v8523_v18, %v6997_v20  ;;  %v8449_v18 = vld [vmem:[#allocation4 + $0x1c] sm:$0xf] }
 0x172   : > { %v1383_v7 = vld [vmem:[#allocation3 + $0x31] sm:$0xff]  ;;  %1471 = vst [vmem:[#allocation4 + $0x13c] sm:$0xf] %v1463_v3  ;;  %v1467_v39 = vpack.c.bf16 %v1459_v13, %v1459_v13  ;;  %v8471_v20 = vld [vmem:[#allocation4 + $0xcc] sm:$0xf] }
 0x173   : > { %1451 = vst [vmem:[#allocation4 + $0x2c8] sm:$0xf] %v9485_v12  ;;  %v9495_v19 = vpack.c.bf16 %v1383_v7, %v1383_v7  ;;  %v1527_v31 = vld [vmem:[#allocation3 + $0x32] sm:$0xff]  ;;  %v6889_v7 = vld [vmem:[#allocation4 + $0x1fc] sm:$0xf0]  ;;  %4380 = vmatpush.bf16.msra.mxu0 %v8604_v27 }
 0x174   : > { %1475 = vst [vmem:[#allocation4 + $0x2cc] sm:$0xf] %v1467_v39  ;;  %v9501_v36 = vpack.c.bf16 %v1527_v31, %v1527_v31  ;;  %v1387_v46 = vld [vmem:[#allocation3 + $0x71] sm:$0xff]  ;;  %v6892_v23 = vor.u32 %v8497_v21, %v6889_v7 }
 0x175   : > { %1399 = vst [vmem:[#allocation4 + $0x130] sm:$0xf] %v9495_v19  ;;  %v9510_v47 = vpack.c.bf16 %v1387_v46, %v1387_v46  ;;  %v1531_v60 = vld [vmem:[#allocation3 + $0x72] sm:$0xff] }
 0x176   : > { %1591 = vst [vmem:[#allocation4 + $0xec] sm:$0xf] %v1463_v3  ;;  %v9534_v62 = vpack.c.bf16 %v1531_v60, %v1531_v60  ;;  %v1670_v3 = vld [vmem:[#allocation3 + $0x23] sm:$0xff]  ;;  %v1671_v6 = vld [vmem:[#allocation3 + $0x33] sm:$0xff]  ;;  %v1010_v11 = vpop.f32.mrf.mxu2  ;;  %v9597_v60 = vpack.c.bf16 %v1720_v56, %v1720_v56 }
 0x177   : > { %1567 = vst [vmem:[#allocation4 + $0xe8] sm:$0xf] %v1439_v1  ;;  %v1556_v1 = vld [vmem:[#allocation3 + $0x83] sm:$0xff]  ;;  %v8612_v4 = vld [vmem:[%s10986_s3 + $0x210] sm:$0xff]  ;;  %v1678_v10 = vpack.c.bf16 %v1670_v3, %v1670_v3  ;;  %v1679_v13 = vpack.c.bf16 %v1671_v6, %v1671_v6  ;;  %v1011_v17 = vadd.f32 %v9527_v9, %v1010_v11  ;;  %4381 = vmatpush.bf16.msra.mxu0 %v8603_v14  ;;  %v8657_v51 = vld [vmem:[%s10986_s3 + $0x378] sm:$0xff] }
 0x178   : > { %v6789_v26 = vld [vmem:[#allocation4 + $0x134] sm:$0xf0]  ;;  %1543 = vst [vmem:[#allocation4 + $0xe4] sm:$0xf] %v9501_v36  ;;  %v9542_v0 = vpack.c.bf16 %v1556_v1, %v1556_v1  ;;  %4409 = vmatpush.bf16.msra.mxu1 %v8612_v4  ;;  %v8568_v37 = vld [vmem:[%s10986_s3 + $0xb0] sm:$0xff]  ;;  %4549 = vmatpush.bf16.msrb.mxu2 %v8657_v51  ;;  %v1502_v1 = vld [vmem:[#allocation3 + $0x21] sm:$0xff]  ;;  %v1752_v3 = vpack.c.bf16 %v1744_v57, %v1744_v57 }
 0x179   : > { %v6792_v32 = vor.u32 %v8472_v24, %v6789_v26  ;;  %v8485_v34 = vld [vmem:[#allocation4 + $0x138] sm:$0xf0]  ;;  %1353 = vst [vmem:[#allocation3 + $0xa8] sm:$0xf] %v1329_v42  ;;  %v6980_v24 = vor.u32 %v8533_v40, %v6979_v22  ;;  %v1768_v42 = vld [vmem:[#allocation3 + $0x42] sm:$0xff]  ;;  %v1510_v6 = vpack.c.bf16 %v1502_v1, %v1502_v1  ;;  %v1769_v51 = vld [vmem:[#allocation3 + $0x52] sm:$0xff] }
 0x17a   : > { %v6796_v38 = vor.u32 %v8485_v34, %v6795_v33  ;;  %1403 = vst [vmem:[#allocation4 + $0x2c0] sm:$0xf] %v9510_v47  ;;  %v8446_v33 = vld [vmem:[#allocation4 + $0x4] sm:$0xf]  ;;  %v6681_v34 = vld [vmem:[#allocation4 + $0x64] sm:$0xf0] }
 0x17b   : > { %4272 = vmatmul.bf16.gmra.mxu0 %v6792_v32  ;;  %4190 = vmatmul.bf16.gmra.mxu3 %v6880_v35  ;;  %1595 = vst [vmem:[#allocation4 + $0x27c] sm:$0xf] %v1467_v39  ;;  %v8510_v39 = vld [vmem:[#allocation4 + $0x200] sm:$0xf0]  ;;  %v6989_v32 = vld [vmem:[#allocation4 + $0x2c4] sm:$0xf0] }
 0x17c   : > { %4301 = vmatmul.bf16.gmra.mxu1 %v6796_v38  ;;  %4335 = vmatmul.bf16.gmra.mxu2 %v6900_v41  ;;  %1040 = vst [vmem:[#allocation2 + $0x218] sm:$0xff] %v1008_v55  ;;  %v6896_v26 = vor.u32 %v8510_v39, %v6895_v16  ;;  %v8535_v28 = vld [vmem:[#allocation4 + $0x2c8] sm:$0xf0]  ;;  %v6713_v35 = vld [vmem:[#allocation4 + $0x84] sm:$0xf0]  ;;  %v6992_v50 = vor.u32 %v8522_v43, %v6989_v32  ;;  %v8649_v63 = vld [vmem:[%s10986_s3 + $0x338] sm:$0xff] }
 0x17d   : > { %1596 = vst [vmem:[#allocation4 + $0x2e0] sm:$0xf] %v1588_v59  ;;  %4410 = vmatpush.bf16.msra.mxu1 %v8611_v15  ;;  %4382 = vmatpush.bf16.msra.mxu0 %v8602_v2  ;;  %v6995_v38 = vld [vmem:[#allocation4 + $0x268] sm:$0xf]  ;;  %v6684_v41 = vor.u32 %v8446_v33, %v6681_v34  ;;  %v1776_v55 = vpack.c.bf16 %v1768_v42, %v1768_v42  ;;  %v6781_v7 = vld [vmem:[#allocation4 + $0x12c] sm:$0xf0] }
 0x17e   : > { %1547 = vst [vmem:[#allocation4 + $0x274] sm:$0xf] %v9534_v62  ;;  %v1012_v48 = vpop.f32.mrf.mxu2  ;;  %v1816_v40 = vld [vmem:[#allocation3 + $0x44] sm:$0xff]  ;;  %v6711_v22 = vld [vmem:[#allocation4 + $0x20] sm:$0xf]  ;;  %v8640_v33 = vld [vmem:[%s10986_s3 + $0x2f0] sm:$0xff] }
 0x17f   : > { %1571 = vst [vmem:[#allocation4 + $0x278] sm:$0xf] %v9485_v12  ;;  %v1013_v31 = vadd.f32 %v9527_v9, %v1012_v48  ;;  %v6813_v16 = vld [vmem:[#allocation4 + $0x14c] sm:$0xf0]  ;;  %v8566_v32 = vld [vmem:[%s10986_s3 + $0xa0] sm:$0xff]  ;;  %v8653_v8 = vld [vmem:[%s10986_s3 + $0x358] sm:$0xff] }
 0x180   : > { %1572 = vst [vmem:[#allocation4 + $0x2dc] sm:$0xf] %v9542_v0  ;;  %v8648_v34 = vld [vmem:[%s10986_s3 + $0x330] sm:$0xff]  ;;  %v1888_v43 = vld [vmem:[#allocation3 + $0x42] sm:$0xff] }
 0x181   : > { %1686 = vst [vmem:[#allocation4 + $0x34] sm:$0xf] %v1678_v10  ;;  %4411 = vmatpush.bf16.msra.mxu1 %v8610_v25  ;;  %v6705_v10 = vld [vmem:[#allocation4 + $0x7c] sm:$0xf0]  ;;  %v1896_v42 = vpack.c.bf16 %v1888_v43, %v1888_v43 }
 0x182   : > { %1041 = vst [vmem:[#allocation2 + $0x220] sm:$0xff] %v1011_v17  ;;  %v8475_v17 = vld [vmem:[#allocation4 + $0xec] sm:$0xf]  ;;  %v6708_v21 = vor.u32 %v8449_v18, %v6705_v10  ;;  %v8638_v56 = vld [vmem:[%s10986_s3 + $0x2e0] sm:$0xff]  ;;  %v8644_v10 = vld [vmem:[%s10986_s3 + $0x310] sm:$0xff] }
 0x183   : > { %1687 = vst [vmem:[#allocation4 + $0x98] sm:$0xf] %v1679_v13  ;;  %v1089_v44 = vld [vmem:[#allocation2 + $0x210] ss:$2 sm:$0xff]  ;;  %v1137_v45 = vld [vmem:[#allocation2 + $0x211] ss:$2 sm:$0xff]  ;;  %v6816_v25 = vor.u32 %v8475_v17, %v6813_v16 }
 0x184   : > { %1639 = vst [vmem:[#allocation4 + $0x90] sm:$0xf] %v9495_v19  ;;  %v1258_v53 = vmax.f32 %v1089_v44, %v1137_v45  ;;  %v8462_v13 = vld [vmem:[#allocation4 + $0x80] sm:$0xf0]  ;;  %v6913_v44 = vld [vmem:[#allocation4 + $0x214] sm:$0xf0] }
 0x185   : > { %1663 = vst [vmem:[#allocation4 + $0x94] sm:$0xf] %v9501_v36  ;;  %v6712_v2 = vor.u32 %v8462_v13, %v6711_v22  ;;  %4520 = vmatpush.bf16.msrb.mxu1 %v8649_v63  ;;  %v8474_v45 = vld [vmem:[#allocation4 + $0xe4] sm:$0xf]  ;;  %v8635_v13 = vld [vmem:[%s10986_s3 + $0x2c8] sm:$0xff]  ;;  %v1913_v18 = vld [vmem:[#allocation3 + $0x53] sm:$0xff] }
 0x186   : > { %1042 = vst [vmem:[#allocation2 + $0x228] sm:$0xff] %v1013_v31  ;;  %v1015_v30 = vpop.f32.mrf.mxu2  ;;  %v8641_v31 = vld [vmem:[%s10986_s3 + $0x2f8] sm:$0xff]  ;;  %v8643_v17 = vld [vmem:[%s10986_s3 + $0x308] sm:$0xff] }
 0x187   : > { %1423 = vst [vmem:[#allocation4 + $0x134] sm:$0xf] %v9501_v36  ;;  %v1016_v19 = vadd.f32 %v9527_v9, %v1015_v30  ;;  %v8450_v36 = vld [vmem:[#allocation4 + $0x24] sm:$0xf]  ;;  %v8655_v30 = vld [vmem:[%s10986_s3 + $0x368] sm:$0xff]  ;;  %4491 = vmatpush.bf16.msrb.mxu0 %v8641_v31  ;;  %v1889_v16 = vld [vmem:[#allocation3 + $0x52] sm:$0xff] }
 0x188   : > { %1691 = vst [vmem:[#allocation4 + $0x228] sm:$0xf] %v9485_v12  ;;  %v6996_v12 = vor.u32 %v8535_v28, %v6995_v38  ;;  %v6716_v46 = vor.u32 %v8450_v36, %v6713_v35  ;;  %v8654_v28 = vld [vmem:[%s10986_s3 + $0x360] sm:$0xff]  ;;  %v1721_v35 = vld [vmem:[#allocation3 + $0x50] sm:$0xff]  ;;  %v8565_v36 = vld [vmem:[%s10986_s3 + $0x98] sm:$0xff]  ;;  %v1897_v63 = vpack.c.bf16 %v1889_v16, %v1889_v16 }
 0x189   : > { %1043 = vst [vmem:[#allocation2 + $0x230] sm:$0xff] %v1016_v19  ;;  %v1091_v5 = vld [vmem:[#allocation2 + $0x220] ss:$2 sm:$0xf]  ;;  %v1729_v38 = vpack.c.bf16 %v1721_v35, %v1721_v35  ;;  %4521 = vmatpush.bf16.msrb.mxu1 %v8648_v34  ;;  %v8459_v34 = vld [vmem:[#allocation4 + $0x68] sm:$0xf0] }
 0x18a   : > { %1643 = vst [vmem:[#allocation4 + $0x220] sm:$0xf] %v9510_v47  ;;  %v8569_v47 = vld [vmem:[%s10986_s3 + $0xb8] sm:$0xff]  ;;  %v1139_v27 = vld [vmem:[#allocation2 + $0x221] ss:$2 sm:$0xf] }
 0x18b   : > { %4277 = vmatmul.bf16.gmra.mxu0 %v6892_v23  ;;  %4195 = vmatmul.bf16.gmra.mxu3 %v6980_v24  ;;  %1667 = vst [vmem:[#allocation4 + $0x224] sm:$0xf] %v9534_v62  ;;  %v1259_v11 = vmax.f32 %v1091_v5, %v1139_v27  ;;  %v6784_v23 = vor.u32 %v8471_v20, %v6781_v7  ;;  %v8637_v5 = vld [vmem:[%s10986_s3 + $0x2d8] sm:$0xff]  ;;  %v8562_v27 = vld [vmem:[%s10986_s3 + $0x80] sm:$0xff]  ;;  %v6905_v7 = vld [vmem:[#allocation4 + $0x20c] sm:$0xf0] }
 0x18c   : > { %4306 = vmatmul.bf16.gmra.mxu1 %v6896_v26  ;;  %4340 = vmatmul.bf16.gmra.mxu2 %v7000_v29  ;;  %1427 = vst [vmem:[#allocation4 + $0x2c4] sm:$0xf] %v9534_v62  ;;  %v1824_v26 = vpack.c.bf16 %v1816_v40, %v1816_v40  ;;  %v1912_v29 = vld [vmem:[#allocation3 + $0x43] sm:$0xff]  ;;  %v1817_v40 = vld [vmem:[#allocation3 + $0x54] sm:$0xff]  ;;  %v8525_v20 = vld [vmem:[#allocation4 + $0x27c] sm:$0xf] }
 0x18d   : > { %1692 = vst [vmem:[#allocation4 + $0x28c] sm:$0xf] %v9542_v0  ;;  %4230 = vmatpush.bf16.msra.mxu3 %v8569_v47  ;;  %v1920_v19 = vpack.c.bf16 %v1912_v29, %v1912_v29  ;;  %4492 = vmatpush.bf16.msrb.mxu0 %v8640_v33  ;;  %v6811_v47 = vld [vmem:[#allocation4 + $0xe8] sm:$0xf]  ;;  %v1825_v22 = vpack.c.bf16 %v1817_v40, %v1817_v40  ;;  %v7005_v33 = vld [vmem:[#allocation4 + $0x2d4] sm:$0xf0] }
 0x18e   : > { %v1017_v49 = vpop.f32.mrf.mxu2  ;;  %1517 = vst [vmem:[#allocation4 + $0x18] sm:$0xf] %v1509_v52  ;;  %v1745_v52 = vld [vmem:[#allocation3 + $0x51] sm:$0xff]  ;;  %v8537_v35 = vld [vmem:[#allocation4 + $0x2d8] sm:$0xf0]  ;;  %v8671_v16 = vld [vmem:[%s10986_s3 + $0x3e8] sm:$0xff] }
 0x18f   : > { %v1018_v54 = vadd.f32 %v9527_v9, %v1017_v49  ;;  %v8656_v9 = vld [vmem:[%s10986_s3 + $0x370] sm:$0xff]  ;;  %1784 = vst [vmem:[#allocation4 + $0xa8] sm:$0xf] %v1776_v55  ;;  %v8487_v49 = vld [vmem:[#allocation4 + $0x148] sm:$0xf0]  ;;  %v1753_v55 = vpack.c.bf16 %v1745_v52, %v1745_v52 }
 0x190   : > { %v1185_v58 = vld [vmem:[#allocation2 + $0x228] ss:$2 sm:$0xff]  ;;  %v1233_v59 = vld [vmem:[#allocation2 + $0x229] ss:$2 sm:$0xff]  ;;  %4550 = vmatpush.bf16.msrb.mxu2 %v8656_v9  ;;  %1736 = vst [vmem:[#allocation4 + $0xa0] sm:$0xf] %v9597_v60  ;;  %v6812_v9 = vor.u32 %v8487_v49, %v6811_v47 }
 0x191   : > { %v1282_v61 = vmax.f32 %v1185_v58, %v1233_v59  ;;  %1044 = vst [vmem:[#allocation2 + $0x238] sm:$0xff] %v1018_v54  ;;  %4231 = vmatpush.bf16.msra.mxu3 %v8568_v37  ;;  %v8496_v54 = vld [vmem:[#allocation4 + $0x194] sm:$0xf]  ;;  %v1777_v37 = vpack.c.bf16 %v1769_v51, %v1769_v51  ;;  %v6729_v43 = vld [vmem:[#allocation4 + $0x94] sm:$0xf0]  ;;  %v1598_v47 = vld [vmem:[#allocation3 + $0x20] sm:$0xff] }
 0x192   : > { %1518 = vst [vmem:[#allocation4 + $0x7c] sm:$0xf] %v1510_v6  ;;  %v8500_v59 = vld [vmem:[#allocation4 + $0x1b4] sm:$0xf]  ;;  %v8651_v6 = vld [vmem:[%s10986_s3 + $0x348] sm:$0xff]  ;;  %v1606_v51 = vpack.c.bf16 %v1598_v47, %v1598_v47 }
 0x193   : > { %v1306_v0 = vmax.f32 %v1258_v53, %v1282_v61  ;;  %1760 = vst [vmem:[#allocation4 + $0xa4] sm:$0xf] %v1752_v3  ;;  %v6805_v53 = vld [vmem:[#allocation4 + $0x144] sm:$0xf0]  ;;  %v8652_v61 = vld [vmem:[%s10986_s3 + $0x350] sm:$0xff]  ;;  %v6916_v1 = vor.u32 %v8500_v59, %v6913_v44  ;;  %v8601_v44 = vld [vmem:[%s10986_s3 + $0x1b8] sm:$0xff] }
 0x194   : > { %1520 = vst [vmem:[#allocation4 + $0x144] sm:$0xf] %v1752_v3  ;;  %4551 = vmatpush.bf16.msrb.mxu2 %v8655_v30  ;;  %v6808_v57 = vor.u32 %v8474_v45, %v6805_v53  ;;  %v1628_v30 = vld [vmem:[#allocation3 + $0x81] sm:$0xff]  ;;  %v1767_v45 = vld [vmem:[#allocation3 + $0x32] sm:$0xff] }
 0x195   : > { %v1330_v4 = vmax.f32 %v1306_v0, 0.0  ;;  %1787 = vst [vmem:[#allocation4 + $0x1d4] sm:$0xf] %v9534_v62  ;;  %v8567_v62 = vld [vmem:[%s10986_s3 + $0xa8] sm:$0xff]  ;;  %v8645_v0 = vld [vmem:[%s10986_s3 + $0x318] sm:$0xff]  ;;  %v8600_v52 = vld [vmem:[%s10986_s3 + $0x1b0] sm:$0xff] }
 0x196   : > { %1880 = vst [vmem:[#allocation4 + $0x54] sm:$0xf] %v1752_v3  ;;  %4232 = vmatpush.bf16.msra.mxu3 %v8567_v62  ;;  %v8563_v3 = vld [vmem:[%s10986_s3 + $0x88] sm:$0xff]  ;;  %v8689_v53 = vld [vmem:[%s10986_s3 + $0x478] sm:$0xff]  ;;  %v8672_v40 = vld [vmem:[%s10986_s3 + $0x3f0] sm:$0xff] }
 0x197   : > { %1354 = vst [vmem:[#allocation3 + $0xb0] sm:$0xff] %v1330_v4  ;;  %v8636_v4 = vld [vmem:[%s10986_s3 + $0x2d0] sm:$0xff]  ;;  %v1770_v59 = vld [vmem:[#allocation3 + $0x62] sm:$0xff] }
 0x198   : > { %v1187_v14 = vld [vmem:[#allocation2 + $0x238] ss:$2 sm:$0xf]  ;;  %v1235_v15 = vld [vmem:[#allocation2 + $0x239] ss:$2 sm:$0xf]  ;;  %4552 = vmatpush.bf16.msrb.mxu2 %v8654_v28 }
 0x199   : > { %v1283_v39 = vmax.f32 %v1187_v14, %v1235_v15  ;;  %1832 = vst [vmem:[#allocation4 + $0xb0] sm:$0xf] %v1824_v26  ;;  %v8512_v14 = vld [vmem:[#allocation4 + $0x210] sm:$0xf0]  ;;  %v6981_v15 = vld [vmem:[#allocation4 + $0x2bc] sm:$0xf0] }
 0x19a   : > { %1856 = vst [vmem:[#allocation4 + $0x50] sm:$0xf] %v9597_v60  ;;  %4233 = vmatpush.bf16.msra.mxu3 %v8566_v32  ;;  %v8524_v32 = vld [vmem:[#allocation4 + $0x274] sm:$0xf]  ;;  %v7011_v28 = vld [vmem:[#allocation4 + $0x278] sm:$0xf] }
 0x19b   : > { %4282 = vmatmul.bf16.gmra.mxu0 %v6992_v50  ;;  %4209 = vmatmul.bf16.vlgmr.msrb.gmra.mxu3 %v6684_v41  ;;  %v1307_v24 = vmax.f32 %v1259_v11, %v1283_v39  ;;  %1616 = vst [vmem:[#allocation4 + $0xf0] sm:$0xf] %v9597_v60  ;;  %v8639_v50 = vld [vmem:[%s10986_s3 + $0x2e8] sm:$0xff]  ;;  %v8646_v60 = vld [vmem:[%s10986_s3 + $0x320] sm:$0xff]  ;;  %v8684_v47 = vld [vmem:[%s10986_s3 + $0x450] sm:$0xff] }
 0x19c   : > { %4311 = vmatmul.bf16.gmra.mxu1 %v6996_v12  ;;  %4441 = vmatmul.bf16.vlgmr.msra.gmra.mxu2 %v6716_v46  ;;  %1928 = vst [vmem:[#allocation4 + $0x5c] sm:$0xf] %v1920_v19  ;;  %v8647_v41 = vld [vmem:[%s10986_s3 + $0x328] sm:$0xff]  ;;  %v6881_v12 = vld [vmem:[#allocation4 + $0x1f4] sm:$0xf0]  ;;  %v8564_v46 = vld [vmem:[%s10986_s3 + $0x90] sm:$0xff] }
 0x19d   : > { %v1331_v48 = vmax.f32 %v1307_v24, 0.0  ;;  %1952 = vst [vmem:[#allocation4 + $0x60] sm:$0xf] %v1824_v26  ;;  %4493 = vmatpush.bf16.msrb.mxu0 %v8639_v50  ;;  %4522 = vmatpush.bf16.msrb.mxu1 %v8647_v41  ;;  %v6884_v58 = vor.u32 %v8496_v54, %v6881_v12  ;;  %v8650_v11 = vld [vmem:[%s10986_s3 + $0x340] sm:$0xff]  ;;  %v8499_v24 = vld [vmem:[#allocation4 + $0x1ac] sm:$0xf]  ;;  %v7008_v50 = vor.u32 %v8524_v32, %v7005_v33  ;;  %v9691_v12 = vpop.f32.mrf.mxu3 }
 0x19e   : > { %1712 = vst [vmem:[#allocation4 + $0x100] sm:$0xf] %v1824_v26  ;;  %4234 = vmatpush.bf16.msra.mxu3 %v8565_v36  ;;  %4553 = vmatpush.bf16.msrb.mxu2 %v8653_v8  ;;  %v8634_v39 = vld [vmem:[%s10986_s3 + $0x2c0] sm:$0xff]  ;;  %v6911_v26 = vld [vmem:[#allocation4 + $0x1b0] sm:$0xf]  ;;  %v7012_v8 = vor.u32 %v8537_v35, %v7011_v28  ;;  %v9751_v28 = vpop.f32.mrf.mxu1 }
 0x19f   : > { %1355 = vst [vmem:[#allocation3 + $0xb8] sm:$0xf] %v1331_v48  ;;  %v8642_v48 = vld [vmem:[%s10986_s3 + $0x300] sm:$0xff]  ;;  %v6912_v62 = vor.u32 %v8512_v14, %v6911_v26  ;;  %v6687_v36 = vld [vmem:[#allocation4 + $0x8] sm:$0xf]  ;;  %v8681_v14 = vld [vmem:[%s10986_s3 + $0x438] sm:$0xff] }
 0x1a0   : > { %1737 = vst [vmem:[#allocation4 + $0x104] sm:$0xf] %v1729_v38  ;;  %v8452_v41 = vld [vmem:[#allocation4 + $0x34] sm:$0xf]  ;;  %v8685_v26 = vld [vmem:[%s10986_s3 + $0x458] sm:$0xff] }
 0x1a1   : > { %1857 = vst [vmem:[#allocation4 + $0xb4] sm:$0xf] %v1729_v38  ;;  %4494 = vmatpush.bf16.msrb.mxu0 %v8638_v56  ;;  %4523 = vmatpush.bf16.msrb.mxu1 %v8646_v60  ;;  %v1722_v56 = vld [vmem:[#allocation3 + $0x60] sm:$0xff]  ;;  %v6929_v32 = vld [vmem:[#allocation4 + $0x224] sm:$0xf0] }
 0x1a2   : > { %1617 = vst [vmem:[#allocation4 + $0x154] sm:$0xf] %v1729_v38  ;;  %4235 = vmatpush.bf16.msra.mxu3 %v8564_v46  ;;  %4554 = vmatpush.bf16.msrb.mxu2 %v8652_v61  ;;  %v6688_v38 = vor.u32 %v8459_v34, %v6687_v36  ;;  %v1775_v46 = vpack.c.bf16 %v1767_v45, %v1767_v45  ;;  %v1746_v60 = vld [vmem:[#allocation3 + $0x61] sm:$0xff]  ;;  %v8451_v61 = vld [vmem:[#allocation4 + $0x2c] sm:$0xf] }
 0x1a3   : > { %1808 = vst [vmem:[#allocation4 + $0xac] sm:$0xf] %v1920_v19  ;;  %v1636_v19 = vpack.c.bf16 %v1628_v30, %v1628_v30  ;;  %v1730_v49 = vpack.c.bf16 %v1722_v56, %v1722_v56  ;;  %v8476_v35 = vld [vmem:[#allocation4 + $0xf4] sm:$0xf]  ;;  %v6887_v36 = vld [vmem:[#allocation4 + $0x198] sm:$0xf] }
 0x1a4   : > { %1904 = vst [vmem:[#allocation4 + $0x58] sm:$0xf] %v1896_v42  ;;  %v6732_v42 = vor.u32 %v8452_v41, %v6729_v43  ;;  %v6827_v43 = vld [vmem:[#allocation4 + $0xf8] sm:$0xf]  ;;  %v8678_v56 = vld [vmem:[%s10986_s3 + $0x420] sm:$0xff] }
 0x1a5   : > { %1785 = vst [vmem:[#allocation4 + $0x10c] sm:$0xf] %v1777_v37  ;;  %4495 = vmatpush.bf16.msrb.mxu0 %v8637_v5  ;;  %4524 = vmatpush.bf16.msrb.mxu1 %v8645_v0  ;;  %v9702_v54 = vpop.f32.mrf.mxu3  ;;  %v6721_v37 = vld [vmem:[#allocation4 + $0x8c] sm:$0xf0] }
 0x1a6   : > { %1761 = vst [vmem:[#allocation4 + $0x108] sm:$0xf] %v1753_v55  ;;  %4236 = vmatpush.bf16.msra.mxu3 %v8563_v3  ;;  %4555 = vmatpush.bf16.msrb.mxu2 %v8651_v6  ;;  %v1754_v3 = vpack.c.bf16 %v1746_v60, %v1746_v60  ;;  %v6724_v5 = vor.u32 %v8451_v61, %v6721_v37  ;;  %v6727_v0 = vld [vmem:[#allocation4 + $0x30] sm:$0xf]  ;;  %v8595_v37 = vld [vmem:[%s10986_s3 + $0x188] sm:$0xff] }
 0x1a7   : > { %1521 = vst [vmem:[#allocation4 + $0x1a8] sm:$0xf] %v1753_v55  ;;  %v8683_v60 = vld [vmem:[%s10986_s3 + $0x448] sm:$0xff] }
 0x1a8   : > { %1881 = vst [vmem:[#allocation4 + $0xb8] sm:$0xf] %v1753_v55  ;;  %v8484_v55 = vld [vmem:[#allocation4 + $0x130] sm:$0xf0] }
 0x1a9   : > { %4496 = vmatpush.bf16.msrb.mxu0 %v8636_v4  ;;  %4525 = vmatpush.bf16.msrb.mxu1 %v8644_v10  ;;  %1833 = vst [vmem:[#allocation4 + $0x114] sm:$0xf] %v1825_v22  ;;  %v8688_v4 = vld [vmem:[%s10986_s3 + $0x470] sm:$0xff] }
 0x1aa   : > { %4237 = vmatpush.bf16.msra.mxu3 %v8562_v27  ;;  %4556 = vmatpush.bf16.msrb.mxu2 %v8650_v11  ;;  %1953 = vst [vmem:[#allocation4 + $0xc4] sm:$0xf] %v1825_v22  ;;  %v8477_v27 = vld [vmem:[#allocation4 + $0xfc] sm:$0xf] }
 0x1ab   : > { %4383 = vmatmul.bf16.vlgmr.msra.gmra.mxu0 %v6708_v21  ;;  %4214 = vmatmul.bf16.gmra.mxu3 %v6784_v23  ;;  %v7013_v21 = vld [vmem:[#allocation4 + $0x2dc] sm:$0xf0]  ;;  %v1921_v23 = vpack.c.bf16 %v1913_v18, %v1913_v18  ;;  %1713 = vst [vmem:[#allocation4 + $0x164] sm:$0xf] %v1825_v22  ;;  %v8680_v18 = vld [vmem:[%s10986_s3 + $0x430] sm:$0xff] }
 0x1ac   : > { %4412 = vmatmul.bf16.vlgmr.msra.gmra.mxu1 %v6712_v2  ;;  %4446 = vmatmul.bf16.gmra.mxu2 %v6816_v25  ;;  %v8521_v2 = vld [vmem:[#allocation4 + $0x25c] sm:$0xf]  ;;  %v6908_v25 = vor.u32 %v8499_v24, %v6905_v7  ;;  %v7016_v31 = vor.u32 %v8525_v20, %v7013_v21  ;;  %1905 = vst [vmem:[#allocation4 + $0xbc] sm:$0xf] %v1897_v63  ;;  %v8686_v20 = vld [vmem:[%s10986_s3 + $0x460] sm:$0xff]  ;;  %v1677_v21 = vld [vmem:[#allocation3 + $0x93] sm:$0xff]  ;;  %v9747_v63 = vpop.f32.mrf.mxu0 }
 0x1ad   : > { %4497 = vmatpush.bf16.msrb.mxu0 %v8635_v13  ;;  %v6984_v29 = vor.u32 %v8521_v2, %v6981_v15  ;;  %4526 = vmatpush.bf16.msrb.mxu1 %v8643_v17  ;;  %1929 = vst [vmem:[#allocation4 + $0xc0] sm:$0xf] %v1921_v23  ;;  %v8599_v13 = vld [vmem:[%s10986_s3 + $0x1a8] sm:$0xff]  ;;  %v8673_v7 = vld [vmem:[%s10986_s3 + $0x3f8] sm:$0xff]  ;;  %v1685_v22 = vpack.c.bf16 %v1677_v21, %v1677_v21  ;;  %v6987_v21 = vld [vmem:[#allocation4 + $0x260] sm:$0xf] }
 0x1ae   : > { %1809 = vst [vmem:[#allocation4 + $0x110] sm:$0xf] %v1921_v23  ;;  %4346 = vmatpush.bf16.msrb.mxu3 %v8601_v44  ;;  %4665 = vmatpush.bf16.msra.mxu2 %v8689_v53  ;;  %v8687_v15 = vld [vmem:[%s10986_s3 + $0x468] sm:$0xff]  ;;  %v8597_v23 = vld [vmem:[%s10986_s3 + $0x198] sm:$0xff]  ;;  %v8670_v44 = vld [vmem:[%s10986_s3 + $0x3e0] sm:$0xff] }
 0x1af   : > { %1644 = vst [vmem:[#allocation4 + $0x284] sm:$0xf] %v1636_v19  ;;  %v6821_v24 = vld [vmem:[#allocation4 + $0x154] sm:$0xf0]  ;;  %v8679_v2 = vld [vmem:[%s10986_s3 + $0x428] sm:$0xff] }
 0x1b0   : > { %1764 = vst [vmem:[#allocation4 + $0x234] sm:$0xf] %v1636_v19 }
 0x1b1   : > { %4498 = vmatpush.bf16.msrb.mxu0 %v8634_v39  ;;  %4527 = vmatpush.bf16.msrb.mxu1 %v8642_v48  ;;  %1524 = vst [vmem:[#allocation4 + $0x2d4] sm:$0xf] %v1636_v19  ;;  %v8598_v39 = vld [vmem:[%s10986_s3 + $0x1a0] sm:$0xff]  ;;  %v8489_v19 = vld [vmem:[#allocation4 + $0x158] sm:$0xf0] }
 0x1b2   : > { %1783 = vst [vmem:[#allocation4 + $0x44] sm:$0xf] %v1775_v46  ;;  %4347 = vmatpush.bf16.msrb.mxu3 %v8600_v52  ;;  %4666 = vmatpush.bf16.msra.mxu2 %v8688_v4  ;;  %v1818_v48 = vld [vmem:[#allocation3 + $0x64] sm:$0xff]  ;;  %v6828_v45 = vor.u32 %v8489_v19, %v6827_v43  ;;  %v1653_v52 = vld [vmem:[#allocation3 + $0x92] sm:$0xff]  ;;  %v6921_v4 = vld [vmem:[#allocation4 + $0x21c] sm:$0xf0] }
 0x1b3   : > { %1738 = vst [vmem:[#allocation4 + $0x168] sm:$0xf] %v1730_v49  ;;  %v1826_v33 = vpack.c.bf16 %v1818_v48, %v1818_v48  ;;  %v1661_v53 = vpack.c.bf16 %v1653_v52, %v1653_v52  ;;  %v1743_v19 = vld [vmem:[#allocation3 + $0x31] sm:$0xff] }
 0x1b4   : > { %1614 = vst [vmem:[#allocation4 + $0x28] sm:$0xf] %v1606_v51 }
 0x1b5   : > { %1858 = vst [vmem:[#allocation4 + $0x118] sm:$0xf] %v1730_v49  ;;  %4607 = vmatpush.bf16.msra.mxu0 %v8673_v7  ;;  %4636 = vmatpush.bf16.msra.mxu1 %v8681_v14  ;;  %v8675_v7 = vld [vmem:[%s10986_s3 + $0x408] sm:$0xff]  ;;  %v1719_v14 = vld [vmem:[#allocation3 + $0x30] sm:$0xff] }
 0x1b6   : > { %1618 = vst [vmem:[#allocation4 + $0x1b8] sm:$0xf] %v1730_v49  ;;  %4348 = vmatpush.bf16.msrb.mxu3 %v8599_v13  ;;  %4667 = vmatpush.bf16.msra.mxu2 %v8687_v15  ;;  %v1629_v49 = vld [vmem:[#allocation3 + $0x91] sm:$0xff]  ;;  %v8534_v13 = vld [vmem:[#allocation4 + $0x2c0] sm:$0xf0] }
 0x1b7   : > { %1762 = vst [vmem:[#allocation4 + $0x16c] sm:$0xf] %v1754_v3  ;;  %v1637_v51 = vpack.c.bf16 %v1629_v49, %v1629_v49  ;;  %v8514_v15 = vld [vmem:[#allocation4 + $0x220] sm:$0xf0]  ;;  %v1747_v49 = vld [vmem:[#allocation3 + $0x71] sm:$0xff] }
 0x1b8   : > { %1522 = vst [vmem:[#allocation4 + $0x20c] sm:$0xf] %v1754_v3  ;;  %v1755_v52 = vpack.c.bf16 %v1747_v49, %v1747_v49  ;;  %v8631_v49 = vld [vmem:[%s10986_s3 + $0x2a8] sm:$0xff] }
 0x1b9   : > { %1882 = vst [vmem:[#allocation4 + $0x11c] sm:$0xf] %v1754_v3  ;;  %4608 = vmatpush.bf16.msra.mxu0 %v8672_v40  ;;  %4637 = vmatpush.bf16.msra.mxu1 %v8680_v18  ;;  %v8594_v3 = vld [vmem:[%s10986_s3 + $0x180] sm:$0xff]  ;;  %v1727_v18 = vpack.c.bf16 %v1719_v14, %v1719_v14  ;;  %v8632_v14 = vld [vmem:[%s10986_s3 + $0x2b0] sm:$0xff] }
 0x1ba   : > { %4349 = vmatpush.bf16.msrb.mxu3 %v8598_v39  ;;  %4668 = vmatpush.bf16.msra.mxu2 %v8686_v20  ;;  %1693 = vst [vmem:[#allocation4 + $0x2f0] sm:$0xf] %v1685_v22  ;;  %v8527_v39 = vld [vmem:[#allocation4 + $0x28c] sm:$0xf]  ;;  %v8501_v20 = vld [vmem:[#allocation4 + $0x1bc] sm:$0xf] }
 0x1bb   : > { %4388 = vmatmul.bf16.gmra.mxu0 %v6808_v57  ;;  %4219 = vmatmul.bf16.gmra.mxu3 %v6884_v58  ;;  %v6829_v57 = vld [vmem:[#allocation4 + $0x15c] sm:$0xf0]  ;;  %v8464_v58 = vld [vmem:[#allocation4 + $0x90] sm:$0xf0]  ;;  %1834 = vst [vmem:[#allocation4 + $0x178] sm:$0xf] %v1826_v33 }
 0x1bc   : > { %4417 = vmatmul.bf16.gmra.mxu1 %v6812_v9  ;;  %4451 = vmatmul.bf16.gmra.mxu2 %v6916_v1  ;;  %v6787_v9 = vld [vmem:[#allocation4 + $0xd0] sm:$0xf]  ;;  %v1778_v1 = vpack.c.bf16 %v1770_v59, %v1770_v59  ;;  %v6728_v10 = vor.u32 %v8464_v58, %v6727_v0  ;;  %v6832_v11 = vor.u32 %v8477_v27, %v6829_v57  ;;  %v1890_v57 = vld [vmem:[#allocation3 + $0x62] sm:$0xff]  ;;  %v8677_v59 = vld [vmem:[%s10986_s3 + $0x418] sm:$0xff]  ;;  %v9789_v0 = vpop.f32.mrf.mxu1 }
 0x1bd   : > { %v6788_v6 = vor.u32 %v8484_v55, %v6787_v9  ;;  %4609 = vmatpush.bf16.msra.mxu0 %v8671_v16  ;;  %4638 = vmatpush.bf16.msra.mxu1 %v8679_v2  ;;  %1954 = vst [vmem:[#allocation4 + $0x128] sm:$0xf] %v1826_v33  ;;  %v8669_v55 = vld [vmem:[%s10986_s3 + $0x3d8] sm:$0xff]  ;;  %v1898_v61 = vpack.c.bf16 %v1890_v57, %v1890_v57  ;;  %v9779_v9 = vpop.f32.mrf.mxu0  ;;  %v8682_v27 = vld [vmem:[%s10986_s3 + $0x440] sm:$0xff]  ;;  %v6745_v57 = vld [vmem:[#allocation4 + $0xa4] sm:$0xf0] }
 0x1be   : > { %1786 = vst [vmem:[#allocation4 + $0x170] sm:$0xf] %v1778_v1  ;;  %4350 = vmatpush.bf16.msrb.mxu3 %v8597_v23  ;;  %4669 = vmatpush.bf16.msra.mxu2 %v8685_v26  ;;  %v6924_v16 = vor.u32 %v8501_v20, %v6921_v4  ;;  %v6988_v2 = vor.u32 %v8534_v13, %v6987_v21  ;;  %v1820_v20 = vld [vmem:[#allocation3 + $0x84] sm:$0xff]  ;;  %v1915_v21 = vld [vmem:[#allocation3 + $0x73] sm:$0xff] }
 0x1bf   : > { %1645 = vst [vmem:[#allocation4 + $0x2e8] sm:$0xf] %v1637_v51 }
 0x1c0   : > { %v9749_v30 = vpop.f32.mrf.mxu2  ;;  %1669 = vst [vmem:[#allocation4 + $0x2ec] sm:$0xf] %v1661_v53 }
 0x1c1   : > { %4610 = vmatpush.bf16.msra.mxu0 %v8670_v44  ;;  %4639 = vmatpush.bf16.msra.mxu1 %v8678_v56  ;;  %1789 = vst [vmem:[#allocation4 + $0x29c] sm:$0xf] %v1661_v53  ;;  %v7029_v40 = vld [vmem:[#allocation4 + $0x2ec] sm:$0xf0]  ;;  %v7027_v44 = vld [vmem:[#allocation4 + $0x288] sm:$0xf] }
 0x1c2   : > { %4670 = vmatpush.bf16.msra.mxu2 %v8684_v47  ;;  %1765 = vst [vmem:[#allocation4 + $0x298] sm:$0xf] %v1637_v51  ;;  %v8454_v56 = vld [vmem:[#allocation4 + $0x44] sm:$0xf]  ;;  %v6703_v51 = vld [vmem:[#allocation4 + $0x18] sm:$0xf] }
 0x1c3   : > { %1714 = vst [vmem:[#allocation4 + $0x1c8] sm:$0xf] %v1826_v33  ;;  %v9830_v53 = vld [vmem:[%s10987_s4] ss:$0 sm:$0xff] }
 0x1c4   : > { %1906 = vst [vmem:[#allocation4 + $0x120] sm:$0xf] %v1898_v61  ;;  %v6748_v61 = vor.u32 %v8454_v56, %v6745_v57  ;;  %v8719_v57 = vld [vmem:[%s10986_s3 + $0x568] sm:$0xff] }
 0x1c5   : > { %4611 = vmatpush.bf16.msra.mxu0 %v8669_v55  ;;  %4640 = vmatpush.bf16.msra.mxu1 %v8677_v59  ;;  %1735 = vst [vmem:[#allocation4 + $0x3c] sm:$0xf] %v1727_v18  ;;  %v1815_v59 = vld [vmem:[#allocation3 + $0x34] sm:$0xff] }
 0x1c6   : > { %4671 = vmatpush.bf16.msra.mxu2 %v8683_v60  ;;  %1615 = vst [vmem:[#allocation4 + $0x8c] sm:$0xf] %v1727_v18  ;;  %v1819_v18 = vld [vmem:[#allocation3 + $0x74] sm:$0xff] }
 0x1c7   : > { %v8539_v47 = vld [vmem:[#allocation4 + $0x2e8] sm:$0xf0]  ;;  %1763 = vst [vmem:[#allocation4 + $0x1d0] sm:$0xf] %v1755_v52 }
 0x1c8   : > { %v9781_v1 = vpop.f32.mrf.mxu2  ;;  %v7028_v60 = vor.u32 %v8539_v47, %v7027_v44  ;;  %1523 = vst [vmem:[#allocation4 + $0x270] sm:$0xf] %v1755_v52  ;;  %v1916_v44 = vld [vmem:[#allocation3 + $0x83] sm:$0xff]  ;;  %v1791_v47 = vld [vmem:[#allocation3 + $0x33] sm:$0xff] }
 0x1c9   : > { %1883 = vst [vmem:[#allocation4 + $0x180] sm:$0xf] %v1755_v52  ;;  %v8713_v52 = vld [vmem:[%s10986_s3 + $0x538] sm:$0xff] }
 0x1ca   : > { %4672 = vmatpush.bf16.msra.mxu2 %v8682_v27 }
 0x1cb   : > { %4393 = vmatmul.bf16.gmra.mxu0 %v6908_v25  ;;  %4224 = vmatmul.bf16.gmra.mxu3 %v6984_v29  ;;  %v8509_v25 = vld [vmem:[#allocation4 + $0x1f8] sm:$0xf0] }
 0x1cc   : > { %4422 = vmatmul.bf16.gmra.mxu1 %v6912_v62  ;;  %4456 = vmatmul.bf16.gmra.mxu2 %v7016_v31  ;;  %v1694_v62 = vld [vmem:[#allocation3 + $0x24] sm:$0xff]  ;;  %v6888_v41 = vor.u32 %v8509_v25, %v6887_v36 }
 0x1cd   : > { %v1914_v31 = vld [vmem:[#allocation3 + $0x63] sm:$0xff]  ;;  %v1702_v34 = vpack.c.bf16 %v1694_v62, %v1694_v62  ;;  %v7032_v62 = vor.u32 %v8527_v39, %v7029_v40 }
 0x1ce   : > { %v8666_v25 = vld [vmem:[%s10986_s3 + $0x3c0] sm:$0xff] }
 0x1cf   : > { %1710 = vst [vmem:[#allocation4 + $0x38] sm:$0xf] %v1702_v34  ;;  %v1723_v34 = vld [vmem:[#allocation3 + $0x70] sm:$0xff] }
 0x1d0   : > { %v1731_v43 = vpack.c.bf16 %v1723_v34, %v1723_v34  ;;  %v8466_v34 = vld [vmem:[#allocation4 + $0xa0] sm:$0xf0] }
 0x1d2   : > { %1739 = vst [vmem:[#allocation4 + $0x1cc] sm:$0xf] %v1731_v43 }
 0x1d3   : > { %1859 = vst [vmem:[#allocation4 + $0x17c] sm:$0xf] %v1731_v43 }
 0x1d4   : > { %1619 = vst [vmem:[#allocation4 + $0x21c] sm:$0xf] %v1731_v43 }
 0x1db   : > { %4398 = vmatmul.bf16.gmra.mxu0 %v7008_v50  ;;  %4238 = vmatmul.bf16.vlgmr.msra.gmra.mxu3 %v6688_v38  ;;  %v1922_v50 = vpack.c.bf16 %v1914_v31, %v1914_v31  ;;  %v6824_v38 = vor.u32 %v8476_v35, %v6821_v24  ;;  %v6927_v24 = vld [vmem:[#allocation4 + $0x1c0] sm:$0xf] }
 0x1dc   : > { %4427 = vmatmul.bf16.gmra.mxu1 %v7012_v8  ;;  %4557 = vmatmul.bf16.vlgmr.msrb.gmra.mxu2 %v6732_v42  ;;  %v8502_v8 = vld [vmem:[#allocation4 + $0x1c4] sm:$0xf]  ;;  %v8596_v42 = vld [vmem:[%s10986_s3 + $0x190] sm:$0xff]  ;;  %v6928_v48 = vor.u32 %v8514_v15, %v6927_v24  ;;  %v8453_v15 = vld [vmem:[#allocation4 + $0x3c] sm:$0xf] }
 0x1dd   : > { %v6932_v46 = vor.u32 %v8502_v8, %v6929_v32  ;;  %1930 = vst [vmem:[#allocation4 + $0x124] sm:$0xf] %v1922_v50  ;;  %4351 = vmatpush.bf16.msrb.mxu3 %v8596_v42  ;;  %v8674_v31 = vld [vmem:[%s10986_s3 + $0x400] sm:$0xff]  ;;  %v1751_v32 = vpack.c.bf16 %v1743_v19, %v1743_v19  ;;  %v8461_v8 = vld [vmem:[#allocation4 + $0x78] sm:$0xf0] }
 0x1de   : > { %1810 = vst [vmem:[#allocation4 + $0x174] sm:$0xf] %v1922_v50  ;;  %v1724_v35 = vld [vmem:[#allocation3 + $0x80] sm:$0xff]  ;;  %v6704_v55 = vor.u32 %v8461_v8, %v6703_v51  ;;  %v8479_v8 = vld [vmem:[#allocation4 + $0x10c] sm:$0xf]  ;;  %v8705_v51 = vld [vmem:[%s10986_s3 + $0x4f8] sm:$0xff] }
 0x1df   : > { %1759 = vst [vmem:[#allocation4 + $0x40] sm:$0xf] %v1751_v32  ;;  %v1732_v36 = vpack.c.bf16 %v1724_v35, %v1724_v35  ;;  %v8526_v42 = vld [vmem:[#allocation4 + $0x284] sm:$0xf] }
 0x1e0   : > { %1519 = vst [vmem:[#allocation4 + $0xe0] sm:$0xf] %v1751_v32  ;;  %v6737_v32 = vld [vmem:[#allocation4 + $0x9c] sm:$0xf0]  ;;  %v8486_v35 = vld [vmem:[#allocation4 + $0x140] sm:$0xf0] }
 0x1e1   : > { %4352 = vmatpush.bf16.msrb.mxu3 %v8595_v37  ;;  %1740 = vst [vmem:[#allocation4 + $0x230] sm:$0xf] %v1732_v36  ;;  %v6740_v43 = vor.u32 %v8453_v15, %v6737_v32  ;;  %v8718_v15 = vld [vmem:[%s10986_s3 + $0x560] sm:$0xff]  ;;  %v8717_v32 = vld [vmem:[%s10986_s3 + $0x558] sm:$0xff] }
 0x1e2   : > { %1860 = vst [vmem:[#allocation4 + $0x1e0] sm:$0xf] %v1732_v36 }
 0x1e3   : > { %1620 = vst [vmem:[#allocation4 + $0x280] sm:$0xf] %v1732_v36 }
 0x1e5   : > { %4353 = vmatpush.bf16.msrb.mxu3 %v8594_v3  ;;  %v1823_v3 = vpack.c.bf16 %v1815_v59, %v1815_v59 }
 0x1e7   : > { %1831 = vst [vmem:[#allocation4 + $0x4c] sm:$0xf] %v1823_v3  ;;  %v6803_v39 = vld [vmem:[#allocation4 + $0xe0] sm:$0xf] }
 0x1e8   : > { %1711 = vst [vmem:[#allocation4 + $0x9c] sm:$0xf] %v1823_v3  ;;  %v6804_v36 = vor.u32 %v8486_v35, %v6803_v39  ;;  %v1891_v3 = vld [vmem:[#allocation3 + $0x72] sm:$0xff]  ;;  %v1774_v39 = vld [vmem:[#allocation3 + $0xa2] sm:$0xff] }
 0x1eb   : > { %4499 = vmatmul.bf16.vlgmr.msrb.gmra.mxu0 %v6724_v5  ;;  %4243 = vmatmul.bf16.gmra.mxu3 %v6788_v6  ;;  %v8668_v5 = vld [vmem:[%s10986_s3 + $0x3d0] sm:$0xff] }
 0x1ec   : > { %4528 = vmatmul.bf16.vlgmr.msrb.gmra.mxu1 %v6728_v10  ;;  %4562 = vmatmul.bf16.gmra.mxu2 %v6832_v11  ;;  %v8676_v6 = vld [vmem:[%s10986_s3 + $0x410] sm:$0xff]  ;;  %v8667_v10 = vld [vmem:[%s10986_s3 + $0x3c8] sm:$0xff] }
 0x1ed   : > { %4612 = vmatpush.bf16.msra.mxu0 %v8668_v5  ;;  %4641 = vmatpush.bf16.msra.mxu1 %v8676_v6  ;;  %v8633_v5 = vld [vmem:[%s10986_s3 + $0x2b8] sm:$0xff]  ;;  %v4182_v6 = vadd.f32 %v9830_v53, %v9691_v12 }
 0x1ee   : > { %v9719_v17 = vpop.f32.mrf.mxu3  ;;  %4462 = vmatpush.bf16.msra.mxu3 %v8633_v5  ;;  %v8721_v12 = vld [vmem:[%s10986_s3 + $0x578] sm:$0xff] }
 0x1ef   : > { %v9805_v22 = vpop.f32.mrf.mxu2  ;;  %4781 = vmatpush.bf16.msrb.mxu2 %v8721_v12 }
 0x1f1   : > { %4613 = vmatpush.bf16.msra.mxu0 %v8667_v10  ;;  %4642 = vmatpush.bf16.msra.mxu1 %v8675_v7 }
 0x1f2   : > { %4463 = vmatpush.bf16.msra.mxu3 %v8632_v14  ;;  %v8712_v14 = vld [vmem:[%s10986_s3 + $0x530] sm:$0xff] }
 0x1f5   : > { %4614 = vmatpush.bf16.msra.mxu0 %v8666_v25  ;;  %4643 = vmatpush.bf16.msra.mxu1 %v8674_v31  ;;  %v6845_v25 = vld [vmem:[#allocation4 + $0x16c] sm:$0xf0]  ;;  %v1923_v31 = vpack.c.bf16 %v1915_v21, %v1915_v21  ;;  %v8703_v21 = vld [vmem:[%s10986_s3 + $0x4e8] sm:$0xff] }
 0x1f6   : > { %v9745_v29 = vpop.f32.mrf.mxu3  ;;  %v6848_v56 = vor.u32 %v8479_v8, %v6845_v25  ;;  %4464 = vmatpush.bf16.msra.mxu3 %v8631_v49  ;;  %v8711_v25 = vld [vmem:[%s10986_s3 + $0x528] sm:$0xff]  ;;  %v6945_v8 = vld [vmem:[#allocation4 + $0x234] sm:$0xf0]  ;;  %v8702_v49 = vld [vmem:[%s10986_s3 + $0x4e0] sm:$0xff] }
 0x1f7   : > { %v9819_v50 = vpop.f32.mrf.mxu2  ;;  %1931 = vst [vmem:[#allocation4 + $0x188] sm:$0xf] %v1923_v31 }
 0x1f8   : > { %v9807_v23 = vpop.f32.mrf.mxu0  ;;  %1811 = vst [vmem:[#allocation4 + $0x1d8] sm:$0xf] %v1923_v31 }
 0x1f9   : > { %v9812_v26 = vpop.f32.mrf.mxu1  ;;  %4723 = vmatpush.bf16.msrb.mxu0 %v8705_v51  ;;  %4752 = vmatpush.bf16.msrb.mxu1 %v8713_v52  ;;  %v8710_v51 = vld [vmem:[%s10986_s3 + $0x520] sm:$0xff] }
 0x1fb   : > { %4504 = vmatmul.bf16.gmra.mxu0 %v6824_v38  ;;  %4248 = vmatmul.bf16.gmra.mxu3 %v6888_v41 }
 0x1fc   : > { %4533 = vmatmul.bf16.gmra.mxu1 %v6828_v45  ;;  %4567 = vmatmul.bf16.gmra.mxu2 %v6932_v46  ;;  %v7021_v45 = vld [vmem:[#allocation4 + $0x2e4] sm:$0xf0] }
 0x1fd   : > { %v7024_v37 = vor.u32 %v8526_v42, %v7021_v45  ;;  %v8720_v42 = vld [vmem:[%s10986_s3 + $0x570] sm:$0xff]  ;;  %4753 = vmatpush.bf16.msrb.mxu1 %v8712_v14  ;;  %v1750_v14 = vld [vmem:[#allocation3 + $0xa1] sm:$0xff] }
 0x1fe   : > { %v9771_v58 = vpop.f32.mrf.mxu3  ;;  %4782 = vmatpush.bf16.msrb.mxu2 %v8720_v42  ;;  %v8478_v42 = vld [vmem:[#allocation4 + $0x104] sm:$0xf] }
 0x1ff   : > { %v9837_v27 = vpop.f32.mrf.mxu2 }
 0x200   : > { %v9821_v38 = vpop.f32.mrf.mxu0 }
 0x201   : > { %v9823_v41 = vpop.f32.mrf.mxu1  ;;  %4754 = vmatpush.bf16.msrb.mxu1 %v8711_v25  ;;  %v8709_v25 = vld [vmem:[%s10986_s3 + $0x518] sm:$0xff] }
 0x202   : > { %4783 = vmatpush.bf16.msrb.mxu2 %v8719_v57  ;;  %v1725_v57 = vld [vmem:[#allocation3 + $0x90] sm:$0xff] }
 0x205   : > { %4755 = vmatpush.bf16.msrb.mxu1 %v8710_v51  ;;  %v8536_v51 = vld [vmem:[#allocation4 + $0x2d0] sm:$0xf0] }
 0x206   : > { %v9800_v11 = vpop.f32.mrf.mxu3  ;;  %4784 = vmatpush.bf16.msrb.mxu2 %v8718_v15 }
 0x208   : > { %v9839_v4 = vpop.f32.mrf.mxu0 }
 0x209   : > { %v9841_v10 = vpop.f32.mrf.mxu1  ;;  %4756 = vmatpush.bf16.msrb.mxu1 %v8709_v25 }
 0x20a   : > { %4785 = vmatpush.bf16.msrb.mxu2 %v8717_v32  ;;  %v8700_v32 = vld [vmem:[%s10986_s3 + $0x4d0] sm:$0xff] }
 0x20b   : > { %4509 = vmatmul.bf16.gmra.mxu0 %v6924_v16  ;;  %4253 = vmatmul.bf16.gmra.mxu3 %v6988_v2  ;;  %v9853_v16 = vpop.f32.mrf.mxu2  ;;  %v6743_v2 = vld [vmem:[#allocation4 + $0x40] sm:$0xf] }
 0x20c   : > { %4538 = vmatmul.bf16.gmra.mxu1 %v6928_v48  ;;  %4572 = vmatmul.bf16.gmra.mxu2 %v7032_v62  ;;  %v1827_v48 = vpack.c.bf16 %v1819_v18, %v1819_v18  ;;  %v1828_v62 = vpack.c.bf16 %v1820_v20, %v1820_v20  ;;  %v6744_v45 = vor.u32 %v8466_v34, %v6743_v2  ;;  %v8629_v20 = vld [vmem:[%s10986_s3 + $0x298] sm:$0xff]  ;;  %v8491_v34 = vld [vmem:[#allocation4 + $0x168] sm:$0xf0] }
 0x20d   : > { %v1782_v18 = vpack.c.bf16 %v1774_v39, %v1774_v39  ;;  %v1899_v2 = vpack.c.bf16 %v1891_v3, %v1891_v3  ;;  %v1758_v39 = vpack.c.bf16 %v1750_v14, %v1750_v14 }
 0x20e   : > { %v9817_v33 = vpop.f32.mrf.mxu3  ;;  %1835 = vst [vmem:[#allocation4 + $0x1dc] sm:$0xf] %v1827_v48 }
 0x20f   : > { %1836 = vst [vmem:[#allocation4 + $0x240] sm:$0xf] %v1828_v62 }
 0x210   : > { %v9855_v24 = vpop.f32.mrf.mxu0  ;;  %1955 = vst [vmem:[#allocation4 + $0x18c] sm:$0xf] %v1827_v48 }
 0x211   : > { %v9857_v19 = vpop.f32.mrf.mxu1  ;;  %1715 = vst [vmem:[#allocation4 + $0x22c] sm:$0xf] %v1827_v48  ;;  %v4189_v48 = vadd.f32 %v9830_v53, %v9745_v29  ;;  %v6843_v29 = vld [vmem:[#allocation4 + $0x108] sm:$0xf] }
 0x212   : > { %1956 = vst [vmem:[#allocation4 + $0x1f0] sm:$0xf] %v1828_v62  ;;  %v6844_v52 = vor.u32 %v8491_v34, %v6843_v29  ;;  %v8708_v34 = vld [vmem:[%s10986_s3 + $0x510] sm:$0xff] }
 0x213   : > { %v9878_v5 = vpop.f32.mrf.mxu2  ;;  %1716 = vst [vmem:[#allocation4 + $0x290] sm:$0xf] %v1828_v62  ;;  %v6837_v62 = vld [vmem:[#allocation4 + $0x164] sm:$0xf0]  ;;  %v6937_v29 = vld [vmem:[#allocation4 + $0x22c] sm:$0xf0]  ;;  %4757 = vmatpush.bf16.msrb.mxu1 %v8708_v34 }
 0x214   : > { %1790 = vst [vmem:[#allocation4 + $0x300] sm:$0xf] %v1782_v18  ;;  %v4192_v18 = vadd.f32 %v9830_v53, %v9771_v58  ;;  %v8715_v58 = vld [vmem:[%s10986_s3 + $0x548] sm:$0xff] }
 0x215   : > { %1907 = vst [vmem:[#allocation4 + $0x184] sm:$0xf] %v1899_v2 }
 0x216   : > { %v9825_v46 = vpop.f32.mrf.mxu3  ;;  %1766 = vst [vmem:[#allocation4 + $0x2fc] sm:$0xf] %v1758_v39 }
 0x217   : > { %1886 = vst [vmem:[#allocation4 + $0x2ac] sm:$0xf] %v1758_v39 }
 0x219   : > { %v9891_v12 = vpop.f32.mrf.mxu1 }
 0x21b   : > { %4514 = vmatmul.bf16.gmra.mxu0 %v7024_v37  ;;  %4354 = vmatmul.bf16.vlgmr.msrb.gmra.mxu3 %v6704_v55  ;;  %v1924_v37 = vpack.c.bf16 %v1916_v44, %v1916_v44  ;;  %v4187_v55 = vadd.f32 %v9830_v53, %v9719_v17  ;;  %v8630_v17 = vld [vmem:[%s10986_s3 + $0x2a0] sm:$0xff]  ;;  %v6903_v44 = vld [vmem:[#allocation4 + $0x1a8] sm:$0xf] }
 0x21c   : > { %4543 = vmatmul.bf16.gmra.mxu1 %v7028_v60  ;;  %4673 = vmatmul.bf16.vlgmr.msra.gmra.mxu2 %v6748_v61  ;;  %v1799_v60 = vpack.c.bf16 %v1791_v47, %v1791_v47  ;;  %v8628_v47 = vld [vmem:[%s10986_s3 + $0x290] sm:$0xff] }
 0x21d   : > { %1932 = vst [vmem:[#allocation4 + $0x1ec] sm:$0xf] %v1924_v37  ;;  %4465 = vmatpush.bf16.msra.mxu3 %v8630_v17  ;;  %v1733_v17 = vpack.c.bf16 %v1725_v57, %v1725_v57  ;;  %v7045_v57 = vld [vmem:[#allocation4 + $0x2fc] sm:$0xf0] }
 0x21e   : > { %v4210_v13 = vpop.f32.mrf.mxu3  ;;  %1807 = vst [vmem:[#allocation4 + $0x48] sm:$0xf] %v1799_v60  ;;  %v9924_v60 = vpop.f32.mrf.mxu2 }
 0x21f   : > { %v9843_v7 = vadd.f32 %v4210_v13, %v4182_v6  ;;  %v9880_v6 = vpop.f32.mrf.mxu0  ;;  %v8704_v13 = vld [vmem:[%s10986_s3 + $0x4f0] sm:$0xff]  ;;  %1812 = vst [vmem:[#allocation4 + $0x23c] sm:$0xf] %v1924_v37 }
 0x220   : > { %4724 = vmatpush.bf16.msrb.mxu0 %v8704_v13  ;;  %1741 = vst [vmem:[#allocation4 + $0x294] sm:$0xf] %v1733_v17 }
 0x221   : > { %4466 = vmatpush.bf16.msra.mxu3 %v8629_v20  ;;  %v9928_v15 = vpop.f32.mrf.mxu1  ;;  %v8627_v20 = vld [vmem:[%s10986_s3 + $0x288] sm:$0xff]  ;;  %1861 = vst [vmem:[#allocation4 + $0x244] sm:$0xf] %v1733_v17 }
 0x222   : > { %1621 = vst [vmem:[#allocation4 + $0x2e4] sm:$0xf] %v1733_v17 }
 0x224   : > { %4725 = vmatpush.bf16.msrb.mxu0 %v8703_v21  ;;  %v8701_v21 = vld [vmem:[%s10986_s3 + $0x4d8] sm:$0xff] }
 0x225   : > { %4467 = vmatpush.bf16.msra.mxu3 %v8628_v47 }
 0x226   : > { %v9851_v40 = vpop.f32.mrf.mxu3 }
 0x227   : > { %v9926_v3 = vpop.f32.mrf.mxu0  ;;  %v8528_v34 = vld [vmem:[#allocation4 + $0x294] sm:$0xf] }
 0x228   : > { %4726 = vmatpush.bf16.msrb.mxu0 %v8702_v49  ;;  %v7003_v49 = vld [vmem:[#allocation4 + $0x270] sm:$0xf] }
 0x229   : > { %4468 = vmatpush.bf16.msra.mxu3 %v8627_v20  ;;  %v7004_v17 = vor.u32 %v8536_v51, %v7003_v49  ;;  %v4197_v20 = vadd.f32 %v9830_v53, %v9817_v33  ;;  %v8541_v33 = vld [vmem:[#allocation4 + $0x2f8] sm:$0xf0] }
 0x22b   : > { %4615 = vmatmul.bf16.vlgmr.msra.gmra.mxu0 %v6740_v43  ;;  %4359 = vmatmul.bf16.gmra.mxu3 %v6804_v36  ;;  %v8511_v43 = vld [vmem:[#allocation4 + $0x208] sm:$0xf0]  ;;  %v8504_v36 = vld [vmem:[#allocation4 + $0x1d4] sm:$0xf] }
 0x22c   : > { %4644 = vmatmul.bf16.vlgmr.msra.gmra.mxu1 %v6744_v45  ;;  %4678 = vmatmul.bf16.gmra.mxu2 %v6848_v56  ;;  %v6840_v45 = vor.u32 %v8478_v42, %v6837_v62  ;;  %v6904_v56 = vor.u32 %v8511_v43, %v6903_v44  ;;  %v6948_v37 = vor.u32 %v8504_v36, %v6945_v8  ;;  %v8626_v62 = vld [vmem:[%s10986_s3 + $0x280] sm:$0xff]  ;;  %v8503_v43 = vld [vmem:[#allocation4 + $0x1cc] sm:$0xf]  ;;  %v9960_v8 = vpop.f32.mrf.mxu2  ;;  %v6943_v44 = vld [vmem:[#allocation4 + $0x1d0] sm:$0xf] }
 0x22d   : > { %4727 = vmatpush.bf16.msrb.mxu0 %v8701_v21  ;;  %v4194_v36 = vadd.f32 %v9830_v53, %v9800_v11  ;;  %4469 = vmatpush.bf16.msra.mxu3 %v8626_v62  ;;  %v8707_v11 = vld [vmem:[%s10986_s3 + $0x508] sm:$0xff] }
 0x22e   : > { %v4215_v59 = vpop.f32.mrf.mxu3  ;;  %4758 = vmatpush.bf16.msrb.mxu1 %v8707_v11 }
 0x22f   : > { %v9876_v61 = vadd.f32 %v4215_v59, %v4187_v55  ;;  %v8716_v55 = vld [vmem:[%s10986_s3 + $0x550] sm:$0xff]  ;;  %v1726_v59 = vld [vmem:[#allocation3 + $0xa0] sm:$0xff]  ;;  %v9962_v42 = vpop.f32.mrf.mxu0 }
 0x230   : > { %v1734_v13 = vpack.c.bf16 %v1726_v59, %v1726_v59  ;;  %4786 = vmatpush.bf16.msrb.mxu2 %v8716_v55  ;;  %v8529_v55 = vld [vmem:[#allocation4 + $0x29c] sm:$0xf]  ;;  %v6940_v59 = vor.u32 %v8503_v43, %v6937_v29  ;;  %v7043_v29 = vld [vmem:[#allocation4 + $0x298] sm:$0xf] }
 0x231   : > { %4728 = vmatpush.bf16.msrb.mxu0 %v8700_v32  ;;  %v7048_v39 = vor.u32 %v8529_v55, %v7045_v57  ;;  %v4199_v32 = vadd.f32 %v9830_v53, %v9825_v46  ;;  %v8456_v55 = vld [vmem:[#allocation4 + $0x54] sm:$0xf]  ;;  %v7044_v46 = vor.u32 %v8541_v33, %v7043_v29  ;;  %v8455_v29 = vld [vmem:[#allocation4 + $0x4c] sm:$0xf] }
 0x232   : > { %1742 = vst [vmem:[#allocation4 + $0x2f8] sm:$0xf] %v1734_v13 }
 0x233   : > { %1862 = vst [vmem:[#allocation4 + $0x2a8] sm:$0xf] %v1734_v13  ;;  %v8698_v13 = vld [vmem:[%s10986_s3 + $0x4c0] sm:$0xff] }
 0x234   : > { %4787 = vmatpush.bf16.msrb.mxu2 %v8715_v58 }
 0x236   : > { %v4217_v35 = vpop.f32.mrf.mxu3 }
 0x237   : > { %v9910_v31 = vadd.f32 %v4217_v35, %v4189_v48  ;;  %v8714_v35 = vld [vmem:[%s10986_s3 + $0x540] sm:$0xff]  ;;  %v9984_v25 = vpop.f32.mrf.mxu0 }
 0x238   : > { %4788 = vmatpush.bf16.msrb.mxu2 %v8714_v35 }
 0x239   : > { %v7037_v35 = vld [vmem:[#allocation4 + $0x2f4] sm:$0xf0] }
 0x23a   : > { %v7040_v11 = vor.u32 %v8528_v34, %v7037_v35  ;;  %v4184_v34 = vadd.f32 %v9830_v53, %v9702_v54  ;;  %v6819_v54 = vld [vmem:[#allocation4 + $0xf0] sm:$0xf] }
 0x23b   : > { %4620 = vmatmul.bf16.gmra.mxu0 %v6840_v45  ;;  %4364 = vmatmul.bf16.gmra.mxu3 %v6904_v56  ;;  %v8699_v45 = vld [vmem:[%s10986_s3 + $0x4c8] sm:$0xff]  ;;  %v9967_v56 = vpop.f32.mrf.mxu1 }
 0x23c   : > { %4649 = vmatmul.bf16.gmra.mxu1 %v6844_v52  ;;  %4683 = vmatmul.bf16.gmra.mxu2 %v6948_v37  ;;  %v8516_v52 = vld [vmem:[#allocation4 + $0x230] sm:$0xf0] }
 0x23d   : > { %4729 = vmatpush.bf16.msrb.mxu0 %v8699_v45  ;;  %v6944_v14 = vor.u32 %v8516_v52, %v6943_v44  ;;  %v6761_v45 = vld [vmem:[#allocation4 + $0xb4] sm:$0xf0] }
 0x23e   : > { %v4220_v2 = vpop.f32.mrf.mxu3 }
 0x23f   : > { %v9944_v48 = vadd.f32 %v4220_v2, %v4192_v18  ;;  %v8706_v18 = vld [vmem:[%s10986_s3 + $0x500] sm:$0xff]  ;;  %v9982_v2 = vpop.f32.mrf.mxu2  ;;  %v9996_v51 = vpop.f32.mrf.mxu0 }
 0x240   : > { %4759 = vmatpush.bf16.msrb.mxu1 %v8706_v18  ;;  %v1869_v18 = vld [vmem:[#allocation3 + $0x91] sm:$0xff] }
 0x241   : > { %4730 = vmatpush.bf16.msrb.mxu0 %v8698_v13 }
 0x243   : > { %v9988_v62 = vpop.f32.mrf.mxu1 }
 0x246   : > { %v4222_v47 = vpop.f32.mrf.mxu3 }
 0x247   : > { %v9972_v37 = vadd.f32 %v4222_v47, %v4194_v36  ;;  %v8463_v36 = vld [vmem:[#allocation4 + $0x88] sm:$0xf0]  ;;  %v6719_v47 = vld [vmem:[#allocation4 + $0x28] sm:$0xf]  ;;  %v9994_v49 = vpop.f32.mrf.mxu2 }
 0x248   : > { %v6720_v52 = vor.u32 %v8463_v36, %v6719_v47  ;;  %v8468_v47 = vld [vmem:[#allocation4 + $0xb0] sm:$0xf0] }
 0x24b   : > { %4625 = vmatmul.bf16.gmra.mxu0 %v6940_v59  ;;  %4369 = vmatmul.bf16.gmra.mxu3 %v7004_v17  ;;  %v9998_v57 = vpop.f32.mrf.mxu1  ;;  %v6764_v59 = vor.u32 %v8456_v55, %v6761_v45  ;;  %v8665_v17 = vld [vmem:[%s10986_s3 + $0x3b8] sm:$0xff]  ;;  %v8488_v45 = vld [vmem:[#allocation4 + $0x150] sm:$0xf0]  ;;  %v6753_v55 = vld [vmem:[#allocation4 + $0xac] sm:$0xf0] }
 0x24c   : > { %4654 = vmatmul.bf16.gmra.mxu1 %v6944_v14  ;;  %4688 = vmatmul.bf16.gmra.mxu2 %v7048_v39  ;;  %v1868_v39 = vld [vmem:[#allocation3 + $0x81] sm:$0xff]  ;;  %v6756_v53 = vor.u32 %v8455_v29, %v6753_v55 }
 0x24d   : > { %4578 = vmatpush.bf16.msrb.mxu3 %v8665_v17  ;;  %v8481_v17 = vld [vmem:[#allocation4 + $0x11c] sm:$0xf] }
 0x24e   : > { %v4225_v21 = vpop.f32.mrf.mxu3 }
 0x24f   : > { %v9986_v58 = vadd.f32 %v4225_v21, %v4197_v20  ;;  %v8664_v20 = vld [vmem:[%s10986_s3 + $0x3b0] sm:$0xff]  ;;  %v1876_v21 = vpack.c.bf16 %v1868_v39, %v1868_v39  ;;  %v10011_v35 = vpop.f32.mrf.mxu2 }
 0x251   : > { %4579 = vmatpush.bf16.msrb.mxu3 %v8664_v20  ;;  %1884 = vst [vmem:[#allocation4 + $0x1e4] sm:$0xf] %v1876_v21 }
 0x253   : > { %v10015_v36 = vpop.f32.mrf.mxu1 }
 0x256   : > { %v4227_v43 = vpop.f32.mrf.mxu3 }
 0x257   : > { %v9992_v44 = vadd.f32 %v4227_v43, %v4199_v32  ;;  %v1877_v32 = vpack.c.bf16 %v1869_v18, %v1869_v18  ;;  %v10013_v43 = vpop.f32.mrf.mxu0  ;;  %v8737_v18 = vld [vmem:[%s10986_s3 + $0x5f8] sm:$0xff]  ;;  %v10026_v20 = vpop.f32.mrf.mxu2 }
 0x258   : > { %10995 = vst [vmem:[#allocation11_spill] sm:$0xff] %v10026_v20  ;;  %4839 = vmatpush.bf16.msra.mxu0 %v8737_v18  ;;  %v8506_v18 = vld [vmem:[#allocation4 + $0x1e4] sm:$0xf] }
 0x259   : > { %1885 = vst [vmem:[#allocation4 + $0x248] sm:$0xf] %v1877_v32  ;;  %v8745_v32 = vld [vmem:[%s10986_s3 + $0x638] sm:$0xff] }
 0x25a   : > { %4868 = vmatpush.bf16.msra.mxu1 %v8745_v32 }
 0x25b   : > { %4630 = vmatmul.bf16.gmra.mxu0 %v7040_v11  ;;  %4470 = vmatmul.bf16.vlgmr.msra.gmra.mxu3 %v6720_v52  ;;  %v6861_v52 = vld [vmem:[#allocation4 + $0x17c] sm:$0xf0] }
 0x25c   : > { %4659 = vmatmul.bf16.gmra.mxu1 %v7044_v46  ;;  %4789 = vmatmul.bf16.vlgmr.msrb.gmra.mxu2 %v6764_v59  ;;  %v6759_v46 = vld [vmem:[#allocation4 + $0x50] sm:$0xf]  ;;  %v6820_v59 = vor.u32 %v8488_v45, %v6819_v54  ;;  %v6864_v39 = vor.u32 %v8481_v17, %v6861_v52  ;;  %v8735_v54 = vld [vmem:[%s10986_s3 + $0x5e8] sm:$0xff]  ;;  %v8513_v17 = vld [vmem:[#allocation4 + $0x218] sm:$0xf0] }
 0x25d   : > { %v8736_v45 = vld [vmem:[%s10986_s3 + $0x5f0] sm:$0xff] }
 0x25e   : > { %v4239_v13 = vpop.f32.mrf.mxu3  ;;  %v1871_v52 = vld [vmem:[#allocation3 + $0xb1] sm:$0xff]  ;;  %4840 = vmatpush.bf16.msra.mxu0 %v8736_v45 }
 0x25f   : > { %v10004_v14 = vadd.f32 %v4239_v13, %v9843_v7  ;;  %v4213_v7 = vadd.f32 %v9851_v40, %v4184_v34  ;;  %v6760_v13 = vor.u32 %v8468_v47, %v6759_v46  ;;  %v8663_v40 = vld [vmem:[%s10986_s3 + $0x3a8] sm:$0xff]  ;;  %v10028_v21 = vpop.f32.mrf.mxu0  ;;  %v10033_v34 = vpop.f32.mrf.mxu1  ;;  %v8744_v47 = vld [vmem:[%s10986_s3 + $0x630] sm:$0xff]  ;;  %v1879_v55 = vpack.c.bf16 %v1871_v52, %v1871_v52  ;;  %v6853_v46 = vld [vmem:[#allocation4 + $0x174] sm:$0xf0] }
 0x260   : > { %10996 = vst [vmem:[#allocation12_spill] sm:$0xff] %v10033_v34  ;;  %4580 = vmatpush.bf16.msrb.mxu3 %v8663_v40  ;;  %4869 = vmatpush.bf16.msra.mxu1 %v8744_v47  ;;  %v6961_v32 = vld [vmem:[#allocation4 + $0x244] sm:$0xf0]  ;;  %v8480_v45 = vld [vmem:[#allocation4 + $0x114] sm:$0xf] }
 0x261   : > { %1887 = vst [vmem:[#allocation4 + $0x310] sm:$0xf] %v1879_v55  ;;  %v6919_v47 = vld [vmem:[#allocation4 + $0x1b8] sm:$0xf]  ;;  %v6856_v52 = vor.u32 %v8480_v45, %v6853_v46 }
 0x262   : > { %4841 = vmatpush.bf16.msra.mxu0 %v8735_v54  ;;  %v6859_v55 = vld [vmem:[#allocation4 + $0x118] sm:$0xf]  ;;  %v6920_v20 = vor.u32 %v8513_v17, %v6919_v47  ;;  %v6964_v54 = vor.u32 %v8506_v18, %v6961_v32  ;;  %v1847_v17 = vld [vmem:[#allocation3 + $0xb0] sm:$0xff] }
 0x263   : > { %v1855_v45 = vpack.c.bf16 %v1847_v17, %v1847_v17  ;;  %v8733_v18 = vld [vmem:[%s10986_s3 + $0x5d8] sm:$0xff]  ;;  %v8732_v47 = vld [vmem:[%s10986_s3 + $0x5d0] sm:$0xff]  ;;  %v7019_v17 = vld [vmem:[#allocation4 + $0x280] sm:$0xf] }
 0x265   : > { %1863 = vst [vmem:[#allocation4 + $0x30c] sm:$0xf] %v1855_v45  ;;  %v8538_v45 = vld [vmem:[#allocation4 + $0x2e0] sm:$0xf0] }
 0x266   : > { %v4241_v33 = vpop.f32.mrf.mxu3 }
 0x267   : > { %v10018_v11 = vadd.f32 %v4241_v33, %v4213_v7  ;;  %v8662_v33 = vld [vmem:[%s10986_s3 + $0x3a0] sm:$0xff] }
 0x268   : > { %4581 = vmatpush.bf16.msrb.mxu3 %v8662_v33  ;;  %v10063_v33 = vpop.f32.mrf.mxu1 }
 0x269   : > { %10999 = vst [vmem:[#allocation15_spill] sm:$0xff] %v10063_v33  ;;  %v1822_v33 = vld [vmem:[#allocation3 + $0xa4] sm:$0xff] }
 0x26a   : > { %v1830_v46 = vpack.c.bf16 %v1822_v33, %v1822_v33  ;;  %v8658_v33 = vld [vmem:[%s10986_s3 + $0x380] sm:$0xff] }
 0x26b   : > { %4731 = vmatmul.bf16.vlgmr.msrb.gmra.mxu0 %v6756_v53  ;;  %4475 = vmatmul.bf16.gmra.mxu3 %v6820_v59  ;;  %v8743_v53 = vld [vmem:[%s10986_s3 + $0x628] sm:$0xff] }
 0x26c   : > { %4760 = vmatmul.bf16.vlgmr.msrb.gmra.mxu1 %v6760_v13  ;;  %4794 = vmatmul.bf16.gmra.mxu2 %v6864_v39  ;;  %v10056_v13 = vpop.f32.mrf.mxu0  ;;  %v8493_v39 = vld [vmem:[#allocation4 + $0x178] sm:$0xf0]  ;;  %1838 = vst [vmem:[#allocation4 + $0x308] sm:$0xf] %v1830_v46 }
 0x26d   : > { %10997 = vst [vmem:[#allocation13_spill] sm:$0xff] %v10056_v13  ;;  %4870 = vmatpush.bf16.msra.mxu1 %v8743_v53  ;;  %v8660_v13 = vld [vmem:[%s10986_s3 + $0x390] sm:$0xff] }
 0x26e   : > { %v4244_v7 = vpop.f32.mrf.mxu3  ;;  %1958 = vst [vmem:[#allocation4 + $0x2b8] sm:$0xf] %v1830_v46 }
 0x26f   : > { %v10036_v29 = vadd.f32 %v4244_v7, %v9876_v61  ;;  %v8661_v61 = vld [vmem:[%s10986_s3 + $0x398] sm:$0xff]  ;;  %v10061_v7 = vpop.f32.mrf.mxu2 }
 0x270   : > { %4582 = vmatpush.bf16.msrb.mxu3 %v8661_v61  ;;  %10998 = vst [vmem:[#allocation14_spill] sm:$0xff] %v10061_v7  ;;  %v6860_v61 = vor.u32 %v8493_v39, %v6859_v55  ;;  %v1821_v7 = vld [vmem:[#allocation3 + $0x94] sm:$0xff]  ;;  %v8659_v39 = vld [vmem:[%s10986_s3 + $0x388] sm:$0xff]  ;;  %v10096_v55 = vpop.f32.mrf.mxu1 }
 0x271   : > { %v1829_v53 = vpack.c.bf16 %v1821_v7, %v1821_v7  ;;  %11002 = vst [vmem:[#allocation18_spill] sm:$0xff] %v10096_v55 }
 0x273   : > { %1837 = vst [vmem:[#allocation4 + $0x2a4] sm:$0xf] %v1829_v53 }
 0x274   : > { %4583 = vmatpush.bf16.msrb.mxu3 %v8660_v13  ;;  %1957 = vst [vmem:[#allocation4 + $0x254] sm:$0xf] %v1829_v53  ;;  %v10086_v13 = vpop.f32.mrf.mxu0 }
 0x275   : > { %11000 = vst [vmem:[#allocation16_spill] sm:$0xff] %v10086_v13 }
 0x276   : > { %v4246_v59 = vpop.f32.mrf.mxu3  ;;  %1717 = vst [vmem:[#allocation4 + $0x2f4] sm:$0xf] %v1829_v53 }
 0x277   : > { %v10059_v40 = vadd.f32 %v4246_v59, %v9910_v31  ;;  %v8734_v31 = vld [vmem:[%s10986_s3 + $0x5e0] sm:$0xff] }
 0x278   : > { %v8742_v59 = vld [vmem:[%s10986_s3 + $0x620] sm:$0xff]  ;;  %4842 = vmatpush.bf16.msra.mxu0 %v8734_v31  ;;  %4584 = vmatpush.bf16.msrb.mxu3 %v8659_v39  ;;  %v8505_v31 = vld [vmem:[#allocation4 + $0x1dc] sm:$0xf]  ;;  %v8739_v39 = vld [vmem:[%s10986_s3 + $0x608] sm:$0xff] }
 0x279   : > { %4871 = vmatpush.bf16.msra.mxu1 %v8742_v59  ;;  %v8731_v59 = vld [vmem:[%s10986_s3 + $0x5c8] sm:$0xff] }
 0x27b   : > { %4736 = vmatmul.bf16.gmra.mxu0 %v6856_v52  ;;  %4480 = vmatmul.bf16.gmra.mxu3 %v6920_v20  ;;  %v8741_v20 = vld [vmem:[%s10986_s3 + $0x618] sm:$0xff]  ;;  %v10094_v52 = vpop.f32.mrf.mxu2 }
 0x27c   : > { %4765 = vmatmul.bf16.gmra.mxu1 %v6860_v61  ;;  %4799 = vmatmul.bf16.gmra.mxu2 %v6964_v54  ;;  %11001 = vst [vmem:[#allocation17_spill] sm:$0xff] %v10094_v52  ;;  %v6953_v61 = vld [vmem:[#allocation4 + $0x23c] sm:$0xf0]  ;;  %v10116_v34 = vpop.f32.mrf.mxu0 }
 0x27d   : > { %4843 = vmatpush.bf16.msra.mxu0 %v8733_v18  ;;  %4872 = vmatpush.bf16.msra.mxu1 %v8741_v20  ;;  %v6959_v54 = vld [vmem:[#allocation4 + $0x1e0] sm:$0xf]  ;;  %v8518_v18 = vld [vmem:[#allocation4 + $0x240] sm:$0xf0]  ;;  %v7061_v20 = vld [vmem:[#allocation4 + $0x30c] sm:$0xf0] }
 0x27e   : > { %v4249_v32 = vpop.f32.mrf.mxu3  ;;  %4585 = vmatpush.bf16.msrb.mxu3 %v8658_v33  ;;  %v6956_v33 = vor.u32 %v8505_v31, %v6953_v61  ;;  %v8730_v52 = vld [vmem:[%s10986_s3 + $0x5c0] sm:$0xff]  ;;  %v6960_v55 = vor.u32 %v8518_v18, %v6959_v54  ;;  %v10120_v31 = vpop.f32.mrf.mxu1 }
 0x27f   : > { %v10084_v7 = vadd.f32 %v4249_v32, %v9944_v48  ;;  %v8740_v48 = vld [vmem:[%s10986_s3 + $0x610] sm:$0xff]  ;;  %v8531_v32 = vld [vmem:[#allocation4 + $0x2ac] sm:$0xf] }
 0x280   : > { %v7064_v13 = vor.u32 %v8531_v32, %v7061_v20  ;;  %v8465_v32 = vld [vmem:[#allocation4 + $0x98] sm:$0xf0]  ;;  %v7059_v20 = vld [vmem:[#allocation4 + $0x2a8] sm:$0xf] }
 0x281   : > { %4844 = vmatpush.bf16.msra.mxu0 %v8732_v47  ;;  %4873 = vmatpush.bf16.msra.mxu1 %v8740_v48  ;;  %v7020_v47 = vor.u32 %v8538_v45, %v7019_v17  ;;  %v8738_v48 = vld [vmem:[%s10986_s3 + $0x600] sm:$0xff] }
 0x282   : > { %v8530_v45 = vld [vmem:[#allocation4 + $0x2a4] sm:$0xf] }
 0x285   : > { %4845 = vmatpush.bf16.msra.mxu0 %v8731_v59  ;;  %4874 = vmatpush.bf16.msra.mxu1 %v8739_v39  ;;  %v4269_v59 = vadd.f32 %v9747_v63, %v10004_v14  ;;  %v7053_v39 = vld [vmem:[#allocation4 + $0x304] sm:$0xf0]  ;;  %v8697_v63 = vld [vmem:[%s10986_s3 + $0x4b8] sm:$0xff]  ;;  %v4271_v14 = vadd.f32 %v9779_v9, %v10018_v11  ;;  %v4274_v9 = vadd.f32 %v9807_v23, %v10036_v29  ;;  %v6769_v11 = vld [vmem:[#allocation4 + $0xbc] sm:$0xf0] }
 0x286   : > { %v4251_v53 = vpop.f32.mrf.mxu3  ;;  %v10129_v17 = vpop.f32.mrf.mxu1  ;;  %4694 = vmatpush.bf16.msra.mxu3 %v8697_v63  ;;  %v8695_v29 = vld [vmem:[%s10986_s3 + $0x4a8] sm:$0xff] }
 0x287   : > { %v10108_v46 = vadd.f32 %v4251_v53, %v9972_v37  ;;  %v10118_v37 = vpop.f32.mrf.mxu2  ;;  %v10127_v53 = vpop.f32.mrf.mxu0 }
 0x289   : > { %4846 = vmatpush.bf16.msra.mxu0 %v8730_v52  ;;  %4875 = vmatpush.bf16.msra.mxu1 %v8738_v48  ;;  %v6735_v52 = vld [vmem:[#allocation4 + $0x38] sm:$0xf] }
 0x28b   : > { %4741 = vmatmul.bf16.gmra.mxu0 %v6956_v33  ;;  %4485 = vmatmul.bf16.gmra.mxu3 %v7020_v47  ;;  %v7056_v33 = vor.u32 %v8530_v45, %v7053_v39  ;;  %v4298_v47 = vadd.f32 %v9751_v28, %v4269_v59  ;;  %v4300_v59 = vadd.f32 %v9789_v0, %v4271_v14  ;;  %v8696_v39 = vld [vmem:[%s10986_s3 + $0x4b0] sm:$0xff] }
 0x28c   : > { %4770 = vmatmul.bf16.gmra.mxu1 %v6960_v55  ;;  %4804 = vmatmul.bf16.gmra.mxu2 %v7064_v13  ;;  %v8543_v55 = vld [vmem:[#allocation4 + $0x308] sm:$0xf0]  ;;  %v4303_v14 = vadd.f32 %v9812_v26, %v4274_v9 }
 0x28d   : > { %v7060_v48 = vor.u32 %v8543_v55, %v7059_v20  ;;  %4695 = vmatpush.bf16.msra.mxu3 %v8696_v39  ;;  %v8490_v20 = vld [vmem:[#allocation4 + $0x160] sm:$0xf0]  ;;  %v1893_v39 = vld [vmem:[#allocation3 + $0x92] sm:$0xff] }
 0x28e   : > { %v4254_v61 = vpop.f32.mrf.mxu3  ;;  %v10145_v28 = vpop.f32.mrf.mxu1  ;;  %v8470_v55 = vld [vmem:[#allocation4 + $0xc0] sm:$0xf0]  ;;  %v4332_v26 = vadd.f32 %v9805_v22, %v4303_v14  ;;  %v8693_v22 = vld [vmem:[%s10986_s3 + $0x498] sm:$0xff]  ;;  %v8495_v14 = vld [vmem:[#allocation4 + $0x188] sm:$0xf0] }
 0x28f   : > { %v10123_v54 = vadd.f32 %v4254_v61, %v9986_v58  ;;  %v6736_v58 = vor.u32 %v8465_v32, %v6735_v52  ;;  %v4327_v61 = vadd.f32 %v9749_v30, %v4298_v47  ;;  %v4329_v30 = vadd.f32 %v9781_v1, %v4300_v59  ;;  %v1892_v59 = vld [vmem:[#allocation3 + $0x82] sm:$0xff] }
 0x290   : > { %v1900_v9 = vpack.c.bf16 %v1892_v59, %v1892_v59 }
 0x291   : > { %4696 = vmatpush.bf16.msra.mxu3 %v8695_v29  ;;  %v6935_v29 = vld [vmem:[#allocation4 + $0x1c8] sm:$0xf] }
 0x292   : > { %1908 = vst [vmem:[#allocation4 + $0x1e8] sm:$0xf] %v1900_v9 }
 0x296   : > { %v4256_v18 = vpop.f32.mrf.mxu3 }
 0x297   : > { %v10132_v13 = vadd.f32 %v4256_v18, %v9992_v44  ;;  %v10141_v18 = vpop.f32.mrf.mxu0 }
 0x29b   : > { %4746 = vmatmul.bf16.gmra.mxu0 %v7056_v33  ;;  %4586 = vmatmul.bf16.vlgmr.msrb.gmra.mxu3 %v6736_v58  ;;  %v8457_v33 = vld [vmem:[#allocation4 + $0x5c] sm:$0xf]  ;;  %v6835_v58 = vld [vmem:[#allocation4 + $0x100] sm:$0xf] }
 0x29c   : > { %4775 = vmatmul.bf16.gmra.mxu1 %v7060_v48  ;;  %v6772_v0 = vor.u32 %v8457_v33, %v6769_v11  ;;  %v6775_v48 = vld [vmem:[#allocation4 + $0x60] sm:$0xf]  ;;  %v6836_v63 = vor.u32 %v8490_v20, %v6835_v58  ;;  %v1901_v11 = vpack.c.bf16 %v1893_v39, %v1893_v39 }
 0x29d   : > { %v6776_v23 = vor.u32 %v8470_v55, %v6775_v48  ;;  %v8694_v33 = vld [vmem:[%s10986_s3 + $0x4a0] sm:$0xff]  ;;  %v6869_v48 = vld [vmem:[#allocation4 + $0x184] sm:$0xf0] }
 0x29e   : > { %v4355_v44 = vpop.f32.mrf.mxu3  ;;  %1909 = vst [vmem:[#allocation4 + $0x24c] sm:$0xf] %v1901_v11  ;;  %4697 = vmatpush.bf16.msra.mxu3 %v8694_v33 }
 0x29f   : > { %v10143_v45 = vadd.f32 %v4355_v44, %v4327_v61  ;;  %v10156_v47 = vpop.f32.mrf.mxu0  ;;  %v1917_v61 = vld [vmem:[#allocation3 + $0x93] sm:$0xff]  ;;  %v10159_v44 = vpop.f32.mrf.mxu1 }
 0x2a0   : > { %v1925_v1 = vpack.c.bf16 %v1917_v61, %v1917_v61 }
 0x2a2   : > { %1933 = vst [vmem:[#allocation4 + $0x250] sm:$0xf] %v1925_v1  ;;  %4698 = vmatpush.bf16.msra.mxu3 %v8693_v22  ;;  %v4281_v22 = vadd.f32 %v9855_v24, %v10108_v46  ;;  %v4284_v24 = vadd.f32 %v9880_v6, %v10123_v54 }
 0x2a3   : > { %1813 = vst [vmem:[#allocation4 + $0x2a0] sm:$0xf] %v1925_v1  ;;  %v6875_v1 = vld [vmem:[#allocation4 + $0x128] sm:$0xf] }
 0x2a6   : > { %v4357_v32 = vpop.f32.mrf.mxu3 }
 0x2a7   : > { %v10154_v52 = vadd.f32 %v4357_v32, %v4329_v30  ;;  %v4276_v30 = vadd.f32 %v9821_v38, %v10059_v40  ;;  %v10173_v58 = vpop.f32.mrf.mxu0  ;;  %v10178_v38 = vpop.f32.mrf.mxu1  ;;  %v4279_v40 = vadd.f32 %v9839_v4, %v10084_v7  ;;  %v8692_v4 = vld [vmem:[%s10986_s3 + $0x490] sm:$0xff]  ;;  %v1918_v7 = vld [vmem:[#allocation3 + $0xa3] sm:$0xff] }
 0x2a8   : > { %v1926_v9 = vpack.c.bf16 %v1918_v7, %v1918_v7  ;;  %4699 = vmatpush.bf16.msra.mxu3 %v8692_v4  ;;  %v8520_v4 = vld [vmem:[#allocation4 + $0x250] sm:$0xf0] }
 0x2a9   : > { %v4305_v55 = vadd.f32 %v9823_v41, %v4276_v30  ;;  %v4308_v30 = vadd.f32 %v9841_v10, %v4279_v40  ;;  %v8691_v10 = vld [vmem:[%s10986_s3 + $0x488] sm:$0xff] }
 0x2aa   : > { %1934 = vst [vmem:[#allocation4 + $0x2b4] sm:$0xf] %v1926_v9 }
 0x2ab   : > { %4847 = vmatmul.bf16.vlgmr.msra.gmra.mxu0 %v6772_v0  ;;  %4591 = vmatmul.bf16.gmra.mxu3 %v6836_v63  ;;  %v4334_v0 = vadd.f32 %v9819_v50, %v4305_v55  ;;  %v8515_v63 = vld [vmem:[#allocation4 + $0x228] sm:$0xf0]  ;;  %v1919_v50 = vld [vmem:[#allocation3 + $0xb3] sm:$0xff]  ;;  %v4337_v40 = vadd.f32 %v9837_v27, %v4308_v30  ;;  %1814 = vst [vmem:[#allocation4 + $0x304] sm:$0xf] %v1926_v9 }
 0x2ac   : > { %4876 = vmatmul.bf16.vlgmr.msra.gmra.mxu1 %v6776_v23  ;;  %v8482_v23 = vld [vmem:[#allocation4 + $0x124] sm:$0xf]  ;;  %v6936_v39 = vor.u32 %v8515_v63, %v6935_v29  ;;  %v1927_v11 = vpack.c.bf16 %v1919_v50, %v1919_v50  ;;  %4700 = vmatpush.bf16.msra.mxu3 %v8691_v10  ;;  %v4310_v63 = vadd.f32 %v9857_v19, %v4281_v22  ;;  %v8507_v27 = vld [vmem:[#allocation4 + $0x1ec] sm:$0xf]  ;;  %v7035_v29 = vld [vmem:[#allocation4 + $0x290] sm:$0xf] }
 0x2ad   : > { %v6872_v59 = vor.u32 %v8482_v23, %v6869_v48  ;;  %v6969_v23 = vld [vmem:[#allocation4 + $0x24c] sm:$0xf0]  ;;  %v4313_v9 = vadd.f32 %v9891_v12, %v4284_v24  ;;  %v4385_v12 = vadd.f32 %v9962_v42, %v10143_v45 }
 0x2ae   : > { %v4360_v32 = vpop.f32.mrf.mxu3  ;;  %1935 = vst [vmem:[#allocation4 + $0x318] sm:$0xf] %v1927_v11  ;;  %v4339_v46 = vadd.f32 %v9853_v16, %v4310_v63  ;;  %v6975_v30 = vld [vmem:[#allocation4 + $0x1f0] sm:$0xf]  ;;  %v6972_v50 = vor.u32 %v8507_v27, %v6969_v23  ;;  %v4286_v16 = vadd.f32 %v9926_v3, %v10132_v13  ;;  %v6751_v3 = vld [vmem:[#allocation4 + $0x48] sm:$0xf] }
 0x2af   : > { %v10167_v20 = vadd.f32 %v4360_v32, %v4332_v26  ;;  %v6876_v26 = vor.u32 %v8495_v14, %v6875_v1  ;;  %v1943_v32 = vld [vmem:[#allocation3 + $0xb4] sm:$0xff]  ;;  %v10192_v33 = vpop.f32.mrf.mxu0  ;;  %v8690_v14 = vld [vmem:[%s10986_s3 + $0x480] sm:$0xff]  ;;  %v6976_v6 = vor.u32 %v8520_v4, %v6975_v30  ;;  %v4342_v54 = vadd.f32 %v9878_v5, %v4313_v9  ;;  %v8467_v27 = vld [vmem:[#allocation4 + $0xa8] sm:$0xf0] }
 0x2b0   : > { %v1951_v55 = vpack.c.bf16 %v1943_v32, %v1943_v32  ;;  %4701 = vmatpush.bf16.msra.mxu3 %v8690_v14  ;;  %v4315_v10 = vadd.f32 %v9928_v15, %v4286_v16  ;;  %v7075_v13 = vld [vmem:[#allocation4 + $0x2b8] sm:$0xf]  ;;  %v6752_v23 = vor.u32 %v8467_v27, %v6751_v3  ;;  %v4414_v15 = vadd.f32 %v9967_v56, %v4385_v12  ;;  %v8492_v16 = vld [vmem:[#allocation4 + $0x170] sm:$0xf0]  ;;  %v11003_v27 = vld [vmem:[#allocation12_spill] sm:$0xff] }
 0x2b2   : > { %1959 = vst [vmem:[#allocation4 + $0x31c] sm:$0xf] %v1951_v55 }
 0x2b5   : > { %v7069_v63 = vld [vmem:[#allocation4 + $0x314] sm:$0xf0] }
 0x2b6   : > { %v4362_v41 = vpop.f32.mrf.mxu3 }
 0x2b7   : > { %v10183_v61 = vadd.f32 %v4362_v41, %v4334_v0  ;;  %v10197_v0 = vpop.f32.mrf.mxu1 }
 0x2b9   : > { %v8545_v5 = vld [vmem:[#allocation4 + $0x318] sm:$0xf0] }
 0x2ba   : > { %v7076_v42 = vor.u32 %v8545_v5, %v7075_v13 }
 0x2bb   : > { %4852 = vmatmul.bf16.gmra.mxu0 %v6872_v59  ;;  %4596 = vmatmul.bf16.gmra.mxu3 %v6936_v39  ;;  %v8540_v59 = vld [vmem:[#allocation4 + $0x2f0] sm:$0xf0]  ;;  %v10208_v39 = vpop.f32.mrf.mxu0 }
 0x2bc   : > { %4881 = vmatmul.bf16.gmra.mxu1 %v6876_v26  ;;  %v7036_v26 = vor.u32 %v8540_v59, %v7035_v29  ;;  %v4387_v29 = vadd.f32 %v9984_v25, %v10154_v52  ;;  %v4443_v59 = vadd.f32 %v9960_v8, %v4414_v15  ;;  %v6851_v8 = vld [vmem:[#allocation4 + $0x110] sm:$0xf] }
 0x2bd   : > { %v6852_v52 = vor.u32 %v8492_v16, %v6851_v8 }
 0x2be   : > { %v4365_v48 = vpop.f32.mrf.mxu3  ;;  %v4416_v4 = vadd.f32 %v9988_v62, %v4387_v29  ;;  %v8727_v62 = vld [vmem:[%s10986_s3 + $0x5a8] sm:$0xff] }
 0x2bf   : > { %v10199_v41 = vadd.f32 %v4365_v48, %v4337_v40  ;;  %v10212_v7 = vpop.f32.mrf.mxu1  ;;  %v4344_v40 = vadd.f32 %v9924_v60, %v4315_v10  ;;  %v8532_v48 = vld [vmem:[#allocation4 + $0x2b4] sm:$0xf] }
 0x2c0   : > { %v4445_v9 = vadd.f32 %v9982_v2, %v4416_v4  ;;  %v10259_v2 = vpop.f32.mrf.mxu2  ;;  %v11006_v4 = vld [vmem:[#allocation15_spill] sm:$0xff] }
 0x2c3   : > { %v10220_v55 = vpop.f32.mrf.mxu0 }
 0x2c6   : > { %v4367_v1 = vpop.f32.mrf.mxu3 }
 0x2c7   : > { %v10210_v19 = vadd.f32 %v4367_v1, %v4339_v46  ;;  %v10223_v22 = vpop.f32.mrf.mxu1  ;;  %v7072_v46 = vor.u32 %v8532_v48, %v7069_v63  ;;  %v8729_v1 = vld [vmem:[%s10986_s3 + $0x5b8] sm:$0xff] }
 0x2c8   : > { %4810 = vmatpush.bf16.msrb.mxu3 %v8729_v1  ;;  %v10279_v13 = vpop.f32.mrf.mxu2  ;;  %v11005_v1 = vld [vmem:[#allocation11_spill] sm:$0xff] }
 0x2cb   : > { %4857 = vmatmul.bf16.gmra.mxu0 %v6972_v50  ;;  %4601 = vmatmul.bf16.gmra.mxu3 %v7036_v26  ;;  %v10234_v45 = vpop.f32.mrf.mxu0  ;;  %v8728_v50 = vld [vmem:[%s10986_s3 + $0x5b0] sm:$0xff]  ;;  %v4390_v26 = vadd.f32 %v9996_v51, %v10167_v20 }
 0x2cc   : > { %4886 = vmatmul.bf16.gmra.mxu1 %v6976_v6  ;;  %4811 = vmatpush.bf16.msrb.mxu3 %v8728_v50 }
 0x2ce   : > { %v4370_v11 = vpop.f32.mrf.mxu3 }
 0x2cf   : > { %v10218_v32 = vadd.f32 %v4370_v11, %v4342_v54  ;;  %v10236_v60 = vpop.f32.mrf.mxu1  ;;  %v4419_v54 = vadd.f32 %v9998_v57, %v4390_v26  ;;  %v4392_v11 = vadd.f32 %v10013_v43, %v10183_v61  ;;  %v8726_v57 = vld [vmem:[%s10986_s3 + $0x5a0] sm:$0xff]  ;;  %v8725_v43 = vld [vmem:[%s10986_s3 + $0x598] sm:$0xff] }
 0x2d0   : > { %4812 = vmatpush.bf16.msrb.mxu3 %v8727_v62  ;;  %v8722_v26 = vld [vmem:[%s10986_s3 + $0x580] sm:$0xff] }
 0x2d1   : > { %v4448_v51 = vadd.f32 %v9994_v49, %v4419_v54  ;;  %v4421_v12 = vadd.f32 %v10015_v36, %v4392_v11  ;;  %v4395_v49 = vadd.f32 %v10028_v21, %v10199_v41  ;;  %v6951_v36 = vld [vmem:[#allocation4 + $0x1d8] sm:$0xf]  ;;  %v7051_v62 = vld [vmem:[#allocation4 + $0x2a0] sm:$0xf]  ;;  %v8542_v11 = vld [vmem:[#allocation4 + $0x300] sm:$0xf0] }
 0x2d2   : > { %v11004_v21 = vld [vmem:[#allocation13_spill] sm:$0xff] }
 0x2d3   : > { %v4450_v48 = vadd.f32 %v10011_v35, %v4421_v12  ;;  %v8723_v35 = vld [vmem:[%s10986_s3 + $0x588] sm:$0xff]  ;;  %v4397_v41 = vadd.f32 %v11004_v21, %v10210_v19  ;;  %v11008_v19 = vld [vmem:[#allocation14_spill] sm:$0xff]  ;;  %v7052_v12 = vor.u32 %v8542_v11, %v7051_v62  ;;  %v8494_v11 = vld [vmem:[#allocation4 + $0x180] sm:$0xf0] }
 0x2d4   : > { %4813 = vmatpush.bf16.msrb.mxu3 %v8726_v57  ;;  %v11009_v57 = vld [vmem:[#allocation18_spill] sm:$0xff] }
 0x2d5   : > { %v4426_v50 = vadd.f32 %v11006_v4, %v4397_v41 }
 0x2d6   : > { %v4372_v14 = vpop.f32.mrf.mxu3 }
 0x2d7   : > { %v10228_v24 = vadd.f32 %v4372_v14, %v4344_v40  ;;  %v10267_v40 = vpop.f32.mrf.mxu0  ;;  %v10272_v61 = vpop.f32.mrf.mxu1  ;;  %v8517_v14 = vld [vmem:[#allocation4 + $0x238] sm:$0xf0]  ;;  %v4455_v8 = vadd.f32 %v11008_v19, %v4426_v50  ;;  %v6767_v50 = vld [vmem:[#allocation4 + $0x58] sm:$0xf] }
 0x2d8   : > { %4814 = vmatpush.bf16.msrb.mxu3 %v8725_v43  ;;  %v6952_v5 = vor.u32 %v8517_v14, %v6951_v36  ;;  %v11010_v36 = vld [vmem:[#allocation17_spill] sm:$0xff] }
 0x2db   : > { %4862 = vmatmul.bf16.gmra.mxu0 %v7072_v46  ;;  %4702 = vmatmul.bf16.vlgmr.msra.gmra.mxu3 %v6752_v23  ;;  %v4424_v46 = vadd.f32 %v11003_v27, %v4395_v49  ;;  %v8724_v23 = vld [vmem:[%s10986_s3 + $0x590] sm:$0xff] }
 0x2dc   : > { %4891 = vmatmul.bf16.gmra.mxu1 %v7076_v42  ;;  %4815 = vmatpush.bf16.msrb.mxu3 %v8724_v23 }
 0x2dd   : > { %v4453_v42 = vadd.f32 %v11005_v1, %v4424_v46 }
 0x2de   : > { %v4471_v30 = vpop.f32.mrf.mxu3 }
 0x2df   : > { %v10241_v56 = vadd.f32 %v4471_v30, %v4443_v59  ;;  %v10285_v15 = vpop.f32.mrf.mxu0  ;;  %v10293_v29 = vpop.f32.mrf.mxu1 }
 0x2e0   : > { %4816 = vmatpush.bf16.msrb.mxu3 %v8723_v35 }
 0x2e1   : > { %v4501_v1 = vadd.f32 %v10127_v53, %v10241_v56 }
 0x2e4   : > { %4817 = vmatpush.bf16.msrb.mxu3 %v8722_v26 }
 0x2e6   : > { %v4473_v6 = vpop.f32.mrf.mxu3 }
 0x2e7   : > { %v10250_v25 = vadd.f32 %v4473_v6, %v4445_v9  ;;  %v4563_v9 = vpop.f32.mrf.mxu2  ;;  %v11007_v6 = vld [vmem:[#allocation16_spill] sm:$0xff] }
 0x2e8   : > { %v4400_v16 = vadd.f32 %v11007_v6, %v10218_v32  ;;  %v4402_v32 = vadd.f32 %v10116_v34, %v10228_v24  ;;  %v4530_v6 = vadd.f32 %v10129_v17, %v4501_v1 }
 0x2ea   : > { %v4429_v43 = vadd.f32 %v11009_v57, %v4400_v16  ;;  %v4431_v21 = vadd.f32 %v10120_v31, %v4402_v32  ;;  %v4559_v19 = vadd.f32 %v10259_v2, %v4530_v6 }
 0x2eb   : > { %4707 = vmatmul.bf16.gmra.mxu3 %v6852_v52  ;;  %v10304_v52 = vpop.f32.mrf.mxu0 }
 0x2ec   : > { %v4458_v14 = vadd.f32 %v11010_v36, %v4429_v43 }
 0x2ee   : > { %v4476_v20 = vpop.f32.mrf.mxu3 }
 0x2ef   : > { %v10261_v10 = vadd.f32 %v4476_v20, %v4448_v51  ;;  %v10308_v20 = vpop.f32.mrf.mxu1  ;;  %v10311_v49 = vpop.f32.mrf.mxu2 }
 0x2f3   : > { %v10316_v35 = vpop.f32.mrf.mxu0 }
 0x2f6   : > { %v4478_v63 = vpop.f32.mrf.mxu3 }
 0x2f7   : > { %v10277_v3 = vadd.f32 %v4478_v63, %v4450_v48  ;;  %v1894_v48 = vld [vmem:[#allocation3 + $0xa2] sm:$0xff]  ;;  %v1895_v63 = vld [vmem:[#allocation3 + $0xb2] sm:$0xff]  ;;  %v10319_v41 = vpop.f32.mrf.mxu1  ;;  %v4568_v34 = vpop.f32.mrf.mxu2 }
 0x2f8   : > { %v1903_v27 = vpack.c.bf16 %v1895_v63, %v1895_v63 }
 0x2fa   : > { %1911 = vst [vmem:[#allocation4 + $0x314] sm:$0xf] %v1903_v27  ;;  %v6967_v27 = vld [vmem:[#allocation4 + $0x1e8] sm:$0xf] }
 0x2fb   : > { %4712 = vmatmul.bf16.gmra.mxu3 %v6952_v5  ;;  %v1902_v5 = vpack.c.bf16 %v1894_v48, %v1894_v48  ;;  %v10327_v16 = vpop.f32.mrf.mxu0 }
 0x2fd   : > { %1910 = vst [vmem:[#allocation4 + $0x2b0] sm:$0xf] %v1902_v5 }
 0x2fe   : > { %v4481_v59 = vpop.f32.mrf.mxu3 }
 0x2ff   : > { %v10295_v30 = vadd.f32 %v4481_v59, %v4453_v42  ;;  %v4460_v42 = vadd.f32 %v10118_v37, %v4431_v21  ;;  %v8469_v59 = vld [vmem:[#allocation4 + $0xb8] sm:$0xf0]  ;;  %v10329_v31 = vpop.f32.mrf.mxu1  ;;  %v10334_v37 = vpop.f32.mrf.mxu2 }
 0x300   : > { %v6768_v26 = vor.u32 %v8469_v59, %v6767_v50 }
 0x303   : > { %v10336_v56 = vpop.f32.mrf.mxu0 }
 0x306   : > { %v4483_v54 = vpop.f32.mrf.mxu3 }
 0x307   : > { %v10306_v51 = vadd.f32 %v4483_v54, %v4455_v8  ;;  %v4506_v54 = vadd.f32 %v10156_v47, %v10261_v10  ;;  %v10340_v62 = vpop.f32.mrf.mxu1  ;;  %v4573_v2 = vpop.f32.mrf.mxu2  ;;  %v4511_v10 = vadd.f32 %v10192_v33, %v10295_v30 }
 0x309   : > { %v4535_v43 = vadd.f32 %v10159_v44, %v4506_v54 }
 0x30b   : > { %4717 = vmatmul.bf16.gmra.mxu3 %v7052_v12  ;;  %v6867_v12 = vld [vmem:[#allocation4 + $0x120] sm:$0xf]  ;;  %v4564_v48 = vadd.f32 %v4563_v9, %v4535_v43  ;;  %v10345_v63 = vpop.f32.mrf.mxu0  ;;  %v4540_v9 = vadd.f32 %v10197_v0, %v4511_v10 }
 0x30c   : > { %v6868_v57 = vor.u32 %v8494_v11, %v6867_v12 }
 0x30e   : > { %v4486_v46 = vpop.f32.mrf.mxu3 }
 0x30f   : > { %v4487_v23 = vadd.f32 %v4486_v46, %v4458_v14  ;;  %v10349_v14 = vpop.f32.mrf.mxu1  ;;  %v10351_v47 = vpop.f32.mrf.mxu2  ;;  %v8519_v46 = vld [vmem:[#allocation4 + $0x248] sm:$0xf0] }
 0x310   : > { %11011 = vst [vmem:[#allocation12_spill] sm:$0xff] %v10349_v14  ;;  %v6968_v21 = vor.u32 %v8519_v46, %v6967_v27 }
 0x311   : > { %11012 = vst [vmem:[#allocation13_spill] sm:$0xff] %v10351_v47  ;;  %v4516_v33 = vadd.f32 %v10220_v55, %v4487_v23 }
 0x313   : > { %v10357_v44 = vpop.f32.mrf.mxu0  ;;  %v4545_v0 = vadd.f32 %v10223_v22, %v4516_v33 }
 0x314   : > { %11013 = vst [vmem:[#allocation11_spill] sm:$0xff] %v10357_v44 }
 0x316   : > { %v4488_v24 = vpop.f32.mrf.mxu3 }
 0x317   : > { %v10324_v4 = vadd.f32 %v4488_v24, %v4460_v42  ;;  %v10360_v1 = vpop.f32.mrf.mxu1  ;;  %v4569_v42 = vadd.f32 %v4568_v34, %v4540_v9  ;;  %v4674_v24 = vpop.f32.mrf.mxu2  ;;  %v4574_v34 = vadd.f32 %v4573_v2, %v4545_v0 }
 0x318   : > { %11014 = vst [vmem:[#allocation15_spill] sm:$0xff] %v10360_v1 }
 0x31b   : > { %4818 = vmatmul.bf16.vlgmr.msrb.gmra.mxu3 %v6768_v26  ;;  %v4732_v26 = vpop.f32.mrf.mxu0 }
 0x31e   : > { %v4587_v8 = vpop.f32.mrf.mxu3 }
 0x31f   : > { %v10332_v53 = vadd.f32 %v4587_v8, %v4559_v19  ;;  %v10364_v6 = vpop.f32.mrf.mxu1  ;;  %v7067_v19 = vld [vmem:[#allocation4 + $0x2b0] sm:$0xf]  ;;  %v8544_v8 = vld [vmem:[#allocation4 + $0x310] sm:$0xf0]  ;;  %v4676_v54 = vpop.f32.mrf.mxu2 }
 0x320   : > { %v7068_v11 = vor.u32 %v8544_v8, %v7067_v19 }
 0x323   : > { %v10370_v12 = vpop.f32.mrf.mxu0 }
 0x326   : > { %v10342_v17 = vpop.f32.mrf.mxu3 }
 0x32b   : > { %4823 = vmatmul.bf16.gmra.mxu3 %v6868_v57  ;;  %v10372_v57 = vpop.f32.mrf.mxu1  ;;  %v10378_v55 = vpop.f32.mrf.mxu0 }
 0x32e   : > { %v4592_v32 = vpop.f32.mrf.mxu3 }
 0x32f   : > { %v10347_v36 = vadd.f32 %v4592_v32, %v4564_v48  ;;  %v10376_v32 = vpop.f32.mrf.mxu2 }
 0x333   : > { %v10382_v10 = vpop.f32.mrf.mxu1  ;;  %v10386_v46 = vpop.f32.mrf.mxu0 }
 0x336   : > { %v10355_v5 = vpop.f32.mrf.mxu3 }
 0x337   : > { %v10384_v27 = vpop.f32.mrf.mxu2 }
 0x33b   : > { %4828 = vmatmul.bf16.gmra.mxu3 %v6968_v21  ;;  %v10388_v21 = vpop.f32.mrf.mxu1 }
 0x33e   : > { %v4597_v59 = vpop.f32.mrf.mxu3 }
 0x33f   : > { %v10362_v50 = vadd.f32 %v4597_v59, %v4569_v42  ;;  %v10390_v2 = vpop.f32.mrf.mxu2  ;;  %v10392_v42 = vpop.f32.mrf.mxu0 }
 0x343   : > { %v10394_v59 = vpop.f32.mrf.mxu1 }
 0x344   : > { %11016 = vst [vmem:[#allocation14_spill] sm:$0xff] %v10394_v59 }
 0x346   : > { %v10367_v30 = vpop.f32.mrf.mxu3 }
 0x347   : > { %v10396_v19 = vpop.f32.mrf.mxu2  ;;  %v10398_v8 = vpop.f32.mrf.mxu0 }
 0x348   : > { %11017 = vst [vmem:[#allocation18_spill] sm:$0xff] %v10396_v19 }
 0x349   : > { %11018 = vst [vmem:[#allocation17_spill] sm:$0xff] %v10398_v8 }
 0x34b   : > { %4833 = vmatmul.bf16.gmra.mxu3 %v7068_v11  ;;  %v10400_v11 = vpop.f32.mrf.mxu1 }
 0x34c   : > { %11019 = vst [vmem:[#allocation19_spill] sm:$0xff] %v10400_v11  ;;  %v4617_v11 = vadd.f32 %v10267_v40, %v10332_v53 }
 0x34e   : > { %v4602_v43 = vpop.f32.mrf.mxu3  ;;  %v4646_v19 = vadd.f32 %v10272_v61, %v4617_v11 }
 0x34f   : > { %v10374_v48 = vadd.f32 %v4602_v43, %v4574_v34  ;;  %v10404_v34 = vpop.f32.mrf.mxu2  ;;  %v10406_v43 = vpop.f32.mrf.mxu0 }
 0x350   : > { %11020 = vst [vmem:[#allocation20_spill] sm:$0xff] %v10404_v34 }
 0x351   : > { %11021 = vst [vmem:[#allocation21_spill] sm:$0xff] %v10406_v43 }
 0x353   : > { %v10410_v44 = vpop.f32.mrf.mxu1 }
 0x354   : > { %11022 = vst [vmem:[#allocation22_spill] sm:$0xff] %v10410_v44 }
 0x356   : > { %v10380_v23 = vpop.f32.mrf.mxu3 }
 0x357   : > { %11015 = vst [vmem:[#allocation16_spill] sm:$0xff] %v10380_v23  ;;  %v4503_v23 = vadd.f32 %v10141_v18, %v10250_v25  ;;  %v10414_v14 = vpop.f32.mrf.mxu2  ;;  %v10421_v47 = vpop.f32.mrf.mxu0  ;;  %v8753_v18 = vld [vmem:[%s10988_s5 + $0x38] sm:$0xff] }
 0x358   : > { %11023 = vst [vmem:[#allocation23_spill] sm:$0xff] %v10414_v14  ;;  %6072 = vmatpush.bf16.msra.mxu2 %v8753_v18  ;;  %v4622_v14 = vadd.f32 %v10304_v52, %v10347_v36 }
 0x359   : > { %v4532_v59 = vadd.f32 %v10145_v28, %v4503_v23  ;;  %11024 = vst [vmem:[#allocation24_spill] sm:$0xff] %v10421_v47  ;;  %v8761_v28 = vld [vmem:[%s10988_s5 + $0x78] sm:$0xff] }
 0x35a   : > { %6085 = vmatpush.bf16.msra.mxu3 %v8761_v28 }
 0x35b   : > { %v4561_v43 = vadd.f32 %v10279_v13, %v4532_v59  ;;  %v10424_v34 = vpop.f32.mrf.mxu1  ;;  %v4675_v13 = vadd.f32 %v4674_v24, %v4646_v19 }
 0x35c   : > { %11025 = vst [vmem:[#allocation25_spill] sm:$0xff] %v10424_v34 }
 0x35d   : > { %v4590_v44 = vadd.f32 %v10342_v17, %v4561_v43  ;;  %v4508_v17 = vadd.f32 %v10173_v58, %v10277_v3 }
 0x35e   : > { %v4703_v22 = vpop.f32.mrf.mxu3 }
 0x35f   : > { %v4790_v25 = vpop.f32.mrf.mxu2  ;;  %v4619_v53 = vadd.f32 %v10285_v15, %v4590_v44  ;;  %v4704_v61 = vadd.f32 %v4703_v22, %v4675_v13  ;;  %v4848_v23 = vpop.f32.mrf.mxu0  ;;  %v4537_v43 = vadd.f32 %v10178_v38, %v4508_v17  ;;  %v8752_v38 = vld [vmem:[%s10988_s5 + $0x30] sm:$0xff]  ;;  %v8757_v17 = vld [vmem:[%s10988_s5 + $0x58] sm:$0xff] }
 0x360   : > { %6073 = vmatpush.bf16.msra.mxu2 %v8752_v38 }
 0x361   : > { %v4648_v59 = vadd.f32 %v10293_v29, %v4619_v53  ;;  %v4733_v34 = vadd.f32 %v4732_v26, %v4704_v61  ;;  %v4566_v24 = vadd.f32 %v10311_v49, %v4537_v43  ;;  %v4651_v29 = vadd.f32 %v10308_v20, %v4622_v14  ;;  %v8760_v26 = vld [vmem:[%s10988_s5 + $0x70] sm:$0xff]  ;;  %v8751_v49 = vld [vmem:[%s10988_s5 + $0x28] sm:$0xff] }
 0x362   : > { %6086 = vmatpush.bf16.msra.mxu3 %v8760_v26  ;;  %v8759_v20 = vld [vmem:[%s10988_s5 + $0x68] sm:$0xff] }
 0x363   : > { %v4877_v11 = vpop.f32.mrf.mxu1  ;;  %v4677_v15 = vadd.f32 %v4676_v54, %v4648_v59  ;;  %v4762_v58 = vadd.f32 %v10364_v6, %v4733_v34  ;;  %v4595_v3 = vadd.f32 %v10355_v5, %v4566_v24  ;;  %v4680_v22 = vadd.f32 %v10376_v32, %v4651_v29 }
 0x364   : > { %6074 = vmatpush.bf16.msra.mxu2 %v8751_v49 }
 0x365   : > { %v4791_v54 = vadd.f32 %v4790_v25, %v4762_v58  ;;  %v4624_v6 = vadd.f32 %v10316_v35, %v4595_v3  ;;  %v8750_v25 = vld [vmem:[%s10988_s5 + $0x20] sm:$0xff]  ;;  %v8792_v3 = vld [vmem:[%s10988_s5 + $0x170] sm:$0xff] }
 0x366   : > { %v4705_v9 = vpop.f32.mrf.mxu3  ;;  %6087 = vmatpush.bf16.msra.mxu3 %v8759_v20  ;;  %v8758_v35 = vld [vmem:[%s10988_s5 + $0x60] sm:$0xff] }
 0x367   : > { %v4792_v44 = vpop.f32.mrf.mxu2  ;;  %v4706_v19 = vadd.f32 %v4705_v9, %v4677_v15  ;;  %v4850_v52 = vpop.f32.mrf.mxu0  ;;  %v4653_v32 = vadd.f32 %v10319_v41, %v4624_v6  ;;  %v4627_v41 = vadd.f32 %v10327_v16, %v10362_v50  ;;  %v8785_v16 = vld [vmem:[%s10988_s5 + $0x138] sm:$0xff]  ;;  %v8748_v50 = vld [vmem:[%s10988_s5 + $0x10] sm:$0xff]  ;;  %v8791_v6 = vld [vmem:[%s10988_s5 + $0x168] sm:$0xff] }
 0x368   : > { %6075 = vmatpush.bf16.msra.mxu2 %v8750_v25  ;;  %6124 = vmatpush.bf16.msrb.mxu0 %v8785_v16  ;;  %v8781_v16 = vld [vmem:[%s10988_s5 + $0x118] sm:$0xff] }
 0x369   : > { %v4735_v36 = vadd.f32 %v10370_v12, %v4706_v19  ;;  %v4513_v12 = vadd.f32 %v10208_v39, %v10306_v51  ;;  %v4656_v24 = vadd.f32 %v10329_v31, %v4627_v41  ;;  %v11027_v41 = vld [vmem:[#allocation13_spill] sm:$0xff] }
 0x36a   : > { %6088 = vmatpush.bf16.msra.mxu3 %v8758_v35 }
 0x36b   : > { %v4879_v14 = vpop.f32.mrf.mxu1  ;;  %v4764_v28 = vadd.f32 %v10372_v57, %v4735_v36  ;;  %v4542_v39 = vadd.f32 %v10212_v7, %v4513_v12  ;;  %v4682_v7 = vadd.f32 %v10384_v27, %v4653_v32  ;;  %v4685_v29 = vadd.f32 %v10390_v2, %v4656_v24  ;;  %v8755_v36 = vld [vmem:[%s10988_s5 + $0x48] sm:$0xff]  ;;  %v8769_v12 = vld [vmem:[%s10988_s5 + $0xb8] sm:$0xff] }
 0x36d   : > { %v4793_v57 = vadd.f32 %v4792_v44, %v4764_v28 }
 0x36e   : > { %v4708_v33 = vpop.f32.mrf.mxu3  ;;  %6089 = vmatpush.bf16.msra.mxu3 %v8757_v17 }
 0x36f   : > { %v4709_v34 = vadd.f32 %v4708_v33, %v4680_v22  ;;  %v4795_v53 = vpop.f32.mrf.mxu2  ;;  %v8749_v33 = vld [vmem:[%s10988_s5 + $0x18] sm:$0xff]  ;;  %v4853_v61 = vpop.f32.mrf.mxu0 }
 0x370   : > { %6076 = vmatpush.bf16.msra.mxu2 %v8749_v33 }
 0x371   : > { %v4738_v51 = vadd.f32 %v10378_v55, %v4709_v34  ;;  %v8777_v34 = vld [vmem:[%s10988_s5 + $0xf8] sm:$0xff] }
 0x373   : > { %v4882_v59 = vpop.f32.mrf.mxu1  ;;  %v4767_v44 = vadd.f32 %v10382_v10, %v4738_v51 }
 0x374   : > { %6077 = vmatpush.bf16.msra.mxu2 %v8748_v50  ;;  %v11031_v50 = vld [vmem:[#allocation17_spill] sm:$0xff] }
 0x375   : > { %v4796_v31 = vadd.f32 %v4795_v53, %v4767_v44  ;;  %v11030_v44 = vld [vmem:[#allocation16_spill] sm:$0xff] }
 0x376   : > { %v10402_v0 = vpop.f32.mrf.mxu3 }
 0x377   : > { %v4711_v43 = vadd.f32 %v10402_v0, %v4682_v7  ;;  %v4797_v10 = vpop.f32.mrf.mxu2  ;;  %v8784_v0 = vld [vmem:[%s10988_s5 + $0x130] sm:$0xff]  ;;  %v4855_v49 = vpop.f32.mrf.mxu0 }
 0x378   : > { %6125 = vmatpush.bf16.msrb.mxu0 %v8784_v0  ;;  %v8775_v0 = vld [vmem:[%s10988_s5 + $0xe8] sm:$0xff] }
 0x379   : > { %v4740_v27 = vadd.f32 %v10386_v46, %v4711_v43  ;;  %v8747_v46 = vld [vmem:[%s10988_s5 + $0x8] sm:$0xff] }
 0x37a   : > { %6078 = vmatpush.bf16.msra.mxu2 %v8747_v46  ;;  %v8780_v46 = vld [vmem:[%s10988_s5 + $0x110] sm:$0xff] }
 0x37b   : > { %v4884_v22 = vpop.f32.mrf.mxu1 }
 0x37e   : > { %v10408_v1 = vpop.f32.mrf.mxu3 }
 0x37f   : > { %v4714_v2 = vadd.f32 %v10408_v1, %v4685_v29  ;;  %v4800_v51 = vpop.f32.mrf.mxu2 }
 0x381   : > { %v4743_v28 = vadd.f32 %v10392_v42, %v4714_v2 }
 0x386   : > { %v10417_v8 = vpop.f32.mrf.mxu3 }
 0x38e   : > { %v10434_v40 = vpop.f32.mrf.mxu3 }
 0x396   : > { %v10441_v47 = vpop.f32.mrf.mxu3 }
 0x39e   : > { %v4819_v5 = vpop.f32.mrf.mxu3 }
 0x39f   : > { %v4820_v9 = vadd.f32 %v4819_v5, %v4791_v54  ;;  %v4518_v54 = vadd.f32 %v10234_v45, %v10324_v4  ;;  %v4769_v5 = vadd.f32 %v10388_v21, %v4740_v27  ;;  %v8746_v45 = vld [vmem:[%s10988_s5] sm:$0xff] }
 0x3a0   : > { %v8754_v21 = vld [vmem:[%s10988_s5 + $0x40] sm:$0xff]  ;;  %6079 = vmatpush.bf16.msra.mxu2 %v8746_v45 }
 0x3a1   : > { %v4849_v18 = vadd.f32 %v4848_v23, %v4820_v9  ;;  %v4798_v32 = vadd.f32 %v4797_v10, %v4769_v5  ;;  %v11034_v5 = vld [vmem:[#allocation19_spill] sm:$0xff] }
 0x3a2   : > { %v11035_v45 = vld [vmem:[#allocation15_spill] sm:$0xff] }
 0x3a3   : > { %v4878_v13 = vadd.f32 %v4877_v11, %v4849_v18  ;;  %v4571_v11 = vadd.f32 %v10334_v37, %v4542_v39  ;;  %v8793_v37 = vld [vmem:[%s10988_s5 + $0x178] sm:$0xff]  ;;  %v4547_v18 = vadd.f32 %v10236_v60, %v4518_v54  ;;  %v8790_v39 = vld [vmem:[%s10988_s5 + $0x160] sm:$0xff]  ;;  %v4632_v60 = vadd.f32 %v10345_v63, %v10374_v48  ;;  %v4858_v63 = vpop.f32.mrf.mxu0  ;;  %v11029_v48 = vld [vmem:[#allocation12_spill] sm:$0xff] }
 0x3a4   : > { %6137 = vmatpush.bf16.msrb.mxu1 %v8793_v37  ;;  %6098 = vmatpush.bf16.msrb.mxu2 %v8769_v12  ;;  %v4887_v37 = vpop.f32.mrf.mxu1  ;;  %v8788_v54 = vld [vmem:[%s10988_s5 + $0x150] sm:$0xff] }
 0x3a5   : > { %4897 = vst [vmem:[#allocation5] sm:$0xff] %v4878_v13  ;;  %v4600_v19 = vadd.f32 %v10367_v30, %v4571_v11  ;;  %v8756_v30 = vld [vmem:[%s10988_s5 + $0x50] sm:$0xff]  ;;  %v8782_v13 = vld [vmem:[%s10988_s5 + $0x120] sm:$0xff] }
 0x3a6   : > { %v4821_v23 = vpop.f32.mrf.mxu3  ;;  %6090 = vmatpush.bf16.msra.mxu3 %v8756_v30  ;;  %v11028_v11 = vld [vmem:[#allocation14_spill] sm:$0xff]  ;;  %v8767_v30 = vld [vmem:[%s10988_s5 + $0xa8] sm:$0xff] }
 0x3a7   : > { %v4822_v55 = vadd.f32 %v4821_v23, %v4793_v57  ;;  %v4629_v26 = vadd.f32 %v10336_v56, %v4600_v19  ;;  %v8783_v56 = vld [vmem:[%s10988_s5 + $0x128] sm:$0xff]  ;;  %v11026_v57 = vld [vmem:[#allocation18_spill] sm:$0xff]  ;;  %v4576_v23 = vadd.f32 %v11027_v41, %v4547_v18  ;;  %v4772_v43 = vadd.f32 %v11028_v11, %v4743_v28 }
 0x3a8   : > { %6138 = vmatpush.bf16.msrb.mxu1 %v8792_v3  ;;  %6126 = vmatpush.bf16.msrb.mxu0 %v8783_v56  ;;  %v11032_v3 = vld [vmem:[#allocation20_spill] sm:$0xff]  ;;  %v8817_v41 = vld [vmem:[%s10988_s5 + $0x238] sm:$0xff] }
 0x3a9   : > { %v4851_v15 = vadd.f32 %v4850_v52, %v4822_v55  ;;  %v4658_v4 = vadd.f32 %v10340_v62, %v4629_v26  ;;  %v4605_v24 = vadd.f32 %v11030_v44, %v4576_v23  ;;  %v4801_v27 = vadd.f32 %v4800_v51, %v4772_v43  ;;  %v11033_v26 = vld [vmem:[#allocation11_spill] sm:$0xff]  ;;  %v8825_v23 = vld [vmem:[%s10988_s5 + $0x278] sm:$0xff]  ;;  %v8816_v44 = vld [vmem:[%s10988_s5 + $0x230] sm:$0xff] }
 0x3aa   : > { %6091 = vmatpush.bf16.msra.mxu3 %v8755_v36  ;;  %v11038_v11 = vld [vmem:[#allocation22_spill] sm:$0xff] }
 0x3ab   : > { %v4880_v58 = vadd.f32 %v4879_v14, %v4851_v15  ;;  %v4687_v33 = vadd.f32 %v11026_v57, %v4658_v4  ;;  %v4661_v15 = vadd.f32 %v11029_v48, %v4632_v60  ;;  %v4860_v12 = vpop.f32.mrf.mxu0  ;;  %v8778_v60 = vld [vmem:[%s10988_s5 + $0x100] sm:$0xff] }
 0x3ac   : > { %v4905_v20 = vld [vmem:[#allocation5] ss:$2 sm:$0xf]  ;;  %v4913_v9 = vld [vmem:[#allocation5 + $0x1] ss:$2 sm:$0xf]  ;;  %6139 = vmatpush.bf16.msrb.mxu1 %v8791_v6  ;;  %6127 = vmatpush.bf16.msrb.mxu0 %v8782_v13 }
 0x3ad   : > { %4898 = vst [vmem:[#allocation5 + $0x8] sm:$0xff] %v4880_v58  ;;  %v4936_v35 = vmax.f32 %v4905_v20, %v4913_v9  ;;  %v4716_v7 = vadd.f32 %v10417_v8, %v4687_v33  ;;  %v8768_v58 = vld [vmem:[%s10988_s5 + $0xb0] sm:$0xff]  ;;  %v4690_v29 = vadd.f32 %v11032_v3, %v4661_v15  ;;  %v8766_v6 = vld [vmem:[%s10988_s5 + $0xa0] sm:$0xff]  ;;  %v8773_v13 = vld [vmem:[%s10988_s5 + $0xd8] sm:$0xff] }
 0x3ae   : > { %v4824_v38 = vpop.f32.mrf.mxu3  ;;  %6092 = vmatpush.bf16.msra.mxu3 %v8754_v21  ;;  %v8776_v8 = vld [vmem:[%s10988_s5 + $0xf0] sm:$0xff]  ;;  %6099 = vmatpush.bf16.msrb.mxu2 %v8768_v58  ;;  %v8787_v21 = vld [vmem:[%s10988_s5 + $0x148] sm:$0xff] }
 0x3af   : > { %v4825_v52 = vadd.f32 %v4824_v38, %v4796_v31  ;;  %v4745_v10 = vadd.f32 %v11031_v50, %v4716_v7  ;;  %v8789_v31 = vld [vmem:[%s10988_s5 + $0x158] sm:$0xff]  ;;  %v4719_v2 = vadd.f32 %v10434_v40, %v4690_v29  ;;  %v8779_v40 = vld [vmem:[%s10988_s5 + $0x108] sm:$0xff]  ;;  %v8764_v15 = vld [vmem:[%s10988_s5 + $0x90] sm:$0xff] }
 0x3b0   : > { %6140 = vmatpush.bf16.msrb.mxu1 %v8790_v39  ;;  %6128 = vmatpush.bf16.msrb.mxu0 %v8781_v16  ;;  %v4889_v39 = vpop.f32.mrf.mxu1  ;;  %v8824_v16 = vld [vmem:[%s10988_s5 + $0x270] sm:$0xff]  ;;  %v8771_v50 = vld [vmem:[%s10988_s5 + $0xc8] sm:$0xff] }
 0x3b1   : > { %v4854_v14 = vadd.f32 %v4853_v61, %v4825_v52  ;;  %v4634_v52 = vadd.f32 %v11033_v26, %v4605_v24  ;;  %v4774_v56 = vadd.f32 %v11034_v5, %v4745_v10  ;;  %v4957_v24 = vlaneseq  ;;  %v8823_v3 = vld [vmem:[%s10988_s5 + $0x268] sm:$0xff]  ;;  %v8844_v10 = vld [vmem:[%s10988_s5 + $0x310] sm:$0xff] }
 0x3b2   : > { %6111 = vmatpush.bf16.msrb.mxu3 %v8777_v34  ;;  %6100 = vmatpush.bf16.msrb.mxu2 %v8767_v30  ;;  %v11036_v34 = vld [vmem:[#allocation21_spill] sm:$0xff]  ;;  %v8815_v30 = vld [vmem:[%s10988_s5 + $0x228] sm:$0xff] }
 0x3b3   : > { %v4883_v1 = vadd.f32 %v4882_v59, %v4854_v14  ;;  %v4663_v4 = vadd.f32 %v11035_v45, %v4634_v52  ;;  %v4748_v18 = vadd.f32 %v11036_v34, %v4719_v2  ;;  %vm10639_vm3 = vcmp.lt.s32.totalorder %v4957_v24, 128  ;;  %v8809_v24 = vld [vmem:[%s10988_s5 + $0x1f8] sm:$0xff] }
 0x3b4   : > { %v4921_v25 = vld [vmem:[#allocation5 + $0x8] ss:$2 sm:$0xf]  ;;  %v4929_v62 = vld [vmem:[#allocation5 + $0x9] ss:$2 sm:$0xf]  ;;  %6141 = vmatpush.bf16.msrb.mxu1 %v8789_v31  ;;  %6129 = vmatpush.bf16.msrb.mxu0 %v8780_v46 }
 0x3b5   : > { %v4940_v53 = vmax.f32 %v4921_v25, %v4929_v62  ;;  %4899 = vst [vmem:[#allocation5 + $0x10] sm:$0xff] %v4883_v1  ;;  %v4777_v43 = vadd.f32 %v11038_v11, %v4748_v18  ;;  %v8822_v18 = vld [vmem:[%s10988_s5 + $0x260] sm:$0xff]  ;;  %v8801_v11 = vld [vmem:[%s10988_s5 + $0x1b8] sm:$0xff] }
 0x3b6   : > { %v4826_v42 = vpop.f32.mrf.mxu3  ;;  %6112 = vmatpush.bf16.msrb.mxu3 %v8776_v8  ;;  %6101 = vmatpush.bf16.msrb.mxu2 %v8766_v6 }
 0x3b7   : > { %v4944_v17 = vmax.f32 %v4936_v35, %v4940_v53  ;;  %v4827_v61 = vadd.f32 %v4826_v42, %v4798_v32  ;;  %v8765_v32 = vld [vmem:[%s10988_s5 + $0x98] sm:$0xff]  ;;  %v11037_v42 = vld [vmem:[#allocation23_spill] sm:$0xff] }
 0x3b8   : > { %6142 = vmatpush.bf16.msrb.mxu1 %v8788_v54  ;;  %6130 = vmatpush.bf16.msrb.mxu0 %v8779_v40  ;;  %v4692_v57 = vadd.f32 %v11037_v42, %v4663_v4  ;;  %v4892_v46 = vpop.f32.mrf.mxu1 }
 0x3b9   : > { %v4948_v55 = vmax.f32 %v4944_v17, 0.0  ;;  %v4856_v59 = vadd.f32 %v4855_v49, %v4827_v61  ;;  %v4802_v49 = vpop.f32.mrf.mxu2  ;;  %v8786_v61 = vld [vmem:[%s10988_s5 + $0x140] sm:$0xff] }
 0x3ba   : > { %6113 = vmatpush.bf16.msrb.mxu3 %v8775_v0  ;;  %v4803_v53 = vadd.f32 %v4802_v49, %v4774_v56  ;;  %v4721_v7 = vadd.f32 %v10441_v47, %v4692_v57  ;;  %6102 = vmatpush.bf16.msrb.mxu2 %v8765_v32  ;;  %v8772_v47 = vld [vmem:[%s10988_s5 + $0xd0] sm:$0xff]  ;;  %v8814_v56 = vld [vmem:[%s10988_s5 + $0x220] sm:$0xff] }
 0x3bb   : > { %4952 = vst [vmem:[#allocation6] sm:$0xf] %v4948_v55  ;;  %v4885_v19 = vadd.f32 %v4884_v22, %v4856_v59  ;;  %v8774_v22 = vld [vmem:[%s10988_s5 + $0xe0] sm:$0xff]  ;;  %v11042_v49 = vld [vmem:[#allocation25_spill] sm:$0xff] }
 0x3bc   : > { %v4907_v20 = vld [vmem:[#allocation5 + $0x10] ss:$2 sm:$0xf]  ;;  %v4915_v9 = vld [vmem:[#allocation5 + $0x11] ss:$2 sm:$0xf]  ;;  %6143 = vmatpush.bf16.msrb.mxu1 %v8787_v21  ;;  %6131 = vmatpush.bf16.msrb.mxu0 %v8778_v60 }
 0x3bd   : > { %4900 = vst [vmem:[#allocation5 + $0x18] sm:$0xff] %v4885_v19  ;;  %v4937_v62 = vmax.f32 %v4907_v20, %v4915_v9  ;;  %v11039_v19 = vld [vmem:[#allocation24_spill] sm:$0xff]  ;;  %v8762_v20 = vld [vmem:[%s10988_s5 + $0x80] sm:$0xff] }
 0x3be   : > { %v4829_v38 = vpop.f32.mrf.mxu3  ;;  %6114 = vmatpush.bf16.msrb.mxu3 %v8774_v22  ;;  %v4750_v58 = vadd.f32 %v11039_v19, %v4721_v7  ;;  %6103 = vmatpush.bf16.msrb.mxu2 %v8764_v15  ;;  %v8812_v57 = vld [vmem:[%s10988_s5 + $0x210] sm:$0xff]  ;;  %v8810_v19 = vld [vmem:[%s10988_s5 + $0x200] sm:$0xff] }
 0x3bf   : > { %v4830_v36 = vadd.f32 %v4829_v38, %v4801_v27  ;;  %v4863_v27 = vpop.f32.mrf.mxu0 }
 0x3c0   : > { %6144 = vmatpush.bf16.msrb.mxu1 %v8786_v61  ;;  %6176 = vmatpush.bf16.msra.mxu0 %v8817_v41  ;;  %v4779_v2 = vadd.f32 %v11042_v49, %v4750_v58  ;;  %v4894_v60 = vpop.f32.mrf.mxu1  ;;  %v8819_v41 = vld [vmem:[%s10988_s5 + $0x248] sm:$0xff]  ;;  %v8818_v58 = vld [vmem:[%s10988_s5 + $0x240] sm:$0xff] }
 0x3c1   : > { %v4859_v14 = vadd.f32 %v4858_v63, %v4830_v36  ;;  %v4805_v63 = vpop.f32.mrf.mxu2  ;;  %v8799_v49 = vld [vmem:[%s10988_s5 + $0x1a8] sm:$0xff] }
 0x3c2   : > { %6115 = vmatpush.bf16.msrb.mxu3 %v8773_v13  ;;  %v4806_v8 = vadd.f32 %v4805_v63, %v4777_v43  ;;  %v4956_v29 = vld [vmem:[#allocation6] sm:$0x1]  ;;  %v4962_v38 = vld [vmem:[#allocation6 + $0x1] sm:$0x1]  ;;  %v4964_v52 = vld [vmem:[#allocation6 + $0x2] sm:$0x1] }
 0x3c3   : > { %v4888_v1 = vadd.f32 %v4887_v37, %v4859_v14  ;;  %v8763_v37 = vld [vmem:[%s10988_s5 + $0x88] sm:$0xff]  ;;  %4961 = vst.msk [vmem:[#allocation7] sm:$0x1] %vm10639_vm3, %v4956_v29  ;;  %v4966_v36 = vld [vmem:[#allocation6 + $0x3] sm:$0x1]  ;;  %v8821_v13 = vld [vmem:[%s10988_s5 + $0x258] sm:$0xff] }
 0x3c4   : > { %v4923_v28 = vld [vmem:[#allocation5 + $0x18] ss:$2 sm:$0xf]  ;;  %v4931_v25 = vld [vmem:[#allocation5 + $0x19] ss:$2 sm:$0xf]  ;;  %6189 = vmatpush.bf16.msra.mxu1 %v8825_v23  ;;  %6177 = vmatpush.bf16.msra.mxu0 %v8816_v44 }
 0x3c5   : > { %v4941_v35 = vmax.f32 %v4923_v28, %v4931_v25  ;;  %4901 = vst [vmem:[#allocation5 + $0x20] sm:$0xff] %v4888_v1  ;;  %6104 = vmatpush.bf16.msrb.mxu2 %v8763_v37  ;;  %v8770_v14 = vld [vmem:[%s10988_s5 + $0xc0] sm:$0xff] }
 0x3c6   : > { %v4831_v51 = vpop.f32.mrf.mxu3  ;;  %6116 = vmatpush.bf16.msrb.mxu3 %v8772_v47  ;;  %4963 = vst.msk [vmem:[#allocation7 + $0x1] sm:$0x1] %vm10639_vm3, %v4962_v38 }
 0x3c7   : > { %v4945_v33 = vmax.f32 %v4937_v62, %v4941_v35  ;;  %v4832_v17 = vadd.f32 %v4831_v51, %v4803_v53  ;;  %4965 = vst.msk [vmem:[#allocation7 + $0x2] sm:$0x1] %vm10639_vm3, %v4964_v52  ;;  %v8813_v53 = vld [vmem:[%s10988_s5 + $0x218] sm:$0xff]  ;;  %v4865_v32 = vpop.f32.mrf.mxu0 }
 0x3c8   : > { %6190 = vmatpush.bf16.msra.mxu1 %v8824_v16  ;;  %6178 = vmatpush.bf16.msra.mxu0 %v8815_v30  ;;  %4967 = vst.msk [vmem:[#allocation7 + $0x3] sm:$0x1] %vm10639_vm3, %v4966_v36  ;;  %v8857_v30 = vld [vmem:[%s10988_s5 + $0x378] sm:$0xff]  ;;  %v8848_v36 = vld [vmem:[%s10988_s5 + $0x330] sm:$0xff] }
 0x3c9   : > { %v4949_v55 = vmax.f32 %v4945_v33, 0.0  ;;  %v4861_v59 = vadd.f32 %v4860_v12, %v4832_v17  ;;  %v4807_v40 = vpop.f32.mrf.mxu2  ;;  %6105 = vmatpush.bf16.msrb.mxu2 %v8762_v20  ;;  %v8820_v33 = vld [vmem:[%s10988_s5 + $0x250] sm:$0xff]  ;;  %v8811_v17 = vld [vmem:[%s10988_s5 + $0x208] sm:$0xff] }
 0x3ca   : > { %6117 = vmatpush.bf16.msrb.mxu3 %v8771_v50  ;;  %v4808_v12 = vadd.f32 %v4807_v40, %v4779_v2  ;;  %v8807_v2 = vld [vmem:[%s10988_s5 + $0x1e8] sm:$0xff]  ;;  %v8854_v40 = vld [vmem:[%s10988_s5 + $0x360] sm:$0xff] }
 0x3cb   : > { %4953 = vst [vmem:[#allocation6 + $0x4] sm:$0xf] %v4949_v55  ;;  %v4890_v48 = vadd.f32 %v4889_v39, %v4861_v59  ;;  %v8847_v20 = vld [vmem:[%s10988_s5 + $0x328] sm:$0xff] }
 0x3cc   : > { %v4909_v26 = vld [vmem:[#allocation5 + $0x20] ss:$2 sm:$0xf]  ;;  %v4917_v5 = vld [vmem:[#allocation5 + $0x21] ss:$2 sm:$0xf]  ;;  %6191 = vmatpush.bf16.msra.mxu1 %v8823_v3  ;;  %6179 = vmatpush.bf16.msra.mxu0 %v8814_v56 }
 0x3cd   : > { %4902 = vst [vmem:[#allocation5 + $0x28] sm:$0xff] %v4890_v48  ;;  %v4938_v1 = vmax.f32 %v4909_v26, %v4917_v5  ;;  %v8798_v5 = vld [vmem:[%s10988_s5 + $0x1a0] sm:$0xff] }
 0x3ce   : > { %v4834_v31 = vpop.f32.mrf.mxu3  ;;  %6118 = vmatpush.bf16.msrb.mxu3 %v8770_v14  ;;  %v8855_v14 = vld [vmem:[%s10988_s5 + $0x368] sm:$0xff]  ;;  %v8806_v56 = vld [vmem:[%s10988_s5 + $0x1e0] sm:$0xff] }
 0x3cf   : > { %v4835_v0 = vadd.f32 %v4834_v31, %v4806_v8  ;;  %v8849_v31 = vld [vmem:[%s10988_s5 + $0x338] sm:$0xff] }
 0x3d0   : > { %6192 = vmatpush.bf16.msra.mxu1 %v8822_v18  ;;  %6180 = vmatpush.bf16.msra.mxu0 %v8813_v53  ;;  %v8805_v18 = vld [vmem:[%s10988_s5 + $0x1d8] sm:$0xff]  ;;  %v8804_v53 = vld [vmem:[%s10988_s5 + $0x1d0] sm:$0xff] }
 0x3d1   : > { %v4864_v54 = vadd.f32 %v4863_v27, %v4835_v0  ;;  %v8800_v27 = vld [vmem:[%s10988_s5 + $0x1b0] sm:$0xff] }
 0x3d2   : > { %v4969_v22 = vld [vmem:[#allocation6 + $0x4] sm:$0x1]  ;;  %v4971_v9 = vld [vmem:[#allocation6 + $0x5] sm:$0x1]  ;;  %v4973_v34 = vld [vmem:[#allocation6 + $0x6] sm:$0x1] }
 0x3d3   : > { %v4893_v6 = vadd.f32 %v4892_v46, %v4864_v54  ;;  %4970 = vst.msk [vmem:[#allocation7 + $0x4] sm:$0x1] %vm10639_vm3, %v4969_v22  ;;  %v4975_v25 = vld [vmem:[#allocation6 + $0x7] sm:$0x1]  ;;  %v8808_v0 = vld [vmem:[%s10988_s5 + $0x1f0] sm:$0xff] }
 0x3d4   : > { %v4925_v45 = vld [vmem:[#allocation5 + $0x28] ss:$2 sm:$0xf]  ;;  %v4933_v4 = vld [vmem:[#allocation5 + $0x29] ss:$2 sm:$0xf]  ;;  %6193 = vmatpush.bf16.msra.mxu1 %v8821_v13  ;;  %6181 = vmatpush.bf16.msra.mxu0 %v8812_v57 }
 0x3d5   : > { %v4942_v21 = vmax.f32 %v4925_v45, %v4933_v4  ;;  %4903 = vst [vmem:[#allocation5 + $0x30] sm:$0xff] %v4893_v6  ;;  %v8856_v54 = vld [vmem:[%s10988_s5 + $0x370] sm:$0xff]  ;;  %v8795_v13 = vld [vmem:[%s10988_s5 + $0x188] sm:$0xff]  ;;  %v8794_v57 = vld [vmem:[%s10988_s5 + $0x180] sm:$0xff] }
 0x3d6   : > { %v4836_v28 = vpop.f32.mrf.mxu3  ;;  %4972 = vst.msk [vmem:[#allocation7 + $0x5] sm:$0x1] %vm10639_vm3, %v4971_v9  ;;  %v8846_v9 = vld [vmem:[%s10988_s5 + $0x320] sm:$0xff] }
 0x3d7   : > { %v4946_v62 = vmax.f32 %v4938_v1, %v4942_v21  ;;  %v4837_v35 = vadd.f32 %v4836_v28, %v4808_v12  ;;  %4974 = vst.msk [vmem:[#allocation7 + $0x6] sm:$0x1] %vm10639_vm3, %v4973_v34  ;;  %v8797_v34 = vld [vmem:[%s10988_s5 + $0x198] sm:$0xff] }
 0x3d8   : > { %4976 = vst.msk [vmem:[#allocation7 + $0x7] sm:$0x1] %vm10639_vm3, %v4975_v25  ;;  %6194 = vmatpush.bf16.msra.mxu1 %v8820_v33  ;;  %6182 = vmatpush.bf16.msra.mxu0 %v8811_v17  ;;  %v8845_v25 = vld [vmem:[%s10988_s5 + $0x318] sm:$0xff]  ;;  %v8802_v33 = vld [vmem:[%s10988_s5 + $0x1c0] sm:$0xff] }
 0x3d9   : > { %v4950_v39 = vmax.f32 %v4946_v62, 0.0  ;;  %v4866_v51 = vadd.f32 %v4865_v32, %v4837_v35  ;;  %v8853_v62 = vld [vmem:[%s10988_s5 + $0x358] sm:$0xff]  ;;  %v8796_v35 = vld [vmem:[%s10988_s5 + $0x190] sm:$0xff] }
 0x3da   : > { %v8852_v32 = vld [vmem:[%s10988_s5 + $0x350] sm:$0xff]  ;;  %v8833_v17 = vld [vmem:[%s10988_s5 + $0x2b8] sm:$0xff] }
 0x3db   : > { %4954 = vst [vmem:[#allocation6 + $0x8] sm:$0xf] %v4950_v39  ;;  %v4895_v42 = vadd.f32 %v4894_v60, %v4866_v51  ;;  %v8803_v39 = vld [vmem:[%s10988_s5 + $0x1c8] sm:$0xff] }
 0x3dc   : > { %v4911_v43 = vld [vmem:[#allocation5 + $0x30] ss:$2 sm:$0xf]  ;;  %v4919_v63 = vld [vmem:[#allocation5 + $0x31] ss:$2 sm:$0xf]  ;;  %6195 = vmatpush.bf16.msra.mxu1 %v8819_v41  ;;  %6183 = vmatpush.bf16.msra.mxu0 %v8810_v19 }
 0x3dd   : > { %4904 = vst [vmem:[#allocation5 + $0x38] sm:$0xff] %v4895_v42  ;;  %v4939_v37 = vmax.f32 %v4911_v43, %v4919_v63  ;;  %v8841_v41 = vld [vmem:[%s10988_s5 + $0x2f8] sm:$0xff]  ;;  %v8851_v43 = vld [vmem:[%s10988_s5 + $0x348] sm:$0xff] }
 0x3de   : > { %v8839_v19 = vld [vmem:[%s10988_s5 + $0x2e8] sm:$0xff] }
 0x3df   : > { %v10693_v61 = vld [vmem:[#allocation7] sm:$0xff] }
 0x3e0   : > { %v4999_v23 = vperm.slane %v10693_v61, 0  ;;  %v5000_v7 = vperm.slane %v10693_v61, 1  ;;  %v5003_v55 = vperm.slane %v10693_v61, 4  ;;  %v5004_v59 = vperm.slane %v10693_v61, 5  ;;  %6196 = vmatpush.bf16.msra.mxu1 %v8818_v58  ;;  %v8830_v58 = vld [vmem:[%s10988_s5 + $0x2a0] sm:$0xff] }
 0x3e1   : > { %v5001_v6 = vperm.slane %v10693_v61, 2  ;;  %v5002_v22 = vperm.slane %v10693_v61, 3 }
 0x3e2   : > { %v5031_v48 = vpack.c.bf16 %v4999_v23, %v4999_v23  ;;  %v5032_v15 = vpack.c.bf16 %v5000_v7, %v5000_v7  ;;  %v5035_v47 = vpack.c.bf16 %v5003_v55, %v5003_v55  ;;  %v5036_v44 = vpack.c.bf16 %v5004_v59, %v5004_v59  ;;  %v4978_v3 = vld [vmem:[#allocation6 + $0x8] sm:$0x1]  ;;  %v4980_v29 = vld [vmem:[#allocation6 + $0x9] sm:$0x1]  ;;  %v4982_v46 = vld [vmem:[#allocation6 + $0xa] sm:$0x1] }
 0x3e3   : > { %4979 = vst.msk [vmem:[#allocation7 + $0x8] sm:$0x1] %vm10639_vm3, %v4978_v3  ;;  %v4984_v26 = vld [vmem:[#allocation6 + $0xb] sm:$0x1]  ;;  %v5033_v21 = vpack.c.bf16 %v5001_v6, %v5001_v6  ;;  %v5034_v12 = vpack.c.bf16 %v5002_v22, %v5002_v22  ;;  %v5005_v23 = vperm.slane %v10693_v61, 6  ;;  %v5006_v7 = vperm.slane %v10693_v61, 7 }
 0x3e4   : > { %v4927_v8 = vld [vmem:[#allocation5 + $0x38] ss:$2 sm:$0xf]  ;;  %v4935_v16 = vld [vmem:[#allocation5 + $0x39] ss:$2 sm:$0xf]  ;;  %6080 = vmatmul.bf16.vlgmr.msra.gmra.mxu2 %v5031_v48  ;;  %6093 = vmatmul.bf16.vlgmr.msra.gmra.mxu3 %v5032_v15 }
 0x3e5   : > { %v4943_v50 = vmax.f32 %v4927_v8, %v4935_v16  ;;  %6132 = vmatmul.bf16.vlgmr.msrb.gmra.mxu0 %v5035_v47  ;;  %6145 = vmatmul.bf16.vlgmr.msrb.gmra.mxu1 %v5036_v44  ;;  %4981 = vst.msk [vmem:[#allocation7 + $0x9] sm:$0x1] %vm10639_vm3, %v4980_v29  ;;  %v5037_v63 = vpack.c.bf16 %v5005_v23, %v5005_v23  ;;  %v8832_v61 = vld [vmem:[%s10988_s5 + $0x2b0] sm:$0xff]  ;;  %v8842_v47 = vld [vmem:[%s10988_s5 + $0x300] sm:$0xff]  ;;  %v8827_v29 = vld [vmem:[%s10988_s5 + $0x288] sm:$0xff] }
 0x3e6   : > { %6150 = vmatpush.bf16.msra.mxu2 %v8801_v11  ;;  %6163 = vmatpush.bf16.msra.mxu3 %v8809_v24  ;;  %4983 = vst.msk [vmem:[#allocation7 + $0xa] sm:$0x1] %vm10639_vm3, %v4982_v46  ;;  %v8843_v11 = vld [vmem:[%s10988_s5 + $0x308] sm:$0xff]  ;;  %v5038_v48 = vpack.c.bf16 %v5006_v7, %v5006_v7  ;;  %v8840_v15 = vld [vmem:[%s10988_s5 + $0x2f0] sm:$0xff]  ;;  %v8850_v44 = vld [vmem:[%s10988_s5 + $0x340] sm:$0xff] }
 0x3e7   : > { %v4947_v38 = vmax.f32 %v4939_v37, %v4943_v50  ;;  %6228 = vmatpush.bf16.msrb.mxu0 %v8849_v31  ;;  %6241 = vmatpush.bf16.msrb.mxu1 %v8857_v30  ;;  %4985 = vst.msk [vmem:[#allocation7 + $0xb] sm:$0x1] %vm10639_vm3, %v4984_v26  ;;  %v8831_v24 = vld [vmem:[%s10988_s5 + $0x2a8] sm:$0xff]  ;;  %v8838_v8 = vld [vmem:[%s10988_s5 + $0x2e0] sm:$0xff]  ;;  %v8829_v50 = vld [vmem:[%s10988_s5 + $0x298] sm:$0xff] }
 0x3e8   : > { %v8836_v3 = vld [vmem:[%s10988_s5 + $0x2d0] sm:$0xff]  ;;  %v8826_v46 = vld [vmem:[%s10988_s5 + $0x280] sm:$0xff]  ;;  %v8871_v6 = vld [vmem:[%s10988_s5 + $0x3e8] sm:$0xff] }
 0x3e9   : > { %v4951_v52 = vmax.f32 %v4947_v38, 0.0  ;;  %v8835_v38 = vld [vmem:[%s10988_s5 + $0x2c8] sm:$0xff]  ;;  %v8834_v26 = vld [vmem:[%s10988_s5 + $0x2c0] sm:$0xff] }
 0x3ea   : > { %6151 = vmatpush.bf16.msra.mxu2 %v8800_v27  ;;  %6164 = vmatpush.bf16.msra.mxu3 %v8808_v0  ;;  %v8837_v27 = vld [vmem:[%s10988_s5 + $0x2d8] sm:$0xff]  ;;  %v8828_v0 = vld [vmem:[%s10988_s5 + $0x290] sm:$0xff]  ;;  %v8862_v22 = vld [vmem:[%s10988_s5 + $0x3a0] sm:$0xff] }
 0x3eb   : > { %4955 = vst [vmem:[#allocation6 + $0xc] sm:$0xf] %v4951_v52  ;;  %6229 = vmatpush.bf16.msrb.mxu0 %v8848_v36  ;;  %6242 = vmatpush.bf16.msrb.mxu1 %v8856_v54  ;;  %v8865_v52 = vld [vmem:[%s10988_s5 + $0x3b8] sm:$0xff] }
 0x3ec   : > { %v8873_v36 = vld [vmem:[%s10988_s5 + $0x3f8] sm:$0xff] }
 0x3ee   : > { %6152 = vmatpush.bf16.msra.mxu2 %v8799_v49  ;;  %6165 = vmatpush.bf16.msra.mxu3 %v8807_v2 }
 0x3ef   : > { %6230 = vmatpush.bf16.msrb.mxu0 %v8847_v20  ;;  %6243 = vmatpush.bf16.msrb.mxu1 %v8855_v14  ;;  %v8864_v14 = vld [vmem:[%s10988_s5 + $0x3b0] sm:$0xff] }
 0x3f2   : > { %v4987_v45 = vld [vmem:[#allocation6 + $0xc] sm:$0x1]  ;;  %v4989_v4 = vld [vmem:[#allocation6 + $0xd] sm:$0x1]  ;;  %v4991_v1 = vld [vmem:[#allocation6 + $0xe] sm:$0x1]  ;;  %6153 = vmatpush.bf16.msra.mxu2 %v8798_v5  ;;  %6166 = vmatpush.bf16.msra.mxu3 %v8806_v56 }
 0x3f3   : > { %4988 = vst.msk [vmem:[#allocation7 + $0xc] sm:$0x1] %vm10639_vm3, %v4987_v45  ;;  %v4993_v28 = vld [vmem:[#allocation6 + $0xf] sm:$0x1]  ;;  %6231 = vmatpush.bf16.msrb.mxu0 %v8846_v9  ;;  %6244 = vmatpush.bf16.msrb.mxu1 %v8854_v40  ;;  %v8872_v5 = vld [vmem:[%s10988_s5 + $0x3f0] sm:$0xff]  ;;  %v8870_v9 = vld [vmem:[%s10988_s5 + $0x3e0] sm:$0xff] }
 0x3f4   : > { %4990 = vst.msk [vmem:[#allocation7 + $0xd] sm:$0x1] %vm10639_vm3, %v4989_v4  ;;  %6106 = vmatmul.bf16.vlgmr.msrb.gmra.mxu2 %v5033_v21  ;;  %6119 = vmatmul.bf16.vlgmr.msrb.gmra.mxu3 %v5034_v12  ;;  %v8863_v56 = vld [vmem:[%s10988_s5 + $0x3a8] sm:$0xff]  ;;  %v8861_v40 = vld [vmem:[%s10988_s5 + $0x398] sm:$0xff]  ;;  %v8860_v4 = vld [vmem:[%s10988_s5 + $0x390] sm:$0xff] }
 0x3f5   : > { %4992 = vst.msk [vmem:[#allocation7 + $0xe] sm:$0x1] %vm10639_vm3, %v4991_v1  ;;  %v8869_v45 = vld [vmem:[%s10988_s5 + $0x3d8] sm:$0xff]  ;;  %v8868_v1 = vld [vmem:[%s10988_s5 + $0x3d0] sm:$0xff]  ;;  %v8859_v21 = vld [vmem:[%s10988_s5 + $0x388] sm:$0xff] }
 0x3f6   : > { %4994 = vst.msk [vmem:[#allocation7 + $0xf] sm:$0x1] %vm10639_vm3, %v4993_v28  ;;  %6154 = vmatpush.bf16.msra.mxu2 %v8797_v34  ;;  %6167 = vmatpush.bf16.msra.mxu3 %v8805_v18  ;;  %v8867_v12 = vld [vmem:[%s10988_s5 + $0x3c8] sm:$0xff]  ;;  %v8858_v34 = vld [vmem:[%s10988_s5 + $0x380] sm:$0xff] }
 0x3f7   : > { %6232 = vmatpush.bf16.msrb.mxu0 %v8845_v25  ;;  %6245 = vmatpush.bf16.msrb.mxu1 %v8853_v62  ;;  %v8866_v18 = vld [vmem:[%s10988_s5 + $0x3c0] sm:$0xff] }
 0x3fa   : > { %6155 = vmatpush.bf16.msra.mxu2 %v8796_v35  ;;  %6168 = vmatpush.bf16.msra.mxu3 %v8804_v53 }
 0x3fb   : > { %6233 = vmatpush.bf16.msrb.mxu0 %v8844_v10  ;;  %6246 = vmatpush.bf16.msrb.mxu1 %v8852_v32 }
 0x3fd   : > { %v10804_v51 = vld [vmem:[#allocation7 + $0x8] sm:$0xff] }
 0x3fe   : > { %v5007_v60 = vperm.slane %v10804_v51, 0  ;;  %v5008_v42 = vperm.slane %v10804_v51, 1  ;;  %6156 = vmatpush.bf16.msra.mxu2 %v8795_v13  ;;  %6169 = vmatpush.bf16.msra.mxu3 %v8803_v39  ;;  %v5011_v16 = vperm.slane %v10804_v51, 4  ;;  %v5012_v37 = vperm.slane %v10804_v51, 5 }
 0x3ff   : > { %6234 = vmatpush.bf16.msrb.mxu0 %v8843_v11  ;;  %6247 = vmatpush.bf16.msrb.mxu1 %v8851_v43  ;;  %v5009_v54 = vperm.slane %v10804_v51, 2  ;;  %v5010_v49 = vperm.slane %v10804_v51, 3  ;;  %v5013_v28 = vperm.slane %v10804_v51, 6  ;;  %v5014_v25 = vperm.slane %v10804_v51, 7 }
 0x400   : > { %v5039_v55 = vpack.c.bf16 %v5007_v60, %v5007_v60  ;;  %v5040_v59 = vpack.c.bf16 %v5008_v42, %v5008_v42  ;;  %v5043_v31 = vpack.c.bf16 %v5011_v16, %v5011_v16  ;;  %v5044_v30 = vpack.c.bf16 %v5012_v37, %v5012_v37  ;;  %v5303_v42 = vld [vmem:[%s10989_s6] sm:$0x1] }
 0x401   : > { %v5041_v2 = vpack.c.bf16 %v5009_v54, %v5009_v54  ;;  %v5042_v20 = vpack.c.bf16 %v5010_v49, %v5010_v49  ;;  %v5045_v62 = vpack.c.bf16 %v5013_v28, %v5013_v28  ;;  %v5046_v35 = vpack.c.bf16 %v5014_v25, %v5014_v25 }
 0x402   : > { %6184 = vmatmul.bf16.vlgmr.msra.gmra.mxu0 %v5039_v55  ;;  %6197 = vmatmul.bf16.vlgmr.msra.gmra.mxu1 %v5040_v59 }
 0x403   : > { %6157 = vmatpush.bf16.msra.mxu2 %v8794_v57  ;;  %6170 = vmatpush.bf16.msra.mxu3 %v8802_v33 }
 0x404   : > { %6235 = vmatpush.bf16.msrb.mxu0 %v8842_v47  ;;  %6248 = vmatpush.bf16.msrb.mxu1 %v8850_v44 }
 0x406   : > { %6158 = vmatmul.bf16.vlgmr.msra.gmra.mxu2 %v5037_v63  ;;  %6171 = vmatmul.bf16.vlgmr.msra.gmra.mxu3 %v5038_v48 }
 0x407   : > { %6202 = vmatpush.bf16.msrb.mxu2 %v8833_v17  ;;  %6215 = vmatpush.bf16.msrb.mxu3 %v8841_v41 }
 0x40b   : > { %6203 = vmatpush.bf16.msrb.mxu2 %v8832_v61  ;;  %6216 = vmatpush.bf16.msrb.mxu3 %v8840_v15 }
 0x40f   : > { %6204 = vmatpush.bf16.msrb.mxu2 %v8831_v24  ;;  %6217 = vmatpush.bf16.msrb.mxu3 %v8839_v19  ;;  %v6288_v19 = vld [vmem:[%s10990_s7 + $0x18] sm:$0x1] }
 0x410   : > { %v6303_v16 = vunpack.c.l.b16 %v6288_v19 }
 0x412   : > { %6236 = vmatmul.bf16.vlgmr.msrb.gmra.mxu0 %v5043_v31  ;;  %6249 = vmatmul.bf16.vlgmr.msrb.gmra.mxu1 %v5044_v30  ;;  %v8876_v30 = vld [vmem:[%s10990_s7 + $0x10] sm:$0xff] }
 0x413   : > { %6205 = vmatpush.bf16.msrb.mxu2 %v8830_v58  ;;  %6218 = vmatpush.bf16.msrb.mxu3 %v8838_v8 }
 0x417   : > { %6206 = vmatpush.bf16.msrb.mxu2 %v8829_v50  ;;  %6219 = vmatpush.bf16.msrb.mxu3 %v8837_v27  ;;  %v6307_v27 = vpack.c.b16 %v6303_v16, %v6303_v16 }
 0x419   : > { %v6317_v31 = vsel %vm6315_vm4, %v6307_v27, 0 }
 0x41a   : > { %6323 = vmatpush.bf16.msra.mxu0 %v6317_v31 }
 0x41b   : > { %6207 = vmatpush.bf16.msrb.mxu2 %v8828_v0  ;;  %6220 = vmatpush.bf16.msrb.mxu3 %v8836_v3 }
 0x41e   : > { %6324 = vmatpush.bf16.msra.mxu0 %v8876_v30 }
 0x41f   : > { %6208 = vmatpush.bf16.msrb.mxu2 %v8827_v29  ;;  %6221 = vmatpush.bf16.msrb.mxu3 %v8835_v38 }
 0x423   : > { %6209 = vmatpush.bf16.msrb.mxu2 %v8826_v46  ;;  %6222 = vmatpush.bf16.msrb.mxu3 %v8834_v26  ;;  %v8875_v26 = vld [vmem:[%s10990_s7 + $0x8] sm:$0xff] }
 0x424   : > { %6325 = vmatpush.bf16.msra.mxu0 %v8875_v26 }
 0x426   : > { %6210 = vmatmul.bf16.vlgmr.msrb.gmra.mxu2 %v5041_v2  ;;  %6223 = vmatmul.bf16.vlgmr.msrb.gmra.mxu3 %v5042_v20 }
 0x427   : > { %6254 = vmatpush.bf16.msra.mxu2 %v8865_v52  ;;  %6267 = vmatpush.bf16.msra.mxu3 %v8873_v36  ;;  %v8874_v36 = vld [vmem:[%s10990_s7] sm:$0xff] }
 0x428   : > { %6326 = vmatpush.bf16.msra.mxu0 %v8874_v36 }
 0x42b   : > { %6255 = vmatpush.bf16.msra.mxu2 %v8864_v14  ;;  %6268 = vmatpush.bf16.msra.mxu3 %v8872_v5 }
 0x42f   : > { %6256 = vmatpush.bf16.msra.mxu2 %v8863_v56  ;;  %6269 = vmatpush.bf16.msra.mxu3 %v8871_v6 }
 0x433   : > { %6257 = vmatpush.bf16.msra.mxu2 %v8862_v22  ;;  %6270 = vmatpush.bf16.msra.mxu3 %v8870_v9 }
 0x437   : > { %6258 = vmatpush.bf16.msra.mxu2 %v8861_v40  ;;  %6271 = vmatpush.bf16.msra.mxu3 %v8869_v45 }
 0x43b   : > { %6259 = vmatpush.bf16.msra.mxu2 %v8860_v4  ;;  %6272 = vmatpush.bf16.msra.mxu3 %v8868_v1 }
 0x43f   : > { %6260 = vmatpush.bf16.msra.mxu2 %v8859_v21  ;;  %6273 = vmatpush.bf16.msra.mxu3 %v8867_v12 }
 0x443   : > { %6261 = vmatpush.bf16.msra.mxu2 %v8858_v34  ;;  %6274 = vmatpush.bf16.msra.mxu3 %v8866_v18  ;;  %v6289_v34 = vld [vmem:[%s10991_s8] sm:$0x1] }
 0x446   : > { %6262 = vmatmul.bf16.vlgmr.msra.gmra.mxu2 %v5045_v62  ;;  %6275 = vmatmul.bf16.vlgmr.msra.gmra.mxu3 %v5046_v35 }
 0x462   : > { %v6133_v53 = vpop.f32.mrf.mxu0  ;;  %v6146_v10 = vpop.f32.mrf.mxu1 }
 0x467   : > { %v6081_v32 = vpop.f32.mrf.mxu2  ;;  %v6094_v13 = vpop.f32.mrf.mxu3 }
 0x468   : > { %v6082_v17 = vadd.f32 %v6081_v32, %v5303_v42 }
 0x46a   : > { %v6135_v39 = vpop.f32.mrf.mxu0  ;;  %v6148_v60 = vpop.f32.mrf.mxu1  ;;  %v6095_v51 = vadd.f32 %v6094_v13, %v6082_v17 }
 0x46f   : > { %v6083_v57 = vpop.f32.mrf.mxu2  ;;  %v6096_v33 = vpop.f32.mrf.mxu3 }
 0x477   : > { %v6107_v41 = vpop.f32.mrf.mxu2  ;;  %v6120_v23 = vpop.f32.mrf.mxu3 }
 0x478   : > { %v6108_v7 = vadd.f32 %v6107_v41, %v6095_v51 }
 0x47a   : > { %v6121_v55 = vadd.f32 %v6120_v23, %v6108_v7 }
 0x47c   : > { %v6134_v59 = vadd.f32 %v6133_v53, %v6121_v55 }
 0x47e   : > { %v6147_v63 = vadd.f32 %v6146_v10, %v6134_v59 }
 0x47f   : > { %v6185_v11 = vpop.f32.mrf.mxu0  ;;  %v6198_v43 = vpop.f32.mrf.mxu1 }
 0x480   : > { %v6109_v48 = vpop.f32.mrf.mxu2  ;;  %v6122_v61 = vpop.f32.mrf.mxu3 }
 0x487   : > { %v6187_v15 = vpop.f32.mrf.mxu0  ;;  %v6200_v47 = vpop.f32.mrf.mxu1 }
 0x489   : > { %v6159_v44 = vpop.f32.mrf.mxu2  ;;  %v6172_v24 = vpop.f32.mrf.mxu3 }
 0x48a   : > { %v6160_v46 = vadd.f32 %v6159_v44, %v6147_v63 }
 0x48c   : > { %v6173_v52 = vadd.f32 %v6172_v24, %v6160_v46 }
 0x48e   : > { %v6186_v2 = vadd.f32 %v6185_v11, %v6173_v52 }
 0x48f   : > { %v6237_v58 = vpop.f32.mrf.mxu0  ;;  %v6250_v8 = vpop.f32.mrf.mxu1 }
 0x490   : > { %v6199_v20 = vadd.f32 %v6198_v43, %v6186_v2 }
 0x491   : > { %v6161_v37 = vpop.f32.mrf.mxu2  ;;  %v6174_v50 = vpop.f32.mrf.mxu3 }
 0x497   : > { %v6239_v0 = vpop.f32.mrf.mxu0  ;;  %v6252_v3 = vpop.f32.mrf.mxu1 }
 0x4a9   : > { %v6211_v29 = vpop.f32.mrf.mxu2  ;;  %v6224_v38 = vpop.f32.mrf.mxu3 }
 0x4aa   : > { %v6212_v14 = vadd.f32 %v6211_v29, %v6199_v20 }
 0x4ac   : > { %v6225_v5 = vadd.f32 %v6224_v38, %v6212_v14 }
 0x4ae   : > { %v6238_v56 = vadd.f32 %v6237_v58, %v6225_v5 }
 0x4b0   : > { %v6251_v6 = vadd.f32 %v6250_v8, %v6238_v56 }
 0x4b1   : > { %v6213_v54 = vpop.f32.mrf.mxu2  ;;  %v6226_v49 = vpop.f32.mrf.mxu3 }
 0x4c9   : > { %v6263_v22 = vpop.f32.mrf.mxu2  ;;  %v6276_v9 = vpop.f32.mrf.mxu3 }
 0x4ca   : > { %v6264_v40 = vadd.f32 %v6263_v22, %v6251_v6 }
 0x4cc   : > { %v6277_v45 = vadd.f32 %v6276_v9, %v6264_v40 }
 0x4ce   : > { %v6280_v4 = vmax.f32 %v6277_v45, 0.0 }
 0x4d0   : > { %v6281_v1 = vpack.c.bf16 %v6280_v4, %v6280_v4 }
 0x4d1   : > { %v6265_v21 = vpop.f32.mrf.mxu2  ;;  %v6278_v12 = vpop.f32.mrf.mxu3 }
 0x4d2   : > { %8401 = vmatmul.msk.bf16.vlgmr.msra.gmra.mxu0 %vm6311_vm5, %v6281_v1 }
 0x54f   : > { %v6328_v18 = vpop.f32.mrf.mxu0 }
 0x550   : > { %v6329_v28 = vadd.f32 %v6328_v18, %v6289_v34 }
 0x552   : > { %v6333_v25 = vsel %vm6332_vm6, %v6329_v28, -inf }
 0x553   : > { %6334 = vmax.xlane.f32.xlu0 %v6333_v25 }
 0x557   : > { %v6330_v62 = vpop.f32.mrf.mxu0 }
 0x5c6   : > { %v6335_v35 = vpop.xlane.xlu0 %6334 }
 0x5c7   : > { %v6336_v53 = vsub.f32 %v6329_v28, %v6335_v35 }
 0x5c9   : > { %v6337_v10 = vmul.f32 1.442695, %v6336_v53 }
 0x5cb   : > { %8921 = vpow2.f32 %v6337_v10 }
 0x5d1   : > { %v8922_v32 = vpop.eup %8921 }
 0x5d2   : > { %v6339_v13 = vsel %vm6332_vm6, %v8922_v32, 0.0 }
 0x5d3   : > { %6340 = vadd.xlane.f32.xlu0 %v6339_v13 }
 0x646   : > { %v6341_v39 = vpop.xlane.xlu0 %6340 }
 0x647   : > { %8923 = vlog2.f32 %v6341_v39 }
 0x64d   : > { %v8924_v60 = vpop.eup %8923 }
 0x64e   : > { %v6343_v42 = vmul.f32 0.6931472, %v8924_v60 }
 0x650   : > { %v6344_v57 = vsub.f32 %v6336_v53, %v6343_v42 }
 0x652   : > { %6345 = vst.msk [vmem:[%s325_s28] sm:$0x1] %vm6332_vm6, %v6344_v57 }
 0x653   : > { %8955 = shalt.err (!%p8952_p3)
}
 0x654   : > { %8877 = dma.vmem_to_hbm [thread:$0]  (%p9081_p5), %s6358_s29, 16, %s6360_s25, %s6347_s14  }
 0x655 PF: > { %p8883_p4 = scmp.ge.s32.totalorder %s8990_s12, 2  ;;  %s6371_s23 = sand.u32 1, %s8978_s30  }
 0x656   : > { %s6372_s27 = scalar_lea.sflag [#allocation9], %s6371_s23 }
 0x657   : > { %p8880_p7 = pnand %p8883_p4, %p9085_p6 }
 0x659   : > { %p8881_p8 = pneg %p8880_p7 }
 0x65b   : > { %8973 = dma.done.wait (%p8881_p8), %s6372_s27, 16  }
 0x65c   : > { %8975 = vsyncadd (%p8881_p8), %s6372_s27, 4294967280  ;;  %p19_p9 = scmp.ge.s32.totalorder %s9068_s15, 4   ;;  %s11043_s30 = smov %s8982_s10 }
 0x65d   : > { %s11044_s10 = smov %s8986_s11  ;;  %s11045_s11 = smov %s9079_s18 }
 0x65e   : > { %s11046_s12 = smov %s9068_s15  ;;  %21 = sbr.rel (!%p19_p9) target bundleno = 3 (0x3), region = 210 }
 0x663   :  { %6377 = vsyncpa [#allocation9], 1 }
 0x664   :  { %6379 = vsyncpa [#allocation9 + $0x1], 1 }

</bundles_post_ra>
